<compile_context>
chip_gen: v6e
topology: v6e:2x2x1
jax: 0.10.0
libtpu: 0.0.40
codegen_flags: <defaults>
</compile_context>

<pallas_src>
import numpy as np
import jax
import jax.numpy as jnp
from jax.experimental import pallas as pl
from jax.experimental.pallas import tpu as pltpu


# ----------------------------- geometry helpers -----------------------------


def _layer_dims(depth, kernels, out_ch):
    """Per-convT-layer dims for the thin=True decoder (square spatial)."""
    chans = [32 * depth, 4 * depth, 2 * depth, 1 * depth, out_ch]
    dims, H = [], 1
    for i in range(4):
        k = kernels[i]
        OH = 2 * H + k - 2          # stride-2, padding-0 transposed conv
        dims.append(dict(cin=chans[i], cout=chans[i + 1], k=k, H=H, OH=OH))
        H = OH
    return dims


# ------------------------------- Pallas kernel -------------------------------


def _decoder_kernel(feat_ref, wd_ref, bd_ref,
                    g1_ref, s1_ref, b1_ref,
                    g2_ref, s2_ref, b2_ref,
                    g3_ref, s3_ref, b3_ref,
                    g4_ref, s4_ref, b4_ref,
                    o_ref,
                    y1_ref, y2_ref, y3_ref, y4_ref):
    """Whole decoder for one batch tile, fully VMEM resident.

    Activation convention between layers (2-D matrices):
      rows  = (image_row h, sample tb)   [(tb, image_row) for the final layer]
      lanes = (image_col w, channel c)   -> lane width 160 / 208 / 240 / 192.
    """

    def layer(x_bf16, g_ref, s_ref, b_ref, y_ref, relu):
        k = g_ref.shape[0]
        rows = x_bf16.shape[0]
        # Stage 1: per kernel-row matmul; columns are already W-interleaved.
        for kh in range(k):                                    # static unroll
            y_ref[kh * rows:(kh + 1) * rows, :] = jnp.dot(
                x_bf16, g_ref[kh], preferred_element_type=jnp.float32)
        # Stage 2: 0/1 row-spread matmul sums the kh/h overlaps in the MXU.
        out = jnp.dot(s_ref[...], y_ref[...],
                      preferred_element_type=jnp.float32) + b_ref[...]
        return jnp.maximum(out, 0.0) if relu else out

    # dense (no activation); rows = samples == (h=0, tb) of the 1x1 seed image.
    h = jnp.dot(feat_ref[...].astype(jnp.bfloat16), wd_ref[...],
                preferred_element_type=jnp.float32) + bd_ref[...]
    a = layer(h.astype(jnp.bfloat16), g1_ref, s1_ref, b1_ref, y1_ref, True)
    a = layer(a.astype(jnp.bfloat16), g2_ref, s2_ref, b2_ref, y2_ref, True)
    a = layer(a.astype(jnp.bfloat16), g3_ref, s3_ref, b3_ref, y3_ref, True)
    o_ref[...] = layer(a.astype(jnp.bfloat16), g4_ref, s4_ref, b4_ref, y4_ref,
                       False)


# ------------------------------ parameter packing ----------------------------


def pack_params(params, *, depth, kernels, shape):
    """Pack PyTorch-layout parameters into the fused kernel's matmul layouts."""
    dims = _layer_dims(depth, kernels, shape[-1])
    packed = dict(
        wd=jnp.asarray(np.asarray(params["dense_w"]).T, jnp.bfloat16),   # (in,out)
        bd=jnp.asarray(np.asarray(params["dense_b"]).reshape(1, -1), jnp.float32),
    )
    for i, d in enumerate(dims):
        w = np.asarray(params[f"w{i + 1}"], np.float32)      # (Cin, Cout, k, k)
        b = np.asarray(params[f"b{i + 1}"], np.float32)
        cin, cout, k, Hin, OH = d["cin"], d["cout"], d["k"], d["H"], d["OH"]
        # G[kh, (w, ci), (ow, co)] = W[ci, co, kh, ow - 2w]  (zero elsewhere):
        # contracting (w, ci) produces output columns already interleaved in ow.
        G = np.zeros((k, Hin * cin, OH * cout), np.float32)
        for kh in range(k):
            for wi in range(Hin):
                for kw in range(k):
                    ow = 2 * wi + kw
                    G[kh, wi * cin:(wi + 1) * cin,
                      ow * cout:(ow + 1) * cout] = w[:, :, kh, kw]
        packed[f"g{i + 1}"] = jnp.asarray(G, jnp.bfloat16)
        packed[f"b{i + 1}"] = jnp.asarray(np.tile(b, OH).reshape(1, -1),
                                          jnp.float32)
    return packed


def _make_spread(dims, tb):
    """0/1 row-spreading matrices S (one per layer) for a batch tile of tb."""
    mats = []
    for i, d in enumerate(dims):
        k, Hin, OH = d["k"], d["H"], d["OH"]
        last = i == len(dims) - 1
        S = np.zeros((OH * tb, k * Hin * tb), np.float32)
        for kh in range(k):
            for h in range(Hin):
                oh = 2 * h + kh
                for t in range(tb):
                    row = t * OH + oh if last else oh * tb + t
                    S[row, (kh * Hin + h) * tb + t] = 1.0
        mats.append(jnp.asarray(S, jnp.float32))
    return mats


# --------------------------------- wrapper -----------------------------------


def conv_decoder_forward(features, packed, *, depth, kernels, shape,
                         batch_tile=8):
    """Fused Pallas forward; returns the mean of Independent(Normal(mean,1),3)."""
    lead = features.shape[:-1]
    B = int(np.prod(lead)) if lead else 1
    F = features.shape[-1]
    dims = _layer_dims(depth, kernels, shape[-1])
    OHf, Cf = dims[-1]["OH"], dims[-1]["cout"]

    TB = min(batch_tile, B)
    n_tiles = (B + TB - 1) // TB
    B_pad = n_tiles * TB

    f2 = features.reshape(B, F).astype(jnp.float32)
    if B_pad != B:
        f2 = jnp.pad(f2, ((0, B_pad - B), (0, 0)))

    spread = _make_spread(dims, TB)
    weights = [packed["wd"], packed["bd"]]
    for i in range(4):
        weights += [packed[f"g{i + 1}"], spread[i], packed[f"b{i + 1}"]]

    def const_spec(arr):                # full block, constant index map ->
        nd = arr.ndim                   # parameters stay VMEM-resident
        return pl.BlockSpec(arr.shape, lambda i, _n=nd: (0,) * _n)

    in_specs = ([pl.BlockSpec((TB, F), lambda i: (i, 0))]
                + [const_spec(w) for w in weights])
    out_specs = pl.BlockSpec((TB * OHf, OHf * Cf), lambda i: (i, 0))
    scratch = [pltpu.VMEM((d["k"] * d["H"] * TB, d["OH"] * d["cout"]),
                          jnp.float32) for d in dims]

    flops = 2 * B_pad * F * F
    for d in dims:
        flops += 2 * d["k"] * d["H"] * B_pad * (d["H"] * d["cin"]) * (d["OH"] * d["cout"])
        flops += 2 * d["OH"] * B_pad * (d["k"] * d["H"] * TB) * (d["OH"] * d["cout"])
    bytes_in = f2.size * f2.dtype.itemsize + sum(
        int(np.prod(w.shape)) * w.dtype.itemsize for w in weights)
    bytes_out = B_pad * OHf * OHf * Cf * 4

    out = pl.pallas_call(
        _decoder_kernel,
        out_shape=jax.ShapeDtypeStruct((B_pad * OHf, OHf * Cf), jnp.float32),
        grid=(n_tiles,),
        in_specs=in_specs,
        out_specs=out_specs,
        scratch_shapes=scratch,
        compiler_params=pltpu.CompilerParams(dimension_semantics=("parallel",)),
        cost_estimate=pl.CostEstimate(flops=int(flops), transcendentals=0,
                                      bytes_accessed=int(bytes_in + bytes_out)),
    )(f2, *weights)

    nhwc = out.reshape(B_pad, OHf, OHf, Cf)[:B]
    nchw = jnp.transpose(nhwc, (0, 3, 1, 2))
    # Faithful to the PyTorch module: `.view` reinterprets the contiguous NCHW
    # buffer as (..., 64, 64, 3) WITHOUT permuting (quirk of the original).
    return nchw.reshape(*lead, *shape)


# --------------------------- parameters & reference --------------------------


def init_params(key, depth, kernels, out_ch):
    """Deterministic synthetic parameters in PyTorch layouts."""
    F = 32 * depth
    chans = [32 * depth, 4 * depth, 2 * depth, 1 * depth, out_ch]
    ks = jax.random.split(key, 10)
    p = {
        "dense_w": jax.random.normal(ks[0], (F, F), jnp.float32) / np.sqrt(F),
        "dense_b": 0.1 * jax.random.normal(ks[1], (F,), jnp.float32),
    }
    for i in range(4):
        cin, cout, k = chans[i], chans[i + 1], kernels[i]
        p[f"w{i + 1}"] = (jax.random.normal(ks[2 + 2 * i], (cin, cout, k, k),
                                            jnp.float32) / np.sqrt(cin * k))
        p[f"b{i + 1}"] = 0.1 * jax.random.normal(ks[3 + 2 * i], (cout,),
                                                 jnp.float32)
    return p


def _convT_ref(x, w, b, stride=2):
    """Pure-JAX ConvTranspose2d(stride, padding=0) mirroring PyTorch (NCHW)."""
    k = w.shape[-1]
    wconv = jnp.transpose(jnp.flip(w, (-2, -1)), (1, 0, 2, 3))   # (Cout,Cin,k,k)
    y = jax.lax.conv_general_dilated(
        x, wconv, window_strides=(1, 1),
        padding=[(k - 1, k - 1), (k - 1, k - 1)],
        lhs_dilation=(stride, stride),
        dimension_numbers=("NCHW", "OIHW", "NCHW"))
    return y + b.reshape(1, -1, 1, 1)


def conv_decoder_ref(features, p, *, depth, kernels, shape):
    """f32 reference mirroring the PyTorch forward (thin=True)."""
    lead = features.shape[:-1]
    B = int(np.prod(lead)) if lead else 1
    x = features.reshape(B, -1) @ p["dense_w"].T + p["dense_b"]
    x = x.reshape(B, 32 * depth, 1, 1)
    x = jax.nn.relu(_convT_ref(x, p["w1"], p["b1"]))
    x = jax.nn.relu(_convT_ref(x, p["w2"], p["b2"]))
    x = jax.nn.relu(_convT_ref(x, p["w3"], p["b3"]))
    x = _convT_ref(x, p["w4"], p["b4"])
    return x.reshape(*lead, *shape)        # mirrors torch .view on NCHW tensor


# ----------------------------------- main -------------------------------------


if __name__ == "__main__":
    # Small ConvDecoder config: depth=8 -> feature dim 32*8=256, output 64x64x3.
    depth, kernels, shape = 8, (5, 5, 6, 6), (64, 64, 3)
    B = 2
    key = jax.random.PRNGKey(0)
    kf, kp = jax.random.split(key)
    features = jax.random.normal(kf, (B, 32 * depth), jnp.float32)
    params = init_params(kp, depth=depth, kernels=kernels, out_ch=shape[-1])
    packed = pack_params(params, depth=depth, kernels=kernels, shape=shape)

    mean = conv_decoder_forward(features, packed, depth=depth, kernels=kernels,
                                shape=shape)
    mean = jax.block_until_ready(mean)

    ref = conv_decoder_ref(features, params, depth=depth, kernels=kernels,
                           shape=shape)
    assert mean.shape == (B,) + shape
    np.testing.assert_allclose(np.asarray(mean), np.asarray(ref),
                               atol=5e-2, rtol=5e-2)
    print("KERNEL_OK")
</pallas_src>

<mosaic_0001>
module attributes {stable_mosaic.version = 11 : i64} {
  func.func @_decoder_kernel(%arg0: i32, %arg1: memref<2x256xf32, #tpu.memory_space<vmem>>, %arg2: memref<256x256xbf16, #tpu.memory_space<vmem>>, %arg3: memref<1x256xf32, #tpu.memory_space<vmem>>, %arg4: memref<5x256x160xbf16, #tpu.memory_space<vmem>>, %arg5: memref<10x10xf32, #tpu.memory_space<vmem>>, %arg6: memref<1x160xf32, #tpu.memory_space<vmem>>, %arg7: memref<5x160x208xbf16, #tpu.memory_space<vmem>>, %arg8: memref<26x50xf32, #tpu.memory_space<vmem>>, %arg9: memref<1x208xf32, #tpu.memory_space<vmem>>, %arg10: memref<6x208x240xbf16, #tpu.memory_space<vmem>>, %arg11: memref<60x156xf32, #tpu.memory_space<vmem>>, %arg12: memref<1x240xf32, #tpu.memory_space<vmem>>, %arg13: memref<6x240x192xbf16, #tpu.memory_space<vmem>>, %arg14: memref<128x360xf32, #tpu.memory_space<vmem>>, %arg15: memref<1x192xf32, #tpu.memory_space<vmem>>, %arg16: memref<128x192xf32, #tpu.memory_space<vmem>>, %arg17: memref<10x160xf32, #tpu.memory_space<vmem>>, %arg18: memref<50x208xf32, #tpu.memory_space<vmem>>, %arg19: memref<156x240xf32, #tpu.memory_space<vmem>>, %arg20: memref<360x192xf32, #tpu.memory_space<vmem>>) attributes {dimension_semantics = [#tpu.dimension_semantics<parallel>], iteration_bounds = array<i64: 1>, scalar_prefetch = 0 : i64, scratch_operands = 4 : i64, tpu.core_type = #tpu.core_type<tc>, window_params = [{transform_indices = @transform_0, window_bounds = array<i64: 2, 256>}, {pipeline_mode = #tpu.pipeline_mode<synchronous>, transform_indices = @transform_1, window_bounds = array<i64: 256, 256>}, {pipeline_mode = #tpu.pipeline_mode<synchronous>, transform_indices = @transform_2, window_bounds = array<i64: 1, 256>}, {pipeline_mode = #tpu.pipeline_mode<synchronous>, transform_indices = @transform_3, window_bounds = array<i64: 5, 256, 160>}, {pipeline_mode = #tpu.pipeline_mode<synchronous>, transform_indices = @transform_4, window_bounds = array<i64: 10, 10>}, {pipeline_mode = #tpu.pipeline_mode<synchronous>, transform_indices = @transform_5, window_bounds = array<i64: 1, 160>}, {pipeline_mode = #tpu.pipeline_mode<synchronous>, transform_indices = @transform_6, window_bounds = array<i64: 5, 160, 208>}, {pipeline_mode = #tpu.pipeline_mode<synchronous>, transform_indices = @transform_7, window_bounds = array<i64: 26, 50>}, {pipeline_mode = #tpu.pipeline_mode<synchronous>, transform_indices = @transform_8, window_bounds = array<i64: 1, 208>}, {pipeline_mode = #tpu.pipeline_mode<synchronous>, transform_indices = @transform_9, window_bounds = array<i64: 6, 208, 240>}, {pipeline_mode = #tpu.pipeline_mode<synchronous>, transform_indices = @transform_10, window_bounds = array<i64: 60, 156>}, {pipeline_mode = #tpu.pipeline_mode<synchronous>, transform_indices = @transform_11, window_bounds = array<i64: 1, 240>}, {pipeline_mode = #tpu.pipeline_mode<synchronous>, transform_indices = @transform_12, window_bounds = array<i64: 6, 240, 192>}, {pipeline_mode = #tpu.pipeline_mode<synchronous>, transform_indices = @transform_13, window_bounds = array<i64: 128, 360>}, {pipeline_mode = #tpu.pipeline_mode<synchronous>, transform_indices = @transform_14, window_bounds = array<i64: 1, 192>}, {transform_indices = @transform_15, window_bounds = array<i64: 128, 192>}]} {
    %c0 = arith.constant 0 : index
    %c0_0 = arith.constant 0 : index
    %0 = vector.load %arg1[%c0, %c0_0] : memref<2x256xf32, #tpu.memory_space<vmem>>, vector<2x256xf32>
    %1 = arith.truncf %0 : vector<2x256xf32> to vector<2x256xbf16>
    %c0_1 = arith.constant 0 : index
    %c0_2 = arith.constant 0 : index
    %2 = vector.load %arg2[%c0_1, %c0_2] : memref<256x256xbf16, #tpu.memory_space<vmem>>, vector<256x256xbf16>
    %cst = arith.constant dense<0.000000e+00> : vector<2x256xf32>
    %3 = tpu.matmul %1, %2, %cst {dimension_numbers = #tpu.dot_dimension_numbers<[1], [0], [0], [1], [0, 0, 1, 1], [], []>} : vector<2x256xbf16>, vector<256x256xbf16>, vector<2x256xf32> -> vector<2x256xf32>
    %c0_3 = arith.constant 0 : index
    %c0_4 = arith.constant 0 : index
    %4 = vector.load %arg3[%c0_3, %c0_4] : memref<1x256xf32, #tpu.memory_space<vmem>>, vector<1x256xf32>
    %5 = vector.broadcast %4 : vector<1x256xf32> to vector<2x256xf32>
    %6 = arith.addf %3, %5 : vector<2x256xf32>
    %7 = arith.truncf %6 : vector<2x256xf32> to vector<2x256xbf16>
    %c0_5 = arith.constant 0 : index
    %c0_6 = arith.constant 0 : index
    %c0_7 = arith.constant 0 : index
    %8 = vector.load %arg4[%c0_5, %c0_6, %c0_7] : memref<5x256x160xbf16, #tpu.memory_space<vmem>>, vector<1x256x160xbf16>
    %9 = vector.shape_cast %8 : vector<1x256x160xbf16> to vector<256x160xbf16>
    %cst_8 = arith.constant dense<0.000000e+00> : vector<2x160xf32>
    %10 = tpu.matmul %7, %9, %cst_8 {dimension_numbers = #tpu.dot_dimension_numbers<[1], [0], [0], [1], [0, 0, 1, 1], [], []>} : vector<2x256xbf16>, vector<256x160xbf16>, vector<2x160xf32> -> vector<2x160xf32>
    %c0_9 = arith.constant 0 : index
    %c0_10 = arith.constant 0 : index
    %11 = vector.load %arg17[%c0_9, %c0_10] : memref<10x160xf32, #tpu.memory_space<vmem>>, vector<2x160xf32>
    tpu.vector_store %arg17[%c0_9, %c0_10], %10 {strides = array<i32>} : memref<10x160xf32, #tpu.memory_space<vmem>>, vector<2x160xf32>,
    %c1 = arith.constant 1 : index
    %c0_11 = arith.constant 0 : index
    %c0_12 = arith.constant 0 : index
    %12 = vector.load %arg4[%c1, %c0_11, %c0_12] : memref<5x256x160xbf16, #tpu.memory_space<vmem>>, vector<1x256x160xbf16>
    %13 = vector.shape_cast %12 : vector<1x256x160xbf16> to vector<256x160xbf16>
    %cst_13 = arith.constant dense<0.000000e+00> : vector<2x160xf32>
    %14 = tpu.matmul %7, %13, %cst_13 {dimension_numbers = #tpu.dot_dimension_numbers<[1], [0], [0], [1], [0, 0, 1, 1], [], []>} : vector<2x256xbf16>, vector<256x160xbf16>, vector<2x160xf32> -> vector<2x160xf32>
    %c2 = arith.constant 2 : index
    %c0_14 = arith.constant 0 : index
    %15 = vector.load %arg17[%c2, %c0_14] : memref<10x160xf32, #tpu.memory_space<vmem>>, vector<2x160xf32>
    tpu.vector_store %arg17[%c2, %c0_14], %14 {strides = array<i32>} : memref<10x160xf32, #tpu.memory_space<vmem>>, vector<2x160xf32>,
    %c2_15 = arith.constant 2 : index
    %c0_16 = arith.constant 0 : index
    %c0_17 = arith.constant 0 : index
    %16 = vector.load %arg4[%c2_15, %c0_16, %c0_17] : memref<5x256x160xbf16, #tpu.memory_space<vmem>>, vector<1x256x160xbf16>
    %17 = vector.shape_cast %16 : vector<1x256x160xbf16> to vector<256x160xbf16>
    %cst_18 = arith.constant dense<0.000000e+00> : vector<2x160xf32>
    %18 = tpu.matmul %7, %17, %cst_18 {dimension_numbers = #tpu.dot_dimension_numbers<[1], [0], [0], [1], [0, 0, 1, 1], [], []>} : vector<2x256xbf16>, vector<256x160xbf16>, vector<2x160xf32> -> vector<2x160xf32>
    %c4 = arith.constant 4 : index
    %c0_19 = arith.constant 0 : index
    %19 = vector.load %arg17[%c4, %c0_19] : memref<10x160xf32, #tpu.memory_space<vmem>>, vector<2x160xf32>
    tpu.vector_store %arg17[%c4, %c0_19], %18 {strides = array<i32>} : memref<10x160xf32, #tpu.memory_space<vmem>>, vector<2x160xf32>,
    %c3 = arith.constant 3 : index
    %c0_20 = arith.constant 0 : index
    %c0_21 = arith.constant 0 : index
    %20 = vector.load %arg4[%c3, %c0_20, %c0_21] : memref<5x256x160xbf16, #tpu.memory_space<vmem>>, vector<1x256x160xbf16>
    %21 = vector.shape_cast %20 : vector<1x256x160xbf16> to vector<256x160xbf16>
    %cst_22 = arith.constant dense<0.000000e+00> : vector<2x160xf32>
    %22 = tpu.matmul %7, %21, %cst_22 {dimension_numbers = #tpu.dot_dimension_numbers<[1], [0], [0], [1], [0, 0, 1, 1], [], []>} : vector<2x256xbf16>, vector<256x160xbf16>, vector<2x160xf32> -> vector<2x160xf32>
    %c6 = arith.constant 6 : index
    %c0_23 = arith.constant 0 : index
    %23 = vector.load %arg17[%c6, %c0_23] : memref<10x160xf32, #tpu.memory_space<vmem>>, vector<2x160xf32>
    tpu.vector_store %arg17[%c6, %c0_23], %22 {strides = array<i32>} : memref<10x160xf32, #tpu.memory_space<vmem>>, vector<2x160xf32>,
    %c4_24 = arith.constant 4 : index
    %c0_25 = arith.constant 0 : index
    %c0_26 = arith.constant 0 : index
    %24 = vector.load %arg4[%c4_24, %c0_25, %c0_26] : memref<5x256x160xbf16, #tpu.memory_space<vmem>>, vector<1x256x160xbf16>
    %25 = vector.shape_cast %24 : vector<1x256x160xbf16> to vector<256x160xbf16>
    %cst_27 = arith.constant dense<0.000000e+00> : vector<2x160xf32>
    %26 = tpu.matmul %7, %25, %cst_27 {dimension_numbers = #tpu.dot_dimension_numbers<[1], [0], [0], [1], [0, 0, 1, 1], [], []>} : vector<2x256xbf16>, vector<256x160xbf16>, vector<2x160xf32> -> vector<2x160xf32>
    %c8 = arith.constant 8 : index
    %c0_28 = arith.constant 0 : index
    %27 = vector.load %arg17[%c8, %c0_28] : memref<10x160xf32, #tpu.memory_space<vmem>>, vector<2x160xf32>
    tpu.vector_store %arg17[%c8, %c0_28], %26 {strides = array<i32>} : memref<10x160xf32, #tpu.memory_space<vmem>>, vector<2x160xf32>,
    %c0_29 = arith.constant 0 : index
    %c0_30 = arith.constant 0 : index
    %28 = vector.load %arg5[%c0_29, %c0_30] : memref<10x10xf32, #tpu.memory_space<vmem>>, vector<10x10xf32>
    %c0_31 = arith.constant 0 : index
    %c0_32 = arith.constant 0 : index
    %29 = vector.load %arg17[%c0_31, %c0_32] : memref<10x160xf32, #tpu.memory_space<vmem>>, vector<10x160xf32>
    %cst_33 = arith.constant dense<0.000000e+00> : vector<10x160xf32>
    %30 = tpu.matmul %28, %29, %cst_33 {dimension_numbers = #tpu.dot_dimension_numbers<[1], [0], [0], [1], [0, 0, 1, 1], [], []>} : vector<10x10xf32>, vector<10x160xf32>, vector<10x160xf32> -> vector<10x160xf32>
    %c0_34 = arith.constant 0 : index
    %c0_35 = arith.constant 0 : index
    %31 = vector.load %arg6[%c0_34, %c0_35] : memref<1x160xf32, #tpu.memory_space<vmem>>, vector<1x160xf32>
    %32 = vector.broadcast %31 : vector<1x160xf32> to vector<10x160xf32>
    %33 = arith.addf %30, %32 : vector<10x160xf32>
    %cst_36 = arith.constant 0.000000e+00 : f32
    %34 = vector.broadcast %cst_36 : f32 to vector<10x160xf32>
    %35 = arith.maximumf %33, %34 : vector<10x160xf32>
    %36 = arith.truncf %35 : vector<10x160xf32> to vector<10x160xbf16>
    %c0_37 = arith.constant 0 : index
    %c0_38 = arith.constant 0 : index
    %c0_39 = arith.constant 0 : index
    %37 = vector.load %arg7[%c0_37, %c0_38, %c0_39] : memref<5x160x208xbf16, #tpu.memory_space<vmem>>, vector<1x160x208xbf16>
    %38 = vector.shape_cast %37 : vector<1x160x208xbf16> to vector<160x208xbf16>
    %cst_40 = arith.constant dense<0.000000e+00> : vector<10x208xf32>
    %39 = tpu.matmul %36, %38, %cst_40 {dimension_numbers = #tpu.dot_dimension_numbers<[1], [0], [0], [1], [0, 0, 1, 1], [], []>} : vector<10x160xbf16>, vector<160x208xbf16>, vector<10x208xf32> -> vector<10x208xf32>
    %c0_41 = arith.constant 0 : index
    %c0_42 = arith.constant 0 : index
    %40 = vector.load %arg18[%c0_41, %c0_42] : memref<50x208xf32, #tpu.memory_space<vmem>>, vector<10x208xf32>
    tpu.vector_store %arg18[%c0_41, %c0_42], %39 {strides = array<i32>} : memref<50x208xf32, #tpu.memory_space<vmem>>, vector<10x208xf32>,
    %c1_43 = arith.constant 1 : index
    %c0_44 = arith.constant 0 : index
    %c0_45 = arith.constant 0 : index
    %41 = vector.load %arg7[%c1_43, %c0_44, %c0_45] : memref<5x160x208xbf16, #tpu.memory_space<vmem>>, vector<1x160x208xbf16>
    %42 = vector.shape_cast %41 : vector<1x160x208xbf16> to vector<160x208xbf16>
    %cst_46 = arith.constant dense<0.000000e+00> : vector<10x208xf32>
    %43 = tpu.matmul %36, %42, %cst_46 {dimension_numbers = #tpu.dot_dimension_numbers<[1], [0], [0], [1], [0, 0, 1, 1], [], []>} : vector<10x160xbf16>, vector<160x208xbf16>, vector<10x208xf32> -> vector<10x208xf32>
    %c10 = arith.constant 10 : index
    %c0_47 = arith.constant 0 : index
    %44 = vector.load %arg18[%c10, %c0_47] : memref<50x208xf32, #tpu.memory_space<vmem>>, vector<10x208xf32>
    tpu.vector_store %arg18[%c10, %c0_47], %43 {strides = array<i32>} : memref<50x208xf32, #tpu.memory_space<vmem>>, vector<10x208xf32>,
    %c2_48 = arith.constant 2 : index
    %c0_49 = arith.constant 0 : index
    %c0_50 = arith.constant 0 : index
    %45 = vector.load %arg7[%c2_48, %c0_49, %c0_50] : memref<5x160x208xbf16, #tpu.memory_space<vmem>>, vector<1x160x208xbf16>
    %46 = vector.shape_cast %45 : vector<1x160x208xbf16> to vector<160x208xbf16>
    %cst_51 = arith.constant dense<0.000000e+00> : vector<10x208xf32>
    %47 = tpu.matmul %36, %46, %cst_51 {dimension_numbers = #tpu.dot_dimension_numbers<[1], [0], [0], [1], [0, 0, 1, 1], [], []>} : vector<10x160xbf16>, vector<160x208xbf16>, vector<10x208xf32> -> vector<10x208xf32>
    %c20 = arith.constant 20 : index
    %c0_52 = arith.constant 0 : index
    %48 = vector.load %arg18[%c20, %c0_52] : memref<50x208xf32, #tpu.memory_space<vmem>>, vector<10x208xf32>
    tpu.vector_store %arg18[%c20, %c0_52], %47 {strides = array<i32>} : memref<50x208xf32, #tpu.memory_space<vmem>>, vector<10x208xf32>,
    %c3_53 = arith.constant 3 : index
    %c0_54 = arith.constant 0 : index
    %c0_55 = arith.constant 0 : index
    %49 = vector.load %arg7[%c3_53, %c0_54, %c0_55] : memref<5x160x208xbf16, #tpu.memory_space<vmem>>, vector<1x160x208xbf16>
    %50 = vector.shape_cast %49 : vector<1x160x208xbf16> to vector<160x208xbf16>
    %cst_56 = arith.constant dense<0.000000e+00> : vector<10x208xf32>
    %51 = tpu.matmul %36, %50, %cst_56 {dimension_numbers = #tpu.dot_dimension_numbers<[1], [0], [0], [1], [0, 0, 1, 1], [], []>} : vector<10x160xbf16>, vector<160x208xbf16>, vector<10x208xf32> -> vector<10x208xf32>
    %c30 = arith.constant 30 : index
    %c0_57 = arith.constant 0 : index
    %52 = vector.load %arg18[%c30, %c0_57] : memref<50x208xf32, #tpu.memory_space<vmem>>, vector<10x208xf32>
    tpu.vector_store %arg18[%c30, %c0_57], %51 {strides = array<i32>} : memref<50x208xf32, #tpu.memory_space<vmem>>, vector<10x208xf32>,
    %c4_58 = arith.constant 4 : index
    %c0_59 = arith.constant 0 : index
    %c0_60 = arith.constant 0 : index
    %53 = vector.load %arg7[%c4_58, %c0_59, %c0_60] : memref<5x160x208xbf16, #tpu.memory_space<vmem>>, vector<1x160x208xbf16>
    %54 = vector.shape_cast %53 : vector<1x160x208xbf16> to vector<160x208xbf16>
    %cst_61 = arith.constant dense<0.000000e+00> : vector<10x208xf32>
    %55 = tpu.matmul %36, %54, %cst_61 {dimension_numbers = #tpu.dot_dimension_numbers<[1], [0], [0], [1], [0, 0, 1, 1], [], []>} : vector<10x160xbf16>, vector<160x208xbf16>, vector<10x208xf32> -> vector<10x208xf32>
    %c40 = arith.constant 40 : index
    %c0_62 = arith.constant 0 : index
    %56 = vector.load %arg18[%c40, %c0_62] : memref<50x208xf32, #tpu.memory_space<vmem>>, vector<10x208xf32>
    tpu.vector_store %arg18[%c40, %c0_62], %55 {strides = array<i32>} : memref<50x208xf32, #tpu.memory_space<vmem>>, vector<10x208xf32>,
    %c0_63 = arith.constant 0 : index
    %c0_64 = arith.constant 0 : index
    %57 = vector.load %arg8[%c0_63, %c0_64] : memref<26x50xf32, #tpu.memory_space<vmem>>, vector<26x50xf32>
    %c0_65 = arith.constant 0 : index
    %c0_66 = arith.constant 0 : index
    %58 = vector.load %arg18[%c0_65, %c0_66] : memref<50x208xf32, #tpu.memory_space<vmem>>, vector<50x208xf32>
    %cst_67 = arith.constant dense<0.000000e+00> : vector<26x208xf32>
    %59 = tpu.matmul %57, %58, %cst_67 {dimension_numbers = #tpu.dot_dimension_numbers<[1], [0], [0], [1], [0, 0, 1, 1], [], []>} : vector<26x50xf32>, vector<50x208xf32>, vector<26x208xf32> -> vector<26x208xf32>
    %c0_68 = arith.constant 0 : index
    %c0_69 = arith.constant 0 : index
    %60 = vector.load %arg9[%c0_68, %c0_69] : memref<1x208xf32, #tpu.memory_space<vmem>>, vector<1x208xf32>
    %61 = vector.broadcast %60 : vector<1x208xf32> to vector<26x208xf32>
    %62 = arith.addf %59, %61 : vector<26x208xf32>
    %cst_70 = arith.constant 0.000000e+00 : f32
    %63 = vector.broadcast %cst_70 : f32 to vector<26x208xf32>
    %64 = arith.maximumf %62, %63 : vector<26x208xf32>
    %65 = arith.truncf %64 : vector<26x208xf32> to vector<26x208xbf16>
    %c0_71 = arith.constant 0 : index
    %c0_72 = arith.constant 0 : index
    %c0_73 = arith.constant 0 : index
    %66 = vector.load %arg10[%c0_71, %c0_72, %c0_73] : memref<6x208x240xbf16, #tpu.memory_space<vmem>>, vector<1x208x240xbf16>
    %67 = vector.shape_cast %66 : vector<1x208x240xbf16> to vector<208x240xbf16>
    %cst_74 = arith.constant dense<0.000000e+00> : vector<26x240xf32>
    %68 = tpu.matmul %65, %67, %cst_74 {dimension_numbers = #tpu.dot_dimension_numbers<[1], [0], [0], [1], [0, 0, 1, 1], [], []>} : vector<26x208xbf16>, vector<208x240xbf16>, vector<26x240xf32> -> vector<26x240xf32>
    %c0_75 = arith.constant 0 : index
    %c0_76 = arith.constant 0 : index
    %69 = vector.load %arg19[%c0_75, %c0_76] : memref<156x240xf32, #tpu.memory_space<vmem>>, vector<26x240xf32>
    tpu.vector_store %arg19[%c0_75, %c0_76], %68 {strides = array<i32>} : memref<156x240xf32, #tpu.memory_space<vmem>>, vector<26x240xf32>,
    %c1_77 = arith.constant 1 : index
    %c0_78 = arith.constant 0 : index
    %c0_79 = arith.constant 0 : index
    %70 = vector.load %arg10[%c1_77, %c0_78, %c0_79] : memref<6x208x240xbf16, #tpu.memory_space<vmem>>, vector<1x208x240xbf16>
    %71 = vector.shape_cast %70 : vector<1x208x240xbf16> to vector<208x240xbf16>
    %cst_80 = arith.constant dense<0.000000e+00> : vector<26x240xf32>
    %72 = tpu.matmul %65, %71, %cst_80 {dimension_numbers = #tpu.dot_dimension_numbers<[1], [0], [0], [1], [0, 0, 1, 1], [], []>} : vector<26x208xbf16>, vector<208x240xbf16>, vector<26x240xf32> -> vector<26x240xf32>
    %c26 = arith.constant 26 : index
    %c0_81 = arith.constant 0 : index
    %73 = vector.load %arg19[%c26, %c0_81] : memref<156x240xf32, #tpu.memory_space<vmem>>, vector<26x240xf32>
    tpu.vector_store %arg19[%c26, %c0_81], %72 {strides = array<i32>} : memref<156x240xf32, #tpu.memory_space<vmem>>, vector<26x240xf32>,
    %c2_82 = arith.constant 2 : index
    %c0_83 = arith.constant 0 : index
    %c0_84 = arith.constant 0 : index
    %74 = vector.load %arg10[%c2_82, %c0_83, %c0_84] : memref<6x208x240xbf16, #tpu.memory_space<vmem>>, vector<1x208x240xbf16>
    %75 = vector.shape_cast %74 : vector<1x208x240xbf16> to vector<208x240xbf16>
    %cst_85 = arith.constant dense<0.000000e+00> : vector<26x240xf32>
    %76 = tpu.matmul %65, %75, %cst_85 {dimension_numbers = #tpu.dot_dimension_numbers<[1], [0], [0], [1], [0, 0, 1, 1], [], []>} : vector<26x208xbf16>, vector<208x240xbf16>, vector<26x240xf32> -> vector<26x240xf32>
    %c52 = arith.constant 52 : index
    %c0_86 = arith.constant 0 : index
    %77 = vector.load %arg19[%c52, %c0_86] : memref<156x240xf32, #tpu.memory_space<vmem>>, vector<26x240xf32>
    tpu.vector_store %arg19[%c52, %c0_86], %76 {strides = array<i32>} : memref<156x240xf32, #tpu.memory_space<vmem>>, vector<26x240xf32>,
    %c3_87 = arith.constant 3 : index
    %c0_88 = arith.constant 0 : index
    %c0_89 = arith.constant 0 : index
    %78 = vector.load %arg10[%c3_87, %c0_88, %c0_89] : memref<6x208x240xbf16, #tpu.memory_space<vmem>>, vector<1x208x240xbf16>
    %79 = vector.shape_cast %78 : vector<1x208x240xbf16> to vector<208x240xbf16>
    %cst_90 = arith.constant dense<0.000000e+00> : vector<26x240xf32>
    %80 = tpu.matmul %65, %79, %cst_90 {dimension_numbers = #tpu.dot_dimension_numbers<[1], [0], [0], [1], [0, 0, 1, 1], [], []>} : vector<26x208xbf16>, vector<208x240xbf16>, vector<26x240xf32> -> vector<26x240xf32>
    %c78 = arith.constant 78 : index
    %c0_91 = arith.constant 0 : index
    %81 = vector.load %arg19[%c78, %c0_91] : memref<156x240xf32, #tpu.memory_space<vmem>>, vector<26x240xf32>
    tpu.vector_store %arg19[%c78, %c0_91], %80 {strides = array<i32>} : memref<156x240xf32, #tpu.memory_space<vmem>>, vector<26x240xf32>,
    %c4_92 = arith.constant 4 : index
    %c0_93 = arith.constant 0 : index
    %c0_94 = arith.constant 0 : index
    %82 = vector.load %arg10[%c4_92, %c0_93, %c0_94] : memref<6x208x240xbf16, #tpu.memory_space<vmem>>, vector<1x208x240xbf16>
    %83 = vector.shape_cast %82 : vector<1x208x240xbf16> to vector<208x240xbf16>
    %cst_95 = arith.constant dense<0.000000e+00> : vector<26x240xf32>
    %84 = tpu.matmul %65, %83, %cst_95 {dimension_numbers = #tpu.dot_dimension_numbers<[1], [0], [0], [1], [0, 0, 1, 1], [], []>} : vector<26x208xbf16>, vector<208x240xbf16>, vector<26x240xf32> -> vector<26x240xf32>
    %c104 = arith.constant 104 : index
    %c0_96 = arith.constant 0 : index
    %85 = vector.load %arg19[%c104, %c0_96] : memref<156x240xf32, #tpu.memory_space<vmem>>, vector<26x240xf32>
    tpu.vector_store %arg19[%c104, %c0_96], %84 {strides = array<i32>} : memref<156x240xf32, #tpu.memory_space<vmem>>, vector<26x240xf32>,
    %c5 = arith.constant 5 : index
    %c0_97 = arith.constant 0 : index
    %c0_98 = arith.constant 0 : index
    %86 = vector.load %arg10[%c5, %c0_97, %c0_98] : memref<6x208x240xbf16, #tpu.memory_space<vmem>>, vector<1x208x240xbf16>
    %87 = vector.shape_cast %86 : vector<1x208x240xbf16> to vector<208x240xbf16>
    %cst_99 = arith.constant dense<0.000000e+00> : vector<26x240xf32>
    %88 = tpu.matmul %65, %87, %cst_99 {dimension_numbers = #tpu.dot_dimension_numbers<[1], [0], [0], [1], [0, 0, 1, 1], [], []>} : vector<26x208xbf16>, vector<208x240xbf16>, vector<26x240xf32> -> vector<26x240xf32>
    %c130 = arith.constant 130 : index
    %c0_100 = arith.constant 0 : index
    %89 = vector.load %arg19[%c130, %c0_100] : memref<156x240xf32, #tpu.memory_space<vmem>>, vector<26x240xf32>
    tpu.vector_store %arg19[%c130, %c0_100], %88 {strides = array<i32>} : memref<156x240xf32, #tpu.memory_space<vmem>>, vector<26x240xf32>,
    %c0_101 = arith.constant 0 : index
    %c0_102 = arith.constant 0 : index
    %90 = vector.load %arg11[%c0_101, %c0_102] : memref<60x156xf32, #tpu.memory_space<vmem>>, vector<60x156xf32>
    %c0_103 = arith.constant 0 : index
    %c0_104 = arith.constant 0 : index
    %91 = vector.load %arg19[%c0_103, %c0_104] : memref<156x240xf32, #tpu.memory_space<vmem>>, vector<156x240xf32>
    %cst_105 = arith.constant dense<0.000000e+00> : vector<60x240xf32>
    %92 = tpu.matmul %90, %91, %cst_105 {dimension_numbers = #tpu.dot_dimension_numbers<[1], [0], [0], [1], [0, 0, 1, 1], [], []>} : vector<60x156xf32>, vector<156x240xf32>, vector<60x240xf32> -> vector<60x240xf32>
    %c0_106 = arith.constant 0 : index
    %c0_107 = arith.constant 0 : index
    %93 = vector.load %arg12[%c0_106, %c0_107] : memref<1x240xf32, #tpu.memory_space<vmem>>, vector<1x240xf32>
    %94 = vector.broadcast %93 : vector<1x240xf32> to vector<60x240xf32>
    %95 = arith.addf %92, %94 : vector<60x240xf32>
    %cst_108 = arith.constant 0.000000e+00 : f32
    %96 = vector.broadcast %cst_108 : f32 to vector<60x240xf32>
    %97 = arith.maximumf %95, %96 : vector<60x240xf32>
    %98 = arith.truncf %97 : vector<60x240xf32> to vector<60x240xbf16>
    %c0_109 = arith.constant 0 : index
    %c0_110 = arith.constant 0 : index
    %c0_111 = arith.constant 0 : index
    %99 = vector.load %arg13[%c0_109, %c0_110, %c0_111] : memref<6x240x192xbf16, #tpu.memory_space<vmem>>, vector<1x240x192xbf16>
    %100 = vector.shape_cast %99 : vector<1x240x192xbf16> to vector<240x192xbf16>
    %cst_112 = arith.constant dense<0.000000e+00> : vector<60x192xf32>
    %101 = tpu.matmul %98, %100, %cst_112 {dimension_numbers = #tpu.dot_dimension_numbers<[1], [0], [0], [1], [0, 0, 1, 1], [], []>} : vector<60x240xbf16>, vector<240x192xbf16>, vector<60x192xf32> -> vector<60x192xf32>
    %c0_113 = arith.constant 0 : index
    %c0_114 = arith.constant 0 : index
    %102 = vector.load %arg20[%c0_113, %c0_114] : memref<360x192xf32, #tpu.memory_space<vmem>>, vector<60x192xf32>
    tpu.vector_store %arg20[%c0_113, %c0_114], %101 {strides = array<i32>} : memref<360x192xf32, #tpu.memory_space<vmem>>, vector<60x192xf32>,
    %c1_115 = arith.constant 1 : index
    %c0_116 = arith.constant 0 : index
    %c0_117 = arith.constant 0 : index
    %103 = vector.load %arg13[%c1_115, %c0_116, %c0_117] : memref<6x240x192xbf16, #tpu.memory_space<vmem>>, vector<1x240x192xbf16>
    %104 = vector.shape_cast %103 : vector<1x240x192xbf16> to vector<240x192xbf16>
    %cst_118 = arith.constant dense<0.000000e+00> : vector<60x192xf32>
    %105 = tpu.matmul %98, %104, %cst_118 {dimension_numbers = #tpu.dot_dimension_numbers<[1], [0], [0], [1], [0, 0, 1, 1], [], []>} : vector<60x240xbf16>, vector<240x192xbf16>, vector<60x192xf32> -> vector<60x192xf32>
    %c60 = arith.constant 60 : index
    %c0_119 = arith.constant 0 : index
    %106 = vector.load %arg20[%c60, %c0_119] : memref<360x192xf32, #tpu.memory_space<vmem>>, vector<60x192xf32>
    tpu.vector_store %arg20[%c60, %c0_119], %105 {strides = array<i32>} : memref<360x192xf32, #tpu.memory_space<vmem>>, vector<60x192xf32>,
    %c2_120 = arith.constant 2 : index
    %c0_121 = arith.constant 0 : index
    %c0_122 = arith.constant 0 : index
    %107 = vector.load %arg13[%c2_120, %c0_121, %c0_122] : memref<6x240x192xbf16, #tpu.memory_space<vmem>>, vector<1x240x192xbf16>
    %108 = vector.shape_cast %107 : vector<1x240x192xbf16> to vector<240x192xbf16>
    %cst_123 = arith.constant dense<0.000000e+00> : vector<60x192xf32>
    %109 = tpu.matmul %98, %108, %cst_123 {dimension_numbers = #tpu.dot_dimension_numbers<[1], [0], [0], [1], [0, 0, 1, 1], [], []>} : vector<60x240xbf16>, vector<240x192xbf16>, vector<60x192xf32> -> vector<60x192xf32>
    %c120 = arith.constant 120 : index
    %c0_124 = arith.constant 0 : index
    %110 = vector.load %arg20[%c120, %c0_124] : memref<360x192xf32, #tpu.memory_space<vmem>>, vector<60x192xf32>
    tpu.vector_store %arg20[%c120, %c0_124], %109 {strides = array<i32>} : memref<360x192xf32, #tpu.memory_space<vmem>>, vector<60x192xf32>,
    %c3_125 = arith.constant 3 : index
    %c0_126 = arith.constant 0 : index
    %c0_127 = arith.constant 0 : index
    %111 = vector.load %arg13[%c3_125, %c0_126, %c0_127] : memref<6x240x192xbf16, #tpu.memory_space<vmem>>, vector<1x240x192xbf16>
    %112 = vector.shape_cast %111 : vector<1x240x192xbf16> to vector<240x192xbf16>
    %cst_128 = arith.constant dense<0.000000e+00> : vector<60x192xf32>
    %113 = tpu.matmul %98, %112, %cst_128 {dimension_numbers = #tpu.dot_dimension_numbers<[1], [0], [0], [1], [0, 0, 1, 1], [], []>} : vector<60x240xbf16>, vector<240x192xbf16>, vector<60x192xf32> -> vector<60x192xf32>
    %c180 = arith.constant 180 : index
    %c0_129 = arith.constant 0 : index
    %114 = vector.load %arg20[%c180, %c0_129] : memref<360x192xf32, #tpu.memory_space<vmem>>, vector<60x192xf32>
    tpu.vector_store %arg20[%c180, %c0_129], %113 {strides = array<i32>} : memref<360x192xf32, #tpu.memory_space<vmem>>, vector<60x192xf32>,
    %c4_130 = arith.constant 4 : index
    %c0_131 = arith.constant 0 : index
    %c0_132 = arith.constant 0 : index
    %115 = vector.load %arg13[%c4_130, %c0_131, %c0_132] : memref<6x240x192xbf16, #tpu.memory_space<vmem>>, vector<1x240x192xbf16>
    %116 = vector.shape_cast %115 : vector<1x240x192xbf16> to vector<240x192xbf16>
    %cst_133 = arith.constant dense<0.000000e+00> : vector<60x192xf32>
    %117 = tpu.matmul %98, %116, %cst_133 {dimension_numbers = #tpu.dot_dimension_numbers<[1], [0], [0], [1], [0, 0, 1, 1], [], []>} : vector<60x240xbf16>, vector<240x192xbf16>, vector<60x192xf32> -> vector<60x192xf32>
    %c240 = arith.constant 240 : index
    %c0_134 = arith.constant 0 : index
    %118 = vector.load %arg20[%c240, %c0_134] : memref<360x192xf32, #tpu.memory_space<vmem>>, vector<60x192xf32>
    tpu.vector_store %arg20[%c240, %c0_134], %117 {strides = array<i32>} : memref<360x192xf32, #tpu.memory_space<vmem>>, vector<60x192xf32>,
    %c5_135 = arith.constant 5 : index
    %c0_136 = arith.constant 0 : index
    %c0_137 = arith.constant 0 : index
    %119 = vector.load %arg13[%c5_135, %c0_136, %c0_137] : memref<6x240x192xbf16, #tpu.memory_space<vmem>>, vector<1x240x192xbf16>
    %120 = vector.shape_cast %119 : vector<1x240x192xbf16> to vector<240x192xbf16>
    %cst_138 = arith.constant dense<0.000000e+00> : vector<60x192xf32>
    %121 = tpu.matmul %98, %120, %cst_138 {dimension_numbers = #tpu.dot_dimension_numbers<[1], [0], [0], [1], [0, 0, 1, 1], [], []>} : vector<60x240xbf16>, vector<240x192xbf16>, vector<60x192xf32> -> vector<60x192xf32>
    %c300 = arith.constant 300 : index
    %c0_139 = arith.constant 0 : index
    %122 = vector.load %arg20[%c300, %c0_139] : memref<360x192xf32, #tpu.memory_space<vmem>>, vector<60x192xf32>
    tpu.vector_store %arg20[%c300, %c0_139], %121 {strides = array<i32>} : memref<360x192xf32, #tpu.memory_space<vmem>>, vector<60x192xf32>,
    %c0_140 = arith.constant 0 : index
    %c0_141 = arith.constant 0 : index
    %123 = vector.load %arg14[%c0_140, %c0_141] : memref<128x360xf32, #tpu.memory_space<vmem>>, vector<128x360xf32>
    %c0_142 = arith.constant 0 : index
    %c0_143 = arith.constant 0 : index
    %124 = vector.load %arg20[%c0_142, %c0_143] : memref<360x192xf32, #tpu.memory_space<vmem>>, vector<360x192xf32>
    %cst_144 = arith.constant dense<0.000000e+00> : vector<128x192xf32>
    %125 = tpu.matmul %123, %124, %cst_144 {dimension_numbers = #tpu.dot_dimension_numbers<[1], [0], [0], [1], [0, 0, 1, 1], [], []>} : vector<128x360xf32>, vector<360x192xf32>, vector<128x192xf32> -> vector<128x192xf32>
    %c0_145 = arith.constant 0 : index
    %c0_146 = arith.constant 0 : index
    %126 = vector.load %arg15[%c0_145, %c0_146] : memref<1x192xf32, #tpu.memory_space<vmem>>, vector<1x192xf32>
    %127 = vector.broadcast %126 : vector<1x192xf32> to vector<128x192xf32>
    %128 = arith.addf %125, %127 : vector<128x192xf32>
    %c0_147 = arith.constant 0 : index
    %c0_148 = arith.constant 0 : index
    %129 = vector.load %arg16[%c0_147, %c0_148] : memref<128x192xf32, #tpu.memory_space<vmem>>, vector<128x192xf32>
    tpu.vector_store %arg16[%c0_147, %c0_148], %128 {strides = array<i32>} : memref<128x192xf32, #tpu.memory_space<vmem>>, vector<128x192xf32>,
    return
  }
  func.func @transform_0(%arg0: i32) -> (i32, i32) {
    %c0_i32 = arith.constant 0 : i32
    %c0_i32_0 = arith.constant 0 : i32
    return %arg0, %c0_i32 : i32, i32
  }
  func.func @transform_1(%arg0: i32) -> (i32, i32) {
    %c0_i32 = arith.constant 0 : i32
    %c0_i32_0 = arith.constant 0 : i32
    %c0_i32_1 = arith.constant 0 : i32
    return %c0_i32, %c0_i32_0 : i32, i32
  }
  func.func @transform_2(%arg0: i32) -> (i32, i32) {
    %c0_i32 = arith.constant 0 : i32
    %c0_i32_0 = arith.constant 0 : i32
    %c0_i32_1 = arith.constant 0 : i32
    return %c0_i32, %c0_i32_0 : i32, i32
  }
  func.func @transform_3(%arg0: i32) -> (i32, i32, i32) {
    %c0_i32 = arith.constant 0 : i32
    %c0_i32_0 = arith.constant 0 : i32
    %c0_i32_1 = arith.constant 0 : i32
    %c0_i32_2 = arith.constant 0 : i32
    return %c0_i32, %c0_i32_0, %c0_i32_1 : i32, i32, i32
  }
  func.func @transform_4(%arg0: i32) -> (i32, i32) {
    %c0_i32 = arith.constant 0 : i32
    %c0_i32_0 = arith.constant 0 : i32
    %c0_i32_1 = arith.constant 0 : i32
    return %c0_i32, %c0_i32_0 : i32, i32
  }
  func.func @transform_5(%arg0: i32) -> (i32, i32) {
    %c0_i32 = arith.constant 0 : i32
    %c0_i32_0 = arith.constant 0 : i32
    %c0_i32_1 = arith.constant 0 : i32
    return %c0_i32, %c0_i32_0 : i32, i32
  }
  func.func @transform_6(%arg0: i32) -> (i32, i32, i32) {
    %c0_i32 = arith.constant 0 : i32
    %c0_i32_0 = arith.constant 0 : i32
    %c0_i32_1 = arith.constant 0 : i32
    %c0_i32_2 = arith.constant 0 : i32
    return %c0_i32, %c0_i32_0, %c0_i32_1 : i32, i32, i32
  }
  func.func @transform_7(%arg0: i32) -> (i32, i32) {
    %c0_i32 = arith.constant 0 : i32
    %c0_i32_0 = arith.constant 0 : i32
    %c0_i32_1 = arith.constant 0 : i32
    return %c0_i32, %c0_i32_0 : i32, i32
  }
  func.func @transform_8(%arg0: i32) -> (i32, i32) {
    %c0_i32 = arith.constant 0 : i32
    %c0_i32_0 = arith.constant 0 : i32
    %c0_i32_1 = arith.constant 0 : i32
    return %c0_i32, %c0_i32_0 : i32, i32
  }
  func.func @transform_9(%arg0: i32) -> (i32, i32, i32) {
    %c0_i32 = arith.constant 0 : i32
    %c0_i32_0 = arith.constant 0 : i32
    %c0_i32_1 = arith.constant 0 : i32
    %c0_i32_2 = arith.constant 0 : i32
    return %c0_i32, %c0_i32_0, %c0_i32_1 : i32, i32, i32
  }
  func.func @transform_10(%arg0: i32) -> (i32, i32) {
    %c0_i32 = arith.constant 0 : i32
    %c0_i32_0 = arith.constant 0 : i32
    %c0_i32_1 = arith.constant 0 : i32
    return %c0_i32, %c0_i32_0 : i32, i32
  }
  func.func @transform_11(%arg0: i32) -> (i32, i32) {
    %c0_i32 = arith.constant 0 : i32
    %c0_i32_0 = arith.constant 0 : i32
    %c0_i32_1 = arith.constant 0 : i32
    return %c0_i32, %c0_i32_0 : i32, i32
  }
  func.func @transform_12(%arg0: i32) -> (i32, i32, i32) {
    %c0_i32 = arith.constant 0 : i32
    %c0_i32_0 = arith.constant 0 : i32
    %c0_i32_1 = arith.constant 0 : i32
    %c0_i32_2 = arith.constant 0 : i32
    return %c0_i32, %c0_i32_0, %c0_i32_1 : i32, i32, i32
  }
  func.func @transform_13(%arg0: i32) -> (i32, i32) {
    %c0_i32 = arith.constant 0 : i32
    %c0_i32_0 = arith.constant 0 : i32
    %c0_i32_1 = arith.constant 0 : i32
    return %c0_i32, %c0_i32_0 : i32, i32
  }
  func.func @transform_14(%arg0: i32) -> (i32, i32) {
    %c0_i32 = arith.constant 0 : i32
    %c0_i32_0 = arith.constant 0 : i32
    %c0_i32_1 = arith.constant 0 : i32
    return %c0_i32, %c0_i32_0 : i32, i32
  }
  func.func @transform_15(%arg0: i32) -> (i32, i32) {
    %c0_i32 = arith.constant 0 : i32
    %c0_i32_0 = arith.constant 0 : i32
    return %arg0, %c0_i32 : i32, i32
  }
}

</mosaic_0001>

<bundles_post_ra>
// kernel: tpu_custom_call.1
= control target key start
LH: loop header
LB: loop body
LE: loop exit
PB: predicated region body
PF: predicated region fallthrough
CT: control target
= control target key end

     0   :  { %vm546_vm0 = vcmask 254976   ;;  %vm789_vm1 = vcmask 257026   ;;  %vm1032_vm2 = vcmask 259076   ;;  %vm1275_vm3 = vcmask 261126   ;;  %s11759_s1 = inlined_call_operand.vmem [shape: bf16[256,256], index: 1, kind: input, shape index: {}]   ;;  %s11760_s0 = inlined_call_operand.vmem [shape: f32[2,256], index: 0, kind: input, shape index: {}]   ;;  %s11761_s3 = inlined_call_operand.vmem [shape: bf16[5,256,160], index: 3, kind: input, shape index: {}]   ;;  %s11762_s2 = inlined_call_operand.vmem [shape: f32[1,256], index: 2, kind: input, shape index: {}]   ;;  %s11763_s6 = inlined_call_operand.vmem [shape: bf16[5,160,208], index: 6, kind: input, shape index: {}]   ;;  %s11764_s4 = inlined_call_operand.vmem [shape: f32[10,10], index: 4, kind: input, shape index: {}]   ;;  %s11765_s5 = inlined_call_operand.vmem [shape: f32[1,160], index: 5, kind: input, shape index: {}]   ;;  %s11766_s9 = inlined_call_operand.vmem [shape: bf16[6,208,240], index: 9, kind: input, shape index: {}]   ;;  %s11767_s7 = inlined_call_operand.vmem [shape: f32[26,50], index: 7, kind: input, shape index: {}]   ;;  %s11768_s8 = inlined_call_operand.vmem [shape: f32[1,208], index: 8, kind: input, shape index: {}]   ;;  %s11769_s10 = inlined_call_operand.vmem [shape: f32[60,156], index: 10, kind: input, shape index: {}]   ;;  %s11770_s12 = inlined_call_operand.vmem [shape: bf16[6,240,192], index: 12, kind: input, shape index: {}]   ;;  %s11771_s11 = inlined_call_operand.vmem [shape: f32[1,240], index: 11, kind: input, shape index: {}]   ;;  %s11772_s13 = inlined_call_operand.vmem [shape: f32[128,360], index: 13, kind: input, shape index: {}]   ;;  %s11773_s14 = inlined_call_operand.vmem [shape: f32[1,192], index: 14, kind: input, shape index: {}]   ;;  %s11774_s15 = inlined_call_operand.vmem [shape: f32[128,192], index: 15, kind: output, shape index: {}]  }
   0x1   :  { %v7920_v0 = vld [vmem:[%s11759_s1 + $0x74] ss:$8 sps:$4 sm:$0xff]   ;;  %v7922_v1 = vld [vmem:[%s11759_s1 + $0x70] ss:$8 sps:$4 sm:$0xff]   ;;  %v7923_v2 = vld [vmem:[%s11759_s1 + $0x64] ss:$8 sps:$4 sm:$0xff]  }
   0x2   :  { %269 = vmatprep.subr.bf16.mxu0 %v7920_v0  ;;  %v7925_v3 = vld [vmem:[%s11759_s1 + $0x60] ss:$8 sps:$4 sm:$0xff]   ;;  %v7926_v4 = vld [vmem:[%s11759_s1 + $0x54] ss:$8 sps:$4 sm:$0xff]   ;;  %v7928_v5 = vld [vmem:[%s11759_s1 + $0x50] ss:$8 sps:$4 sm:$0xff]  }
   0x3   :  { %270 = vmatpush1.bf16.msra.mxu0 %v7922_v1  ;;  %v7929_v6 = vld [vmem:[%s11759_s1 + $0x44] ss:$8 sps:$4 sm:$0xff]   ;;  %v7931_v7 = vld [vmem:[%s11759_s1 + $0x40] ss:$8 sps:$4 sm:$0xff]   ;;  %v7932_v8 = vld [vmem:[%s11759_s1 + $0x34] ss:$8 sps:$4 sm:$0xff]  }
   0x4   :  { %271 = vmatprep.subr.bf16.mxu0 %v7923_v2  ;;  %v7934_v9 = vld [vmem:[%s11759_s1 + $0x30] ss:$8 sps:$4 sm:$0xff]   ;;  %v7935_v10 = vld [vmem:[%s11759_s1 + $0x24] ss:$8 sps:$4 sm:$0xff]   ;;  %v7937_v11 = vld [vmem:[%s11759_s1 + $0x20] ss:$8 sps:$4 sm:$0xff]  }
   0x5   :  { %v7938_v12 = vld [vmem:[%s11759_s1 + $0x14] ss:$8 sps:$4 sm:$0xff]   ;;  %v8985_v13 = vld.sshfl [vmem:[%s11760_s0] sm:$0x33 pattern:$0x76325410] }
   0x6   :  { %v60_v14 = vcombine.high %v8985_v13, %v8985_v13  ;;  %v7968_v15 = vld [vmem:[%s11761_s3 + $0x74] ss:$8 sps:$4 sm:$0xff]   ;;  %v7940_v16 = vld [vmem:[%s11759_s1 + $0x10] ss:$8 sps:$4 sm:$0xff]   ;;  %v7941_v17 = vld [vmem:[%s11759_s1 + $0x4] ss:$8 sps:$4 sm:$0xff]   ;;  %v63_v60 = vpack.c.bf16 %v8985_v13, %v8985_v13 }
   0x7   :  { %272 = vmatpush1.bf16.msra.mxu0 %v7925_v3  ;;  %504 = vmatprep.subr.bf16.mxu1 %v7968_v15  ;;  %v7973_v19 = vld [vmem:[%s11761_s3 + $0x70] ss:$8 sps:$4 sm:$0xff]   ;;  %v7974_v20 = vld [vmem:[%s11761_s3 + $0x64] ss:$8 sps:$4 sm:$0xff]   ;;  %v7943_v21 = vld [vmem:[%s11759_s1] ss:$8 sps:$4 sm:$0xff]  }
   0x8   :  { %273 = vmatprep.subr.bf16.mxu0 %v7926_v4  ;;  %v64_v18 = vpack.c.bf16 %v60_v14, %v60_v14  ;;  %v7944_v22 = vld [vmem:[%s11759_s1 + $0xf4] ss:$8 sps:$4 sm:$0xff]   ;;  %505 = vmatpush1.bf16.msra.mxu1 %v7973_v19  ;;  %v7979_v23 = vld [vmem:[%s11761_s3 + $0x60] ss:$8 sps:$4 sm:$0xff]   ;;  %v7946_v25 = vld [vmem:[%s11759_s1 + $0xf0] ss:$8 sps:$4 sm:$0xff]  }
   0x9   :  { %506 = vmatprep.subr.bf16.mxu1 %v7974_v20  ;;  %v7980_v24 = vld [vmem:[%s11761_s3 + $0x54] ss:$8 sps:$4 sm:$0xff]   ;;  %v7985_v26 = vld [vmem:[%s11761_s3 + $0x50] ss:$8 sps:$4 sm:$0xff]   ;;  %v7986_v27 = vld [vmem:[%s11761_s3 + $0x44] ss:$8 sps:$4 sm:$0xff]  }
   0xa   :  { %301 = vmatprep.mubr.bf16.mxu0 %v64_v18  ;;  %v7947_v28 = vld [vmem:[%s11759_s1 + $0xe4] ss:$8 sps:$4 sm:$0xff]   ;;  %v7949_v29 = vld [vmem:[%s11759_s1 + $0xe0] ss:$8 sps:$4 sm:$0xff]   ;;  %v7992_v31 = vld [vmem:[%s11761_s3 + $0x34] ss:$8 sps:$4 sm:$0xff]  }
   0xb   :  { %274 = vmatpush1.bf16.msra.mxu0 %v7928_v5  ;;  %v7991_v30 = vld [vmem:[%s11761_s3 + $0x40] ss:$8 sps:$4 sm:$0xff]   ;;  %v7950_v32 = vld [vmem:[%s11759_s1 + $0xd4] ss:$8 sps:$4 sm:$0xff]   ;;  %v7952_v33 = vld [vmem:[%s11759_s1 + $0xd0] ss:$8 sps:$4 sm:$0xff]  }
   0xc   :  { %275 = vmatprep.subr.bf16.mxu0 %v7929_v6  ;;  %507 = vmatpush1.bf16.msra.mxu1 %v7979_v23  ;;  %v7997_v34 = vld [vmem:[%s11761_s3 + $0x30] ss:$8 sps:$4 sm:$0xff]   ;;  %v7998_v35 = vld [vmem:[%s11761_s3 + $0x24] ss:$8 sps:$4 sm:$0xff]   ;;  %v7955_v37 = vld [vmem:[%s11759_s1 + $0xc0] ss:$8 sps:$4 sm:$0xff]  }
   0xd   :  { %508 = vmatprep.subr.bf16.mxu1 %v7980_v24  ;;  %v7953_v36 = vld [vmem:[%s11759_s1 + $0xc4] ss:$8 sps:$4 sm:$0xff]   ;;  %v8003_v38 = vld [vmem:[%s11761_s3 + $0x20] ss:$8 sps:$4 sm:$0xff]   ;;  %v8004_v39 = vld [vmem:[%s11761_s3 + $0x14] ss:$8 sps:$4 sm:$0xff]  }
   0xe   :  { %v7956_v40 = vld [vmem:[%s11759_s1 + $0xb4] ss:$8 sps:$4 sm:$0xff]   ;;  %v7958_v41 = vld [vmem:[%s11759_s1 + $0xb0] ss:$8 sps:$4 sm:$0xff]   ;;  %v8010_v43 = vld [vmem:[%s11761_s3 + $0x4] ss:$8 sps:$4 sm:$0xff]  }
   0xf   :  { %276 = vmatpush1.bf16.msra.mxu0 %v7931_v7  ;;  %v8009_v42 = vld [vmem:[%s11761_s3 + $0x10] ss:$8 sps:$4 sm:$0xff]   ;;  %v7959_v44 = vld [vmem:[%s11759_s1 + $0xa4] ss:$8 sps:$4 sm:$0xff]   ;;  %v7961_v45 = vld [vmem:[%s11759_s1 + $0xa0] ss:$8 sps:$4 sm:$0xff]  }
  0x10   :  { %277 = vmatprep.subr.bf16.mxu0 %v7932_v8  ;;  %509 = vmatpush1.bf16.msra.mxu1 %v7985_v26  ;;  %v8015_v46 = vld [vmem:[%s11761_s3] ss:$8 sps:$4 sm:$0xff]   ;;  %v8016_v47 = vld [vmem:[%s11761_s3 + $0xf4] ss:$8 sps:$4 sm:$0xff]   ;;  %v7964_v49 = vld [vmem:[%s11759_s1 + $0x90] ss:$8 sps:$4 sm:$0xff]  }
  0x11   :  { %510 = vmatprep.subr.bf16.mxu1 %v7986_v27  ;;  %v7962_v48 = vld [vmem:[%s11759_s1 + $0x94] ss:$8 sps:$4 sm:$0xff]   ;;  %v8021_v50 = vld [vmem:[%s11761_s3 + $0xf0] ss:$8 sps:$4 sm:$0xff]   ;;  %v8022_v51 = vld [vmem:[%s11761_s3 + $0xe4] ss:$8 sps:$4 sm:$0xff]  }
  0x12   :  { %v7965_v52 = vld [vmem:[%s11759_s1 + $0x84] ss:$8 sps:$4 sm:$0xff]   ;;  %v7967_v53 = vld [vmem:[%s11759_s1 + $0x80] ss:$8 sps:$4 sm:$0xff]   ;;  %v8028_v55 = vld [vmem:[%s11761_s3 + $0xd4] ss:$8 sps:$4 sm:$0xff]  }
  0x13   :  { %278 = vmatpush1.bf16.msra.mxu0 %v7934_v9  ;;  %v8027_v54 = vld [vmem:[%s11761_s3 + $0xe0] ss:$8 sps:$4 sm:$0xff]   ;;  %v7972_v56 = vld [vmem:[%s11761_s3 + $0x174] ss:$8 sps:$4 sm:$0xff]   ;;  %v7970_v57 = vld [vmem:[%s11761_s3 + $0x170] ss:$8 sps:$4 sm:$0xff]  }
  0x14   :  { %279 = vmatprep.subr.bf16.mxu0 %v7935_v10  ;;  %511 = vmatpush1.bf16.msra.mxu1 %v7991_v30  ;;  %v8033_v58 = vld [vmem:[%s11761_s3 + $0xd0] ss:$8 sps:$4 sm:$0xff]   ;;  %v8034_v59 = vld [vmem:[%s11761_s3 + $0xc4] ss:$8 sps:$4 sm:$0xff]   ;;  %v8039_v62 = vld [vmem:[%s11761_s3 + $0xc0] ss:$8 sps:$4 sm:$0xff]  }
  0x15   :  { %512 = vmatprep.subr.bf16.mxu1 %v7992_v31  ;;  %v7978_v61 = vld [vmem:[%s11761_s3 + $0x164] ss:$8 sps:$4 sm:$0xff]   ;;  %v7976_v63 = vld [vmem:[%s11761_s3 + $0x160] ss:$8 sps:$4 sm:$0xff]   ;;  %v8040_v0 = vld [vmem:[%s11761_s3 + $0xb4] ss:$8 sps:$4 sm:$0xff]  }
  0x16   :  { %v7984_v1 = vld [vmem:[%s11761_s3 + $0x154] ss:$8 sps:$4 sm:$0xff]   ;;  %v8045_v2 = vld [vmem:[%s11761_s3 + $0xb0] ss:$8 sps:$4 sm:$0xff]   ;;  %v8046_v4 = vld [vmem:[%s11761_s3 + $0xa4] ss:$8 sps:$4 sm:$0xff]  }
  0x17   :  { %280 = vmatpush1.bf16.msra.mxu0 %v7937_v11  ;;  %v7982_v3 = vld [vmem:[%s11761_s3 + $0x150] ss:$8 sps:$4 sm:$0xff]   ;;  %v7990_v5 = vld [vmem:[%s11761_s3 + $0x144] ss:$8 sps:$4 sm:$0xff]   ;;  %v8051_v6 = vld [vmem:[%s11761_s3 + $0xa0] ss:$8 sps:$4 sm:$0xff]  }
  0x18   :  { %281 = vmatprep.subr.bf16.mxu0 %v7938_v12  ;;  %513 = vmatpush1.bf16.msra.mxu1 %v7997_v34  ;;  %v7988_v7 = vld [vmem:[%s11761_s3 + $0x140] ss:$8 sps:$4 sm:$0xff]   ;;  %v8052_v8 = vld [vmem:[%s11761_s3 + $0x94] ss:$8 sps:$4 sm:$0xff]   ;;  %v7994_v10 = vld [vmem:[%s11761_s3 + $0x130] ss:$8 sps:$4 sm:$0xff]  }
  0x19   :  { %514 = vmatprep.subr.bf16.mxu1 %v7998_v35  ;;  %v7996_v9 = vld [vmem:[%s11761_s3 + $0x134] ss:$8 sps:$4 sm:$0xff]   ;;  %v8002_v11 = vld [vmem:[%s11761_s3 + $0x124] ss:$8 sps:$4 sm:$0xff]   ;;  %v8000_v12 = vld [vmem:[%s11761_s3 + $0x120] ss:$8 sps:$4 sm:$0xff]  }
  0x1a   :  { %v8008_v13 = vld [vmem:[%s11761_s3 + $0x114] ss:$8 sps:$4 sm:$0xff]   ;;  %v8006_v14 = vld [vmem:[%s11761_s3 + $0x110] ss:$8 sps:$4 sm:$0xff]   ;;  %v8014_v15 = vld [vmem:[%s11761_s3 + $0x104] ss:$8 sps:$4 sm:$0xff]  }
  0x1b   :  { %282 = vmatpush1.bf16.msra.mxu0 %v7940_v16  ;;  %v8012_v16 = vld [vmem:[%s11761_s3 + $0x100] ss:$8 sps:$4 sm:$0xff]   ;;  %v8018_v18 = vld [vmem:[%s11761_s3 + $0x1f0] ss:$8 sps:$4 sm:$0xff]   ;;  %v8026_v19 = vld [vmem:[%s11761_s3 + $0x1e4] ss:$8 sps:$4 sm:$0xff]  }
  0x1c   :  { %283 = vmatprep.subr.bf16.mxu0 %v7941_v17  ;;  %515 = vmatpush1.bf16.msra.mxu1 %v8003_v38  ;;  %v8020_v17 = vld [vmem:[%s11761_s3 + $0x1f4] ss:$8 sps:$4 sm:$0xff]   ;;  %v8024_v20 = vld [vmem:[%s11761_s3 + $0x1e0] ss:$8 sps:$4 sm:$0xff]   ;;  %v8038_v23 = vld [vmem:[%s11761_s3 + $0x1c4] ss:$8 sps:$4 sm:$0xff]   ;;  %v99_v38 = vlaneseq }
  0x1d   :  { %516 = vmatprep.subr.bf16.mxu1 %v8004_v39  ;;  %v8036_v24 = vld [vmem:[%s11761_s3 + $0x1c0] ss:$8 sps:$4 sm:$0xff]   ;;  %v8042_v26 = vld [vmem:[%s11761_s3 + $0x1b0] ss:$8 sps:$4 sm:$0xff]   ;;  %v8050_v27 = vld [vmem:[%s11761_s3 + $0x1a4] ss:$8 sps:$4 sm:$0xff]  }
  0x1e   :  { %v8054_v30 = vld [vmem:[%s11761_s3 + $0x190] ss:$8 sps:$4 sm:$0xff]   ;;  %v8060_v34 = vld [vmem:[%s11761_s3 + $0x180] ss:$8 sps:$4 sm:$0xff]   ;;  %v100_v39 = vshrl.u32 %v99_v38, 7  ;;  %vm1538_vm4 = vcmask 1041408  }
  0x1f   :  { %284 = vmatpush1.bf16.msra.mxu0 %v7943_v21  ;;  %v8032_v21 = vld [vmem:[%s11761_s3 + $0x1d4] ss:$8 sps:$4 sm:$0xff]   ;;  %v8057_v31 = vld [vmem:[%s11761_s3 + $0x90] ss:$8 sps:$4 sm:$0xff]   ;;  %v8063_v35 = vld [vmem:[%s11761_s3 + $0x80] ss:$8 sps:$4 sm:$0xff]  }
  0x20   :  { %285 = vmatprep.subr.bf16.mxu0 %v7944_v22  ;;  %517 = vmatpush1.bf16.msra.mxu1 %v8009_v42  ;;  %v8030_v22 = vld [vmem:[%s11761_s3 + $0x1d0] ss:$8 sps:$4 sm:$0xff]   ;;  %v9251_v42 = vsub.s32 1, %v100_v39  ;;  %vm1531_vm5 = vcmask 80896   ;;  %vm1748_vm6 = vcmask 261120   ;;  %vm1796_vm7 = vcmask 654336  }
  0x21   :  { %518 = vmatprep.subr.bf16.mxu1 %v8010_v43  ;;  %v8139_v38 = vld [vmem:[%s11761_s3 + $0x3b0] ss:$8 sps:$4 sm:$0xff]   ;;  %vm1980_vm8 = vcmask 654338   ;;  %vm1799_vm9 = vcmask 648192   ;;  %vm1983_vm10 = vcmask 650240   ;;  %vm2165_vm11 = vcmask 654340  }
  0x22   :  { %vm2350_vm12 = vcmask 654342   ;;  %vm2153_vm13 = vcmask 1043456   ;;  %vm2338_vm14 = vcmask 1045504   ;;  %vm2168_vm15 = vcmask 652288  }
  0x23   :  { %286 = vmatpush2.bf16.msra.mxu0 %v7946_v25  ;;  %v8044_v25 = vld [vmem:[%s11761_s3 + $0x1b4] ss:$8 sps:$4 sm:$0xff]  }
  0x24   :  { %287 = vmatprep.subr.bf16.mxu0 %v7947_v28  ;;  %519 = vmatpush1.bf16.msra.mxu1 %v8015_v46  ;;  %v8048_v28 = vld [vmem:[%s11761_s3 + $0x1a0] ss:$8 sps:$4 sm:$0xff]  }
  0x25   :  { %520 = vmatprep.subr.bf16.mxu1 %v8016_v47 }
  0x27   :  { %288 = vmatpush2.bf16.msra.mxu0 %v7949_v29  ;;  %v8056_v29 = vld [vmem:[%s11761_s3 + $0x194] ss:$8 sps:$4 sm:$0xff]  }
  0x28   :  { %289 = vmatprep.subr.bf16.mxu0 %v7950_v32  ;;  %521 = vmatpush2.bf16.msra.mxu1 %v8021_v50  ;;  %v8058_v32 = vld [vmem:[%s11761_s3 + $0x84] ss:$8 sps:$4 sm:$0xff]  }
  0x29   :  { %522 = vmatprep.subr.bf16.mxu1 %v8022_v51  ;;  %v8064_v51 = vld [vmem:[%s11761_s3 + $0x270] ss:$8 sps:$4 sm:$0xff]  }
  0x2b   :  { %290 = vmatpush2.bf16.msra.mxu0 %v7952_v33  ;;  %v8062_v33 = vld [vmem:[%s11761_s3 + $0x184] ss:$8 sps:$4 sm:$0xff]  }
  0x2c   :  { %291 = vmatprep.subr.bf16.mxu0 %v7953_v36  ;;  %523 = vmatpush2.bf16.msra.mxu1 %v8027_v54  ;;  %v8066_v36 = vld [vmem:[%s11761_s3 + $0x274] ss:$8 sps:$4 sm:$0xff]  }
  0x2d   :  { %524 = vmatprep.subr.bf16.mxu1 %v8028_v55  ;;  %v8072_v55 = vld [vmem:[%s11761_s3 + $0x264] ss:$8 sps:$4 sm:$0xff]  }
  0x2f   :  { %292 = vmatpush2.bf16.msra.mxu0 %v7955_v37  ;;  %v8069_v37 = vld [vmem:[%s11761_s3 + $0x374] ss:$8 sps:$4 sm:$0xff]  }
  0x30   :  { %293 = vmatprep.subr.bf16.mxu0 %v7956_v40  ;;  %525 = vmatpush2.bf16.msra.mxu1 %v8033_v58  ;;  %v9246_v40 = vsub.s32 0, %v100_v39  ;;  %v8073_v58 = vld [vmem:[%s11761_s3 + $0x360] ss:$8 sps:$4 sm:$0xff]   ;;  %v8144_v39 = vld [vmem:[%s11761_s3 + $0x2a4] ss:$8 sps:$4 sm:$0xff]  }
  0x31   :  { %526 = vmatprep.subr.bf16.mxu1 %v8034_v59  ;;  %v8078_v59 = vld [vmem:[%s11761_s3 + $0x254] ss:$8 sps:$4 sm:$0xff]  }
  0x33   :  { %294 = vmatpush2.bf16.msra.mxu0 %v7958_v41  ;;  %v97_v41 = vld [vmem:[%s11762_s2] sm:$0x3] }
  0x34   :  { %295 = vmatprep.subr.bf16.mxu0 %v7959_v44  ;;  %527 = vmatpush2.bf16.msra.mxu1 %v8039_v62  ;;  %v102_v43 = vrot.slane %v97_v41, %v9246_v40  ;;  %v106_v44 = vrot.slane %v97_v41, %v9251_v42  ;;  %v8079_v62 = vld [vmem:[%s11761_s3 + $0x350] ss:$8 sps:$4 sm:$0xff]   ;;  %v8147_v41 = vld [vmem:[%s11761_s3 + $0x3a4] ss:$8 sps:$4 sm:$0xff]  }
  0x35   :  { %528 = vmatprep.subr.bf16.mxu1 %v8040_v0  ;;  %v8087_v0 = vld [vmem:[%s11761_s3 + $0x344] ss:$8 sps:$4 sm:$0xff]  }
  0x37   :  { %296 = vmatpush2.bf16.msra.mxu0 %v7961_v45 }
  0x38   :  { %297 = vmatprep.subr.bf16.mxu0 %v7962_v48  ;;  %529 = vmatpush2.bf16.msra.mxu1 %v8045_v2  ;;  %v8085_v2 = vld [vmem:[%s11761_s3 + $0x340] ss:$8 sps:$4 sm:$0xff]  }
  0x39   :  { %530 = vmatprep.subr.bf16.mxu1 %v8046_v4  ;;  %v8093_v4 = vld [vmem:[%s11761_s3 + $0x334] ss:$8 sps:$4 sm:$0xff]  }
  0x3b   :  { %298 = vmatpush2.bf16.msra.mxu0 %v7964_v49 }
  0x3c   :  { %299 = vmatprep.subr.bf16.mxu0 %v7965_v52  ;;  %531 = vmatpush2.bf16.msra.mxu1 %v8051_v6  ;;  %v8067_v52 = vld [vmem:[%s11761_s3 + $0x370] ss:$8 sps:$4 sm:$0xff]  }
  0x3d   :  { %532 = vmatprep.subr.bf16.mxu1 %v8052_v8  ;;  %v8091_v6 = vld [vmem:[%s11761_s3 + $0x330] ss:$8 sps:$4 sm:$0xff]   ;;  %v8099_v8 = vld [vmem:[%s11761_s3 + $0x324] ss:$8 sps:$4 sm:$0xff]  }
  0x3f   :  { %300 = vmatpush2.bf16.msra.mxu0 %v7967_v53 }
  0x40   :  { %741 = vmatprep.subr.bf16.mxu0 %v7972_v56  ;;  %533 = vmatpush2.bf16.msra.mxu1 %v8057_v31  ;;  %v8075_v56 = vld [vmem:[%s11761_s3 + $0x364] ss:$8 sps:$4 sm:$0xff]  }
  0x41   :  { %534 = vmatprep.subr.bf16.mxu1 %v8058_v32  ;;  %v8132_v31 = vld [vmem:[%s11761_s3 + $0x2c4] ss:$8 sps:$4 sm:$0xff]  }
  0x42   :  { %302 = vmatmul.mubr.bf16.vlgmr.msra.gmra.mxu0 %v63_v60  ;;  %v8081_v60 = vld [vmem:[%s11761_s3 + $0x354] ss:$8 sps:$4 sm:$0xff]   ;;  %v8135_v32 = vld [vmem:[%s11761_s3 + $0x3c4] ss:$8 sps:$4 sm:$0xff]  }
  0x43   :  { %742 = vmatpush1.bf16.msra.mxu0 %v7970_v57  ;;  %v8070_v57 = vld [vmem:[%s11761_s3 + $0x260] ss:$8 sps:$4 sm:$0xff]  }
  0x44   :  { %743 = vmatprep.subr.bf16.mxu0 %v7978_v61  ;;  %535 = vmatpush2.bf16.msra.mxu1 %v8063_v35  ;;  %v8076_v61 = vld [vmem:[%s11761_s3 + $0x250] ss:$8 sps:$4 sm:$0xff]   ;;  %v8138_v35 = vld [vmem:[%s11761_s3 + $0x2b4] ss:$8 sps:$4 sm:$0xff]  }
  0x45   :  { %984 = vmatprep.subr.bf16.mxu1 %v8066_v36  ;;  %v8141_v36 = vld [vmem:[%s11761_s3 + $0x3b4] ss:$8 sps:$4 sm:$0xff]  }
  0x47   :  { %744 = vmatpush1.bf16.msra.mxu0 %v7976_v63  ;;  %v8084_v63 = vld [vmem:[%s11761_s3 + $0x244] ss:$8 sps:$4 sm:$0xff]  }
  0x48   :  { %745 = vmatprep.subr.bf16.mxu0 %v7984_v1  ;;  %v8082_v1 = vld [vmem:[%s11761_s3 + $0x240] ss:$8 sps:$4 sm:$0xff]  }
  0x4b   :  { %746 = vmatpush1.bf16.msra.mxu0 %v7982_v3  ;;  %v8090_v3 = vld [vmem:[%s11761_s3 + $0x234] ss:$8 sps:$4 sm:$0xff]  }
  0x4c   :  { %747 = vmatprep.subr.bf16.mxu0 %v7990_v5  ;;  %v8088_v5 = vld [vmem:[%s11761_s3 + $0x230] ss:$8 sps:$4 sm:$0xff]  }
  0x4f   :  { %748 = vmatpush1.bf16.msra.mxu0 %v7988_v7  ;;  %v8096_v7 = vld [vmem:[%s11761_s3 + $0x224] ss:$8 sps:$4 sm:$0xff]  }
  0x50   :  { %749 = vmatprep.subr.bf16.mxu0 %v7996_v9  ;;  %v8094_v9 = vld [vmem:[%s11761_s3 + $0x220] ss:$8 sps:$4 sm:$0xff]  }
  0x53   :  { %750 = vmatpush1.bf16.msra.mxu0 %v7994_v10  ;;  %v8097_v10 = vld [vmem:[%s11761_s3 + $0x320] ss:$8 sps:$4 sm:$0xff]  }
  0x54   :  { %751 = vmatprep.subr.bf16.mxu0 %v8002_v11  ;;  %v8102_v11 = vld [vmem:[%s11761_s3 + $0x214] ss:$8 sps:$4 sm:$0xff]  }
  0x57   :  { %752 = vmatpush1.bf16.msra.mxu0 %v8000_v12  ;;  %v8105_v12 = vld [vmem:[%s11761_s3 + $0x314] ss:$8 sps:$4 sm:$0xff]  }
  0x58   :  { %753 = vmatprep.subr.bf16.mxu0 %v8008_v13  ;;  %v8100_v13 = vld [vmem:[%s11761_s3 + $0x210] ss:$8 sps:$4 sm:$0xff]  }
  0x5b   :  { %754 = vmatpush1.bf16.msra.mxu0 %v8006_v14  ;;  %v8103_v14 = vld [vmem:[%s11761_s3 + $0x310] ss:$8 sps:$4 sm:$0xff]  }
  0x5c   :  { %755 = vmatprep.subr.bf16.mxu0 %v8014_v15  ;;  %v8108_v15 = vld [vmem:[%s11761_s3 + $0x204] ss:$8 sps:$4 sm:$0xff]  }
  0x5f   :  { %756 = vmatpush1.bf16.msra.mxu0 %v8012_v16  ;;  %v8111_v16 = vld [vmem:[%s11761_s3 + $0x304] ss:$8 sps:$4 sm:$0xff]  }
  0x60   :  { %757 = vmatprep.subr.bf16.mxu0 %v8020_v17  ;;  %v8106_v17 = vld [vmem:[%s11761_s3 + $0x200] ss:$8 sps:$4 sm:$0xff]  }
  0x63   :  { %758 = vmatpush2.bf16.msra.mxu0 %v8018_v18  ;;  %v8109_v18 = vld [vmem:[%s11761_s3 + $0x300] ss:$8 sps:$4 sm:$0xff]  }
  0x64   :  { %759 = vmatprep.subr.bf16.mxu0 %v8026_v19  ;;  %v8114_v19 = vld [vmem:[%s11761_s3 + $0x2f4] ss:$8 sps:$4 sm:$0xff]  }
  0x67   :  { %760 = vmatpush2.bf16.msra.mxu0 %v8024_v20  ;;  %v8117_v20 = vld [vmem:[%s11761_s3 + $0x3f4] ss:$8 sps:$4 sm:$0xff]  }
  0x68   :  { %761 = vmatprep.subr.bf16.mxu0 %v8032_v21  ;;  %v8112_v21 = vld [vmem:[%s11761_s3 + $0x2f0] ss:$8 sps:$4 sm:$0xff]  }
  0x6b   :  { %762 = vmatpush2.bf16.msra.mxu0 %v8030_v22  ;;  %v8115_v22 = vld [vmem:[%s11761_s3 + $0x3f0] ss:$8 sps:$4 sm:$0xff]  }
  0x6c   :  { %763 = vmatprep.subr.bf16.mxu0 %v8038_v23  ;;  %v8120_v23 = vld [vmem:[%s11761_s3 + $0x2e4] ss:$8 sps:$4 sm:$0xff]  }
  0x6f   :  { %764 = vmatpush2.bf16.msra.mxu0 %v8036_v24  ;;  %v8123_v24 = vld [vmem:[%s11761_s3 + $0x3e4] ss:$8 sps:$4 sm:$0xff]  }
  0x70   :  { %765 = vmatprep.subr.bf16.mxu0 %v8044_v25  ;;  %v8118_v25 = vld [vmem:[%s11761_s3 + $0x2e0] ss:$8 sps:$4 sm:$0xff]  }
  0x73   :  { %766 = vmatpush2.bf16.msra.mxu0 %v8042_v26  ;;  %v8121_v26 = vld [vmem:[%s11761_s3 + $0x3e0] ss:$8 sps:$4 sm:$0xff]  }
  0x74   :  { %767 = vmatprep.subr.bf16.mxu0 %v8050_v27  ;;  %v8126_v27 = vld [vmem:[%s11761_s3 + $0x2d4] ss:$8 sps:$4 sm:$0xff]  }
  0x77   :  { %768 = vmatpush2.bf16.msra.mxu0 %v8048_v28  ;;  %v8129_v28 = vld [vmem:[%s11761_s3 + $0x3d4] ss:$8 sps:$4 sm:$0xff]  }
  0x78   :  { %769 = vmatprep.subr.bf16.mxu0 %v8056_v29  ;;  %v8124_v29 = vld [vmem:[%s11761_s3 + $0x2d0] ss:$8 sps:$4 sm:$0xff]  }
  0x7b   :  { %770 = vmatpush2.bf16.msra.mxu0 %v8054_v30  ;;  %v8127_v30 = vld [vmem:[%s11761_s3 + $0x3d0] ss:$8 sps:$4 sm:$0xff]  }
  0x7c   :  { %771 = vmatprep.subr.bf16.mxu0 %v8062_v33  ;;  %v8130_v33 = vld [vmem:[%s11761_s3 + $0x2c0] ss:$8 sps:$4 sm:$0xff]  }
  0x7f   :  { %772 = vmatpush2.bf16.msra.mxu0 %v8060_v34  ;;  %v8133_v34 = vld [vmem:[%s11761_s3 + $0x3c0] ss:$8 sps:$4 sm:$0xff]  }
  0x80   :  { %1227 = vmatprep.subr.bf16.mxu0 %v8069_v37  ;;  %v8136_v37 = vld [vmem:[%s11761_s3 + $0x2b0] ss:$8 sps:$4 sm:$0xff]  }
 0x102   :  { %v303_v45 = vpop.f32.mrf.mxu0 }
 0x103   :  { %v304_v46 = vadd.f32 %v303_v45, %v102_v43  ;;  %v8142_v43 = vld [vmem:[%s11761_s3 + $0x2a0] ss:$8 sps:$4 sm:$0xff]   ;;  %v8150_v45 = vld [vmem:[%s11761_s3 + $0x294] ss:$8 sps:$4 sm:$0xff]  }
 0x104   :  { %v305_v47 = vpop.f32.mrf.mxu0 }
 0x105   :  { %v306_v48 = vadd.f32 %v305_v47, %v106_v44  ;;  %v9263_v53 = vpack.c.bf16 %v304_v46, %v304_v46  ;;  %v8145_v44 = vld [vmem:[%s11761_s3 + $0x3a0] ss:$8 sps:$4 sm:$0xff]   ;;  %v8153_v46 = vld [vmem:[%s11761_s3 + $0x394] ss:$8 sps:$4 sm:$0xff]   ;;  %v8148_v47 = vld [vmem:[%s11761_s3 + $0x290] ss:$8 sps:$4 sm:$0xff]  }
 0x106   :  { %v307_v49 = vpop.f32.mrf.mxu0 }
 0x107   :  { %v9255_v50 = vpack.c.bf16 %v306_v48, %v306_v48  ;;  %v8151_v48 = vld [vmem:[%s11761_s3 + $0x390] ss:$8 sps:$4 sm:$0xff]   ;;  %v8156_v49 = vld [vmem:[%s11761_s3 + $0x284] ss:$8 sps:$4 sm:$0xff]  }
 0x108   :  { %v308_v54 = vpop.f32.mrf.mxu0 }
 0x109   :  { %536 = vmatprep.mubr.bf16.mxu1 %v9255_v50  ;;  %773 = vmatprep.mubr.bf16.mxu0 %v9255_v50  ;;  %v8157_v54 = vld [vmem:[%s11761_s3 + $0x380] ss:$8 sps:$4 sm:$0xff]  }
 0x10a   :  { %537 = vmatmul.mubr.bf16.vlgmr.msra.gmra.mxu1 %v9263_v53  ;;  %774 = vmatmul.mubr.bf16.vlgmr.msra.gmra.mxu0 %v9263_v53 }
 0x10b   :  { %985 = vmatpush1.bf16.msra.mxu1 %v8064_v51  ;;  %1228 = vmatpush1.bf16.msra.mxu0 %v8067_v52  ;;  %v8159_v51 = vld [vmem:[%s11761_s3 + $0x384] ss:$8 sps:$4 sm:$0xff]   ;;  %v8154_v52 = vld [vmem:[%s11761_s3 + $0x280] ss:$8 sps:$4 sm:$0xff]  }
 0x10c   :  { %1016 = vmatprep.mubr.bf16.mxu1 %v9255_v50  ;;  %1259 = vmatprep.mubr.bf16.mxu0 %v9255_v50 }
 0x10d   :  { %986 = vmatprep.subr.bf16.mxu1 %v8072_v55  ;;  %1229 = vmatprep.subr.bf16.mxu0 %v8075_v56  ;;  %v8162_v55 = vld [vmem:[%s11761_s3 + $0x474] ss:$8 sps:$4 sm:$0xff]   ;;  %v8160_v56 = vld [vmem:[%s11761_s3 + $0x470] ss:$8 sps:$4 sm:$0xff]  }
 0x10f   :  { %987 = vmatpush1.bf16.msra.mxu1 %v8070_v57  ;;  %1230 = vmatpush1.bf16.msra.mxu0 %v8073_v58  ;;  %v8165_v57 = vld [vmem:[%s11761_s3 + $0x464] ss:$8 sps:$4 sm:$0xff]   ;;  %v8163_v58 = vld [vmem:[%s11761_s3 + $0x460] ss:$8 sps:$4 sm:$0xff]  }
 0x110   :  { %988 = vmatprep.subr.bf16.mxu1 %v8078_v59  ;;  %1231 = vmatprep.subr.bf16.mxu0 %v8081_v60  ;;  %v8168_v59 = vld [vmem:[%s11761_s3 + $0x454] ss:$8 sps:$4 sm:$0xff]   ;;  %v8166_v60 = vld [vmem:[%s11761_s3 + $0x450] ss:$8 sps:$4 sm:$0xff]  }
 0x113   :  { %989 = vmatpush1.bf16.msra.mxu1 %v8076_v61  ;;  %1232 = vmatpush1.bf16.msra.mxu0 %v8079_v62  ;;  %v8171_v61 = vld [vmem:[%s11761_s3 + $0x444] ss:$8 sps:$4 sm:$0xff]   ;;  %v8174_v62 = vld [vmem:[%s11761_s3 + $0x434] ss:$8 sps:$4 sm:$0xff]  }
 0x114   :  { %990 = vmatprep.subr.bf16.mxu1 %v8084_v63  ;;  %1233 = vmatprep.subr.bf16.mxu0 %v8087_v0  ;;  %v8172_v63 = vld [vmem:[%s11761_s3 + $0x430] ss:$8 sps:$4 sm:$0xff]   ;;  %v8177_v0 = vld [vmem:[%s11761_s3 + $0x424] ss:$8 sps:$4 sm:$0xff]  }
 0x117   :  { %991 = vmatpush1.bf16.msra.mxu1 %v8082_v1  ;;  %1234 = vmatpush1.bf16.msra.mxu0 %v8085_v2  ;;  %v8175_v1 = vld [vmem:[%s11761_s3 + $0x420] ss:$8 sps:$4 sm:$0xff]   ;;  %v8180_v2 = vld [vmem:[%s11761_s3 + $0x414] ss:$8 sps:$4 sm:$0xff]  }
 0x118   :  { %992 = vmatprep.subr.bf16.mxu1 %v8090_v3  ;;  %1235 = vmatprep.subr.bf16.mxu0 %v8093_v4  ;;  %v8178_v3 = vld [vmem:[%s11761_s3 + $0x410] ss:$8 sps:$4 sm:$0xff]   ;;  %v8183_v4 = vld [vmem:[%s11761_s3 + $0x404] ss:$8 sps:$4 sm:$0xff]  }
 0x11b   :  { %993 = vmatpush1.bf16.msra.mxu1 %v8088_v5  ;;  %1236 = vmatpush1.bf16.msra.mxu0 %v8091_v6  ;;  %v8181_v5 = vld [vmem:[%s11761_s3 + $0x400] ss:$8 sps:$4 sm:$0xff]   ;;  %v8186_v6 = vld [vmem:[%s11761_s3 + $0x4f4] ss:$8 sps:$4 sm:$0xff]  }
 0x11c   :  { %994 = vmatprep.subr.bf16.mxu1 %v8096_v7  ;;  %1237 = vmatprep.subr.bf16.mxu0 %v8099_v8  ;;  %v8184_v7 = vld [vmem:[%s11761_s3 + $0x4f0] ss:$8 sps:$4 sm:$0xff]   ;;  %v8189_v8 = vld [vmem:[%s11761_s3 + $0x4e4] ss:$8 sps:$4 sm:$0xff]  }
 0x11f   :  { %995 = vmatpush1.bf16.msra.mxu1 %v8094_v9  ;;  %1238 = vmatpush1.bf16.msra.mxu0 %v8097_v10  ;;  %v8187_v9 = vld [vmem:[%s11761_s3 + $0x4e0] ss:$8 sps:$4 sm:$0xff]   ;;  %v8192_v10 = vld [vmem:[%s11761_s3 + $0x4d4] ss:$8 sps:$4 sm:$0xff]  }
 0x120   :  { %996 = vmatprep.subr.bf16.mxu1 %v8102_v11  ;;  %1239 = vmatprep.subr.bf16.mxu0 %v8105_v12  ;;  %v8190_v11 = vld [vmem:[%s11761_s3 + $0x4d0] ss:$8 sps:$4 sm:$0xff]   ;;  %v8195_v12 = vld [vmem:[%s11761_s3 + $0x4c4] ss:$8 sps:$4 sm:$0xff]  }
 0x123   :  { %997 = vmatpush1.bf16.msra.mxu1 %v8100_v13  ;;  %1240 = vmatpush1.bf16.msra.mxu0 %v8103_v14  ;;  %v8193_v13 = vld [vmem:[%s11761_s3 + $0x4c0] ss:$8 sps:$4 sm:$0xff]   ;;  %v8198_v14 = vld [vmem:[%s11761_s3 + $0x4b4] ss:$8 sps:$4 sm:$0xff]  }
 0x124   :  { %998 = vmatprep.subr.bf16.mxu1 %v8108_v15  ;;  %1241 = vmatprep.subr.bf16.mxu0 %v8111_v16  ;;  %v8196_v15 = vld [vmem:[%s11761_s3 + $0x4b0] ss:$8 sps:$4 sm:$0xff]   ;;  %v8201_v16 = vld [vmem:[%s11761_s3 + $0x4a4] ss:$8 sps:$4 sm:$0xff]  }
 0x127   :  { %999 = vmatpush1.bf16.msra.mxu1 %v8106_v17  ;;  %1242 = vmatpush1.bf16.msra.mxu0 %v8109_v18  ;;  %v8199_v17 = vld [vmem:[%s11761_s3 + $0x4a0] ss:$8 sps:$4 sm:$0xff]   ;;  %v8204_v18 = vld [vmem:[%s11761_s3 + $0x494] ss:$8 sps:$4 sm:$0xff]  }
 0x128   :  { %1000 = vmatprep.subr.bf16.mxu1 %v8114_v19  ;;  %1243 = vmatprep.subr.bf16.mxu0 %v8117_v20  ;;  %v8202_v19 = vld [vmem:[%s11761_s3 + $0x490] ss:$8 sps:$4 sm:$0xff]   ;;  %v8207_v20 = vld [vmem:[%s11761_s3 + $0x484] ss:$8 sps:$4 sm:$0xff]  }
 0x12b   :  { %1001 = vmatpush2.bf16.msra.mxu1 %v8112_v21  ;;  %1244 = vmatpush2.bf16.msra.mxu0 %v8115_v22  ;;  %v8205_v21 = vld [vmem:[%s11761_s3 + $0x480] ss:$8 sps:$4 sm:$0xff]  }
 0x12c   :  { %1002 = vmatprep.subr.bf16.mxu1 %v8120_v23  ;;  %1245 = vmatprep.subr.bf16.mxu0 %v8123_v24 }
 0x12f   :  { %1003 = vmatpush2.bf16.msra.mxu1 %v8118_v25  ;;  %1246 = vmatpush2.bf16.msra.mxu0 %v8121_v26 }
 0x130   :  { %1004 = vmatprep.subr.bf16.mxu1 %v8126_v27  ;;  %1247 = vmatprep.subr.bf16.mxu0 %v8129_v28 }
 0x133   :  { %1005 = vmatpush2.bf16.msra.mxu1 %v8124_v29  ;;  %1248 = vmatpush2.bf16.msra.mxu0 %v8127_v30 }
 0x134   :  { %1006 = vmatprep.subr.bf16.mxu1 %v8132_v31  ;;  %1249 = vmatprep.subr.bf16.mxu0 %v8135_v32  ;;  %v8862_v32 = vmov 0.0  }
 0x137   :  { %1007 = vmatpush2.bf16.msra.mxu1 %v8130_v33  ;;  %1250 = vmatpush2.bf16.msra.mxu0 %v8133_v34  ;;  %v8210_v33 = vld [vmem:[%s11763_s6 + $0x74] ss:$8 sps:$4 sm:$0xff]   ;;  %v8216_v34 = vld [vmem:[%s11763_s6 + $0x64] ss:$8 sps:$4 sm:$0xff]  }
 0x138   :  { %1008 = vmatprep.subr.bf16.mxu1 %v8138_v35  ;;  %1251 = vmatprep.subr.bf16.mxu0 %v8141_v36  ;;  %v8214_v35 = vld [vmem:[%s11763_s6 + $0x60] ss:$8 sps:$4 sm:$0xff]   ;;  %v8222_v36 = vld [vmem:[%s11763_s6 + $0x54] ss:$8 sps:$4 sm:$0xff]  }
 0x13b   :  { %1009 = vmatpush2.bf16.msra.mxu1 %v8136_v37  ;;  %1252 = vmatpush2.bf16.msra.mxu0 %v8139_v38  ;;  %v8220_v37 = vld [vmem:[%s11763_s6 + $0x50] ss:$8 sps:$4 sm:$0xff]   ;;  %v8228_v38 = vld [vmem:[%s11763_s6 + $0x44] ss:$8 sps:$4 sm:$0xff]  }
 0x13c   :  { %1010 = vmatprep.subr.bf16.mxu1 %v8144_v39  ;;  %1253 = vmatprep.subr.bf16.mxu0 %v8147_v41  ;;  %v8226_v39 = vld [vmem:[%s11763_s6 + $0x40] ss:$8 sps:$4 sm:$0xff]   ;;  %v8234_v41 = vld [vmem:[%s11763_s6 + $0x34] ss:$8 sps:$4 sm:$0xff]  }
 0x13f   :  { %1011 = vmatpush2.bf16.msra.mxu1 %v8142_v43  ;;  %1254 = vmatpush2.bf16.msra.mxu0 %v8145_v44  ;;  %v8232_v43 = vld [vmem:[%s11763_s6 + $0x30] ss:$8 sps:$4 sm:$0xff]   ;;  %v8240_v44 = vld [vmem:[%s11763_s6 + $0x24] ss:$8 sps:$4 sm:$0xff]  }
 0x140   :  { %1012 = vmatprep.subr.bf16.mxu1 %v8150_v45  ;;  %1255 = vmatprep.subr.bf16.mxu0 %v8153_v46  ;;  %v8238_v45 = vld [vmem:[%s11763_s6 + $0x20] ss:$8 sps:$4 sm:$0xff]   ;;  %v8246_v46 = vld [vmem:[%s11763_s6 + $0x14] ss:$8 sps:$4 sm:$0xff]  }
 0x143   :  { %1013 = vmatpush2.bf16.msra.mxu1 %v8148_v47  ;;  %1256 = vmatpush2.bf16.msra.mxu0 %v8151_v48  ;;  %v8244_v47 = vld [vmem:[%s11763_s6 + $0x10] ss:$8 sps:$4 sm:$0xff]  }
 0x144   :  { %1014 = vmatprep.subr.bf16.mxu1 %v8156_v49  ;;  %1257 = vmatprep.subr.bf16.mxu0 %v8159_v51 }
 0x147   :  { %1015 = vmatpush2.bf16.msra.mxu1 %v8154_v52  ;;  %1258 = vmatpush2.bf16.msra.mxu0 %v8157_v54 }
 0x148   :  { %1470 = vmatprep.subr.bf16.mxu1 %v8162_v55 }
 0x14a   :  { %1017 = vmatmul.mubr.bf16.vlgmr.msra.gmra.mxu1 %v9263_v53  ;;  %1260 = vmatmul.mubr.bf16.vlgmr.msra.gmra.mxu0 %v9263_v53 }
 0x14b   :  { %1471 = vmatpush1.bf16.msra.mxu1 %v8160_v56  ;;  %1502 = vmatprep.mubr.bf16.mxu1 %v9255_v50  ;;  %v8169_v50 = vld [vmem:[%s11761_s3 + $0x440] ss:$8 sps:$4 sm:$0xff]  }
 0x14c   :  { %1472 = vmatprep.subr.bf16.mxu1 %v8165_v57  ;;  %1609 = vmatprep.mubr.f32.mxu0 %v8862_v32 }
 0x14f   :  { %1473 = vmatpush1.bf16.msra.mxu1 %v8163_v58 }
 0x150   :  { %1474 = vmatprep.subr.bf16.mxu1 %v8168_v59 }
 0x153   :  { %1475 = vmatpush1.bf16.msra.mxu1 %v8166_v60 }
 0x154   :  { %1476 = vmatprep.subr.bf16.mxu1 %v8171_v61 }
 0x157   :  { %1477 = vmatpush1.bf16.msra.mxu1 %v8169_v50 }
 0x158   :  { %1478 = vmatprep.subr.bf16.mxu1 %v8174_v62 }
 0x15b   :  { %1479 = vmatpush1.bf16.msra.mxu1 %v8172_v63 }
 0x15c   :  { %1480 = vmatprep.subr.bf16.mxu1 %v8177_v0 }
 0x15f   :  { %1481 = vmatpush1.bf16.msra.mxu1 %v8175_v1 }
 0x160   :  { %1482 = vmatprep.subr.bf16.mxu1 %v8180_v2 }
 0x163   :  { %1483 = vmatpush1.bf16.msra.mxu1 %v8178_v3  ;;  %v8213_v3 = vld [vmem:[%s11763_s6 + $0x114] ss:$8 sps:$4 sm:$0xff]  }
 0x164   :  { %1484 = vmatprep.subr.bf16.mxu1 %v8183_v4 }
 0x167   :  { %1485 = vmatpush1.bf16.msra.mxu1 %v8181_v5  ;;  %v1513_v5 = vld [vmem:[%s11764_s4] sm:$0xff] }
 0x168   :  { %1486 = vmatprep.subr.bf16.mxu1 %v8186_v6  ;;  %v8211_v6 = vld [vmem:[%s11763_s6 + $0x110] ss:$8 sps:$4 sm:$0xff]  }
 0x16b   :  { %1487 = vmatpush2.bf16.msra.mxu1 %v8184_v7 }
 0x16c   :  { %1488 = vmatprep.subr.bf16.mxu1 %v8189_v8  ;;  %v8219_v8 = vld [vmem:[%s11763_s6 + $0x104] ss:$8 sps:$4 sm:$0xff]  }
 0x16f   :  { %1489 = vmatpush2.bf16.msra.mxu1 %v8187_v9  ;;  %v1514_v9 = vld [vmem:[%s11764_s4 + $0x8] sm:$0x3] }
 0x170   :  { %1490 = vmatprep.subr.bf16.mxu1 %v8192_v10  ;;  %v8217_v10 = vld [vmem:[%s11763_s6 + $0x100] ss:$8 sps:$4 sm:$0xff]  }
 0x173   :  { %1491 = vmatpush2.bf16.msra.mxu1 %v8190_v11  ;;  %v8225_v11 = vld [vmem:[%s11763_s6 + $0xf4] ss:$8 sps:$4 sm:$0xff]  }
 0x174   :  { %1492 = vmatprep.subr.bf16.mxu1 %v8195_v12  ;;  %v8223_v12 = vld [vmem:[%s11763_s6 + $0xf0] ss:$8 sps:$4 sm:$0xff]  }
 0x177   :  { %1493 = vmatpush2.bf16.msra.mxu1 %v8193_v13  ;;  %v8231_v13 = vld [vmem:[%s11763_s6 + $0xe4] ss:$8 sps:$4 sm:$0xff]  }
 0x178   :  { %1494 = vmatprep.subr.bf16.mxu1 %v8198_v14  ;;  %v8229_v14 = vld [vmem:[%s11763_s6 + $0xe0] ss:$8 sps:$4 sm:$0xff]  }
 0x17b   :  { %1495 = vmatpush2.bf16.msra.mxu1 %v8196_v15  ;;  %v8237_v15 = vld [vmem:[%s11763_s6 + $0xd4] ss:$8 sps:$4 sm:$0xff]  }
 0x17c   :  { %1496 = vmatprep.subr.bf16.mxu1 %v8201_v16  ;;  %v8235_v16 = vld [vmem:[%s11763_s6 + $0xd0] ss:$8 sps:$4 sm:$0xff]  }
 0x17f   :  { %1497 = vmatpush2.bf16.msra.mxu1 %v8199_v17  ;;  %v8243_v17 = vld [vmem:[%s11763_s6 + $0xc4] ss:$8 sps:$4 sm:$0xff]  }
 0x180   :  { %1498 = vmatprep.subr.bf16.mxu1 %v8204_v18  ;;  %v8241_v18 = vld [vmem:[%s11763_s6 + $0xc0] ss:$8 sps:$4 sm:$0xff]  }
 0x183   :  { %1499 = vmatpush2.bf16.msra.mxu1 %v8202_v19  ;;  %v8249_v19 = vld [vmem:[%s11763_s6 + $0xb4] ss:$8 sps:$4 sm:$0xff]  }
 0x184   :  { %1500 = vmatprep.subr.bf16.mxu1 %v8207_v20  ;;  %v8247_v20 = vld [vmem:[%s11763_s6 + $0xb0] ss:$8 sps:$4 sm:$0xff]  }
 0x187   :  { %1501 = vmatpush2.bf16.msra.mxu1 %v8205_v21  ;;  %v8252_v21 = vld [vmem:[%s11763_s6 + $0x4] ss:$8 sps:$4 sm:$0xff]  }
 0x188   :  { %1752 = vmatprep.subr.bf16.mxu1 %v8210_v33  ;;  %v8270_v33 = vld [vmem:[%s11763_s6 + $0x1b4] ss:$8 sps:$4 sm:$0xff]  }
 0x18a   :  { %1503 = vmatmul.mubr.bf16.vlgmr.msra.gmra.mxu1 %v9263_v53  ;;  %v8208_v53 = vld [vmem:[%s11763_s6 + $0x70] ss:$8 sps:$4 sm:$0xff]  }
 0x18b   :  { %1753 = vmatpush1.bf16.msra.mxu1 %v8208_v53  ;;  %v8265_v53 = vld [vmem:[%s11763_s6 + $0x120] ss:$8 sps:$4 sm:$0xff]  }
 0x18c   :  { %1754 = vmatprep.subr.bf16.mxu1 %v8216_v34  ;;  %v8273_v34 = vld [vmem:[%s11763_s6 + $0x254] ss:$8 sps:$4 sm:$0xff]  }
 0x18f   :  { %1755 = vmatpush1.bf16.msra.mxu1 %v8214_v35  ;;  %v1519_v35 = vld [vmem:[%s11765_s5] sm:$0x3] }
 0x190   :  { %1756 = vmatprep.subr.bf16.mxu1 %v8222_v36 }
 0x193   :  { %1757 = vmatpush1.bf16.msra.mxu1 %v8220_v37  ;;  %v1528_v37 = vrot.slane %v1519_v35, %v9251_v42 }
 0x194   :  { %1758 = vmatprep.subr.bf16.mxu1 %v8228_v38  ;;  %v1524_v38 = vrot.slane %v1519_v35, %v9246_v40  ;;  %v8339_v35 = vld [vmem:[%s11763_s6 + $0x2c4] ss:$8 sps:$4 sm:$0xff]  }
 0x197   :  { %1759 = vmatpush1.bf16.msra.mxu1 %v8226_v39 }
 0x198   :  { %1760 = vmatprep.subr.bf16.mxu1 %v8234_v41 }
 0x19b   :  { %1761 = vmatpush1.bf16.msra.mxu1 %v8232_v43 }
 0x19c   :  { %1762 = vmatprep.subr.bf16.mxu1 %v8240_v44 }
 0x19f   :  { %1763 = vmatpush1.bf16.msra.mxu1 %v8238_v45 }
 0x1a0   :  { %1764 = vmatprep.subr.bf16.mxu1 %v8246_v46 }
 0x1a3   :  { %1765 = vmatpush1.bf16.msra.mxu1 %v8244_v47 }
 0x1a4   :  { %1766 = vmatprep.subr.bf16.mxu1 %v8252_v21  ;;  %v8318_v21 = vld [vmem:[%s11763_s6 + $0x1d4] ss:$8 sps:$4 sm:$0xff]  }
 0x1ca   :  { %v538_v22 = vpop.f32.mrf.mxu1  ;;  %v775_v23 = vpop.f32.mrf.mxu0 }
 0x1cb   :  { %545 = vst [vmem:[#allocation2] sm:$0x3] %v538_v22  ;;  %v784_v24 = vrot.slane %v775_v23, 6  ;;  %v8255_v22 = vld [vmem:[%s11763_s6 + $0xa4] ss:$8 sps:$4 sm:$0xff]  }
 0x1cc   :  { %v540_v25 = vpop.f32.mrf.mxu1  ;;  %v777_v26 = vpop.f32.mrf.mxu0  ;;  %v8250_v23 = vld [vmem:[%s11763_s6] ss:$8 sps:$4 sm:$0xff]  }
 0x1cd   :  { %788 = vst [vmem:[#allocation2] sm:$0xc] %v784_v24  ;;  %547 = vst.msk [vmem:[#allocation2 + $0x8] sm:$0x3] %vm546_vm0, %v540_v25  ;;  %v785_v27 = vrot.slane %v777_v26, 6  ;;  %1767 = vmatpush1.bf16.msra.mxu1 %v8250_v23 }
 0x1ce   :  { %v542_v28 = vpop.f32.mrf.mxu1  ;;  %v779_v29 = vpop.f32.mrf.mxu0  ;;  %v8253_v24 = vld [vmem:[%s11763_s6 + $0xa0] ss:$8 sps:$4 sm:$0xff]   ;;  %v8258_v25 = vld [vmem:[%s11763_s6 + $0x94] ss:$8 sps:$4 sm:$0xff]   ;;  %v8316_v23 = vld [vmem:[%s11763_s6 + $0x1d0] ss:$8 sps:$4 sm:$0xff]  }
 0x1cf   :  { %790 = vst.msk [vmem:[#allocation2 + $0x8] sm:$0xc] %vm789_vm1, %v785_v27  ;;  %v8261_v26 = vld [vmem:[%s11763_s6 + $0x134] ss:$8 sps:$4 sm:$0xff]   ;;  %v8256_v27 = vld [vmem:[%s11763_s6 + $0x90] ss:$8 sps:$4 sm:$0xff]   ;;  %1780 = vmatprep.subr.bf16.mxu1 %v8258_v25 }
 0x1d0   :  { %v543_v30 = vpop.f32.mrf.mxu1  ;;  %v780_v31 = vpop.f32.mrf.mxu0  ;;  %v8259_v28 = vld [vmem:[%s11763_s6 + $0x130] ss:$8 sps:$4 sm:$0xff]   ;;  %v8264_v29 = vld [vmem:[%s11763_s6 + $0x84] ss:$8 sps:$4 sm:$0xff]   ;;  %vm2888_vm1 = vcmask 916480  }
 0x1d1   :  { %1781 = vmatpush2.bf16.msra.mxu1 %v8256_v27  ;;  %v8267_v30 = vld [vmem:[%s11763_s6 + $0x124] ss:$8 sps:$4 sm:$0xff]   ;;  %v8262_v31 = vld [vmem:[%s11763_s6 + $0x80] ss:$8 sps:$4 sm:$0xff]  }
 0x1d2   :  { %1782 = vmatprep.subr.bf16.mxu1 %v8264_v29  ;;  %v8324_v25 = vld [vmem:[%s11763_s6 + $0x1c4] ss:$8 sps:$4 sm:$0xff]   ;;  %v8322_v27 = vld [vmem:[%s11763_s6 + $0x1c0] ss:$8 sps:$4 sm:$0xff]   ;;  %v8330_v29 = vld [vmem:[%s11763_s6 + $0x2f4] ss:$8 sps:$4 sm:$0xff]  }
 0x1d5   :  { %1783 = vmatpush2.bf16.msra.mxu1 %v8262_v31  ;;  %v8333_v31 = vld [vmem:[%s11763_s6 + $0x2e4] ss:$8 sps:$4 sm:$0xff]  }
 0x1d6   :  { %2106 = vmatprep.subr.bf16.mxu1 %v8270_v33  ;;  %v8336_v33 = vld [vmem:[%s11763_s6 + $0x2d4] ss:$8 sps:$4 sm:$0xff]  }
 0x20a   :  { %v1018_v48 = vpop.f32.mrf.mxu1  ;;  %v1261_v49 = vpop.f32.mrf.mxu0 }
 0x20b   :  { %v1027_v51 = vrot.slane %v1018_v48, 4  ;;  %v1270_v52 = vrot.slane %v1261_v49, 2 }
 0x20c   :  { %v1020_v54 = vpop.f32.mrf.mxu1  ;;  %v1263_v55 = vpop.f32.mrf.mxu0 }
 0x20d   :  { %1031 = vst [vmem:[#allocation2] sm:$0x30] %v1027_v51  ;;  %1274 = vst [vmem:[#allocation2] sm:$0xc0] %v1270_v52  ;;  %v1028_v56 = vrot.slane %v1020_v54, 4  ;;  %v1271_v57 = vrot.slane %v1263_v55, 2 }
 0x20e   :  { %v1022_v58 = vpop.f32.mrf.mxu1  ;;  %v1265_v59 = vpop.f32.mrf.mxu0  ;;  %v8268_v55 = vld [vmem:[%s11763_s6 + $0x1b0] ss:$8 sps:$4 sm:$0xff]  }
 0x20f   :  { %1033 = vst.msk [vmem:[#allocation2 + $0x8] sm:$0x30] %vm1032_vm2, %v1028_v56  ;;  %v8271_v56 = vld [vmem:[%s11763_s6 + $0x250] ss:$8 sps:$4 sm:$0xff]   ;;  %v8276_v58 = vld [vmem:[%s11763_s6 + $0x1a4] ss:$8 sps:$4 sm:$0xff]  }
 0x210   :  { %1276 = vst.msk [vmem:[#allocation2 + $0x8] sm:$0xc0] %vm1275_vm3, %v1271_v57  ;;  %v1023_v60 = vpop.f32.mrf.mxu1  ;;  %v1266_v61 = vpop.f32.mrf.mxu0  ;;  %v8279_v59 = vld [vmem:[%s11763_s6 + $0x244] ss:$8 sps:$4 sm:$0xff]   ;;  %vm3138_vm2 = vcmask 916482   ;;  %vm2895_vm3 = vcmask 910336  }
 0x211   :  { %v8274_v60 = vld [vmem:[%s11763_s6 + $0x1a0] ss:$8 sps:$4 sm:$0xff]  }
 0x212   :  { %v8277_v61 = vld [vmem:[%s11763_s6 + $0x240] ss:$8 sps:$4 sm:$0xff]  }
 0x214   :  { %v1515_v7 = vld [vmem:[#allocation2] sm:$0xff] }
 0x217   :  { %v1516_v4 = vld [vmem:[#allocation2 + $0x8] sm:$0xff] }
 0x24a   :  { %v1504_v50 = vpop.f32.mrf.mxu1 }
 0x24b   :  { %1511 = vst [vmem:[#allocation2 + $0x10] sm:$0x3] %v1504_v50  ;;  %v8282_v50 = vld [vmem:[%s11763_s6 + $0x194] ss:$8 sps:$4 sm:$0xff]  }
 0x24c   :  { %v1506_v62 = vpop.f32.mrf.mxu1 }
 0x24d   :  { %1512 = vst.msk [vmem:[#allocation2 + $0x18] sm:$0x3] %vm546_vm0, %v1506_v62  ;;  %v8285_v62 = vld [vmem:[%s11763_s6 + $0x234] ss:$8 sps:$4 sm:$0xff]   ;;  %vm2552_vm0 = vcmask 408576  }
 0x24e   :  { %v1508_v63 = vpop.f32.mrf.mxu1 }
 0x24f   :  { %v8280_v63 = vld [vmem:[%s11763_s6 + $0x190] ss:$8 sps:$4 sm:$0xff]  }
 0x250   :  { %v1509_v0 = vpop.f32.mrf.mxu1 }
 0x251   :  { %v8283_v0 = vld [vmem:[%s11763_s6 + $0x230] ss:$8 sps:$4 sm:$0xff]  }
 0x252   :  { %v1517_v2 = vld [vmem:[#allocation2 + $0x10] sm:$0x3] }
 0x254   :  { %v1518_v1 = vld [vmem:[#allocation2 + $0x18] sm:$0x3] }
 0x255   :  { %7046 = vmatprep.subr.msk.mxu0 %vm1538_vm4, %v1518_v1  ;;  %v8288_v1 = vld [vmem:[%s11763_s6 + $0x184] ss:$8 sps:$4 sm:$0xff]  }
 0x256   :  { %7047 = vmatpush1.msk.msra.mxu0 %vm1538_vm4, %v1517_v2  ;;  %v8291_v2 = vld [vmem:[%s11763_s6 + $0x224] ss:$8 sps:$4 sm:$0xff]  }
 0x257   :  { %1575 = vmatprep.subr.mxu0 %v1516_v4  ;;  %v8289_v4 = vld [vmem:[%s11763_s6 + $0x220] ss:$8 sps:$4 sm:$0xff]  }
 0x258   :  { %1576 = vmatpush1.msra.mxu0 %v1515_v7  ;;  %v8292_v7 = vld [vmem:[%s11763_s6 + $0x170] ss:$8 sps:$4 sm:$0xff]  }
 0x259   :  { %7048 = vmatmul.mubr.msk.f32.vlgmr.msra.gmra.mxu0 %vm1531_vm5, %v1513_v5  ;;  %1922 = vmatprep.subr.bf16.mxu0 %v8213_v3  ;;  %v8286_v3 = vld [vmem:[%s11763_s6 + $0x180] ss:$8 sps:$4 sm:$0xff]   ;;  %v8294_v5 = vld [vmem:[%s11763_s6 + $0x174] ss:$8 sps:$4 sm:$0xff]  }
 0x25a   :  { %1615 = vmatprep.mubr.f32.mxu0 %v8862_v32  ;;  %1923 = vmatpush1.bf16.msra.mxu0 %v8211_v6  ;;  %v8297_v6 = vld [vmem:[%s11763_s6 + $0x214] ss:$8 sps:$4 sm:$0xff]  }
 0x25b   :  { %1924 = vmatprep.subr.bf16.mxu0 %v8219_v8  ;;  %v8295_v8 = vld [vmem:[%s11763_s6 + $0x210] ss:$8 sps:$4 sm:$0xff]  }
 0x25d   :  { %7049 = vmatmul.mubr.msk.f32.gmra.mxu0 %vm1531_vm5, %v1514_v9  ;;  %v8300_v9 = vld [vmem:[%s11763_s6 + $0x164] ss:$8 sps:$4 sm:$0xff]   ;;  %vm3145_vm5 = vcmask 912384  }
 0x25e   :  { %1925 = vmatpush1.bf16.msra.mxu0 %v8217_v10  ;;  %v8303_v10 = vld [vmem:[%s11763_s6 + $0x204] ss:$8 sps:$4 sm:$0xff]  }
 0x25f   :  { %1926 = vmatprep.subr.bf16.mxu0 %v8225_v11  ;;  %v8298_v11 = vld [vmem:[%s11763_s6 + $0x160] ss:$8 sps:$4 sm:$0xff]  }
 0x262   :  { %1927 = vmatpush1.bf16.msra.mxu0 %v8223_v12  ;;  %v8301_v12 = vld [vmem:[%s11763_s6 + $0x200] ss:$8 sps:$4 sm:$0xff]  }
 0x263   :  { %1928 = vmatprep.subr.bf16.mxu0 %v8231_v13  ;;  %v8306_v13 = vld [vmem:[%s11763_s6 + $0x154] ss:$8 sps:$4 sm:$0xff]  }
 0x266   :  { %1929 = vmatpush1.bf16.msra.mxu0 %v8229_v14  ;;  %v8309_v14 = vld [vmem:[%s11763_s6 + $0x1f4] ss:$8 sps:$4 sm:$0xff]  }
 0x267   :  { %1930 = vmatprep.subr.bf16.mxu0 %v8237_v15  ;;  %v8304_v15 = vld [vmem:[%s11763_s6 + $0x150] ss:$8 sps:$4 sm:$0xff]  }
 0x26a   :  { %1931 = vmatpush1.bf16.msra.mxu0 %v8235_v16  ;;  %v8307_v16 = vld [vmem:[%s11763_s6 + $0x1f0] ss:$8 sps:$4 sm:$0xff]  }
 0x26b   :  { %1932 = vmatprep.subr.bf16.mxu0 %v8243_v17  ;;  %v8312_v17 = vld [vmem:[%s11763_s6 + $0x144] ss:$8 sps:$4 sm:$0xff]  }
 0x26e   :  { %1933 = vmatpush1.bf16.msra.mxu0 %v8241_v18  ;;  %v8315_v18 = vld [vmem:[%s11763_s6 + $0x1e4] ss:$8 sps:$4 sm:$0xff]  }
 0x26f   :  { %1934 = vmatprep.subr.bf16.mxu0 %v8249_v19  ;;  %v8310_v19 = vld [vmem:[%s11763_s6 + $0x140] ss:$8 sps:$4 sm:$0xff]  }
 0x272   :  { %1935 = vmatpush1.bf16.msra.mxu0 %v8247_v20  ;;  %v8313_v20 = vld [vmem:[%s11763_s6 + $0x1e0] ss:$8 sps:$4 sm:$0xff]  }
 0x273   :  { %1936 = vmatprep.subr.bf16.mxu0 %v8255_v22  ;;  %v8321_v22 = vld [vmem:[%s11763_s6 + $0x274] ss:$8 sps:$4 sm:$0xff]  }
 0x276   :  { %1937 = vmatpush1.bf16.msra.mxu0 %v8253_v24  ;;  %v8319_v24 = vld [vmem:[%s11763_s6 + $0x270] ss:$8 sps:$4 sm:$0xff]  }
 0x277   :  { %1950 = vmatprep.subr.bf16.mxu0 %v8261_v26  ;;  %v8327_v26 = vld [vmem:[%s11763_s6 + $0x264] ss:$8 sps:$4 sm:$0xff]  }
 0x27a   :  { %1951 = vmatpush2.bf16.msra.mxu0 %v8259_v28  ;;  %v8325_v28 = vld [vmem:[%s11763_s6 + $0x260] ss:$8 sps:$4 sm:$0xff]  }
 0x27b   :  { %1952 = vmatprep.subr.bf16.mxu0 %v8267_v30  ;;  %v8328_v30 = vld [vmem:[%s11763_s6 + $0x2f0] ss:$8 sps:$4 sm:$0xff]  }
 0x27e   :  { %1953 = vmatpush2.bf16.msra.mxu0 %v8265_v53  ;;  %v8331_v53 = vld [vmem:[%s11763_s6 + $0x2e0] ss:$8 sps:$4 sm:$0xff]  }
 0x27f   :  { %2291 = vmatprep.subr.bf16.mxu0 %v8273_v34  ;;  %v8334_v34 = vld [vmem:[%s11763_s6 + $0x2d0] ss:$8 sps:$4 sm:$0xff]  }
 0x319   :  { %v1611_v36 = vpop.f32.mrf.mxu0 }
 0x31a   :  { %v1612_v45 = vadd.f32 %v1611_v36, %v1524_v38  ;;  %v8337_v36 = vld [vmem:[%s11763_s6 + $0x2c0] ss:$8 sps:$4 sm:$0xff]  }
 0x31b   :  { %v1613_v39 = vpop.f32.mrf.mxu0 }
 0x31c   :  { %v1614_v43 = vadd.f32 %v1613_v39, %v1528_v37  ;;  %v1622_v52 = vmax.f32 %v1612_v45, 0.0  ;;  %v8345_v39 = vld [vmem:[%s11763_s6 + $0x2a4] ss:$8 sps:$4 sm:$0xff]  }
 0x31d   :  { %v1617_v41 = vpop.f32.mrf.mxu0  ;;  %v8351_v45 = vld [vmem:[%s11763_s6 + $0x284] ss:$8 sps:$4 sm:$0xff]  }
 0x31e   :  { %v1618_v44 = vadd.f32 %v1617_v41, %v1524_v38  ;;  %v1623_v49 = vmax.f32 %v1614_v43, 0.0  ;;  %v8340_v38 = vld [vmem:[%s11763_s6 + $0x2b0] ss:$8 sps:$4 sm:$0xff]   ;;  %v8343_v41 = vld [vmem:[%s11763_s6 + $0x2a0] ss:$8 sps:$4 sm:$0xff]  }
 0x31f   :  { %v1619_v46 = vpop.f32.mrf.mxu0  ;;  %v8348_v43 = vld [vmem:[%s11763_s6 + $0x294] ss:$8 sps:$4 sm:$0xff]  }
 0x320   :  { %v1620_v47 = vadd.f32 %v1619_v46, %v1528_v37  ;;  %v1624_v48 = vmax.f32 %v1618_v44, 0.0  ;;  %v8342_v37 = vld [vmem:[%s11763_s6 + $0x2b4] ss:$8 sps:$4 sm:$0xff]   ;;  %v8346_v44 = vld [vmem:[%s11763_s6 + $0x290] ss:$8 sps:$4 sm:$0xff]  }
 0x321   :  { %v8349_v46 = vld [vmem:[%s11763_s6 + $0x280] ss:$8 sps:$4 sm:$0xff]  }
 0x322   :  { %v1625_v51 = vmax.f32 %v1620_v47, 0.0  ;;  %v9702_v57 = vpack.c.bf16 %v1624_v48, %v1622_v52  ;;  %v8354_v47 = vld [vmem:[%s11763_s6 + $0x314] ss:$8 sps:$4 sm:$0xff]   ;;  %v8352_v48 = vld [vmem:[%s11763_s6 + $0x310] ss:$8 sps:$4 sm:$0xff]  }
 0x323   :  { %v8361_v52 = vld [vmem:[%s11766_s9 + $0x140] ss:$8 sps:$4 sm:$0xff]  }
 0x324   :  { %v9694_v54 = vpack.c.bf16 %v1625_v51, %v1623_v49  ;;  %v8357_v49 = vld [vmem:[%s11763_s6 + $0x304] ss:$8 sps:$4 sm:$0xff]   ;;  %v8355_v51 = vld [vmem:[%s11763_s6 + $0x300] ss:$8 sps:$4 sm:$0xff]  }
 0x326   :  { %7070 = vmatprep.mubr.msk.bf16.mxu1 %vm1748_vm6, %v9694_v54  ;;  %7111 = vmatprep.mubr.msk.bf16.mxu0 %vm1748_vm6, %v9694_v54 }
 0x327   :  { %1785 = vmatmul.mubr.bf16.vlgmr.msra.gmra.mxu1 %v9702_v57  ;;  %1955 = vmatmul.mubr.bf16.vlgmr.msra.gmra.mxu0 %v9702_v57 }
 0x328   :  { %2107 = vmatpush1.bf16.msra.mxu1 %v8268_v55  ;;  %2292 = vmatpush1.bf16.msra.mxu0 %v8271_v56  ;;  %v8367_v55 = vld [vmem:[%s11766_s9 + $0x130] ss:$8 sps:$4 sm:$0xff]   ;;  %v8369_v56 = vld [vmem:[%s11766_s9 + $0x134] ss:$8 sps:$4 sm:$0xff]  }
 0x329   :  { %7152 = vmatprep.mubr.msk.bf16.mxu1 %vm1748_vm6, %v9694_v54  ;;  %7193 = vmatprep.mubr.msk.bf16.mxu0 %vm1748_vm6, %v9694_v54 }
 0x32a   :  { %2108 = vmatprep.subr.bf16.mxu1 %v8276_v58  ;;  %2293 = vmatprep.subr.bf16.mxu0 %v8279_v59 }
 0x32c   :  { %2109 = vmatpush1.bf16.msra.mxu1 %v8274_v60  ;;  %2294 = vmatpush1.bf16.msra.mxu0 %v8277_v61  ;;  %v8375_v60 = vld [vmem:[%s11766_s9 + $0x124] ss:$8 sps:$4 sm:$0xff]  }
 0x32d   :  { %2110 = vmatprep.subr.bf16.mxu1 %v8282_v50  ;;  %2295 = vmatprep.subr.bf16.mxu0 %v8285_v62 }
 0x330   :  { %2111 = vmatpush1.bf16.msra.mxu1 %v8280_v63  ;;  %2296 = vmatpush1.bf16.msra.mxu0 %v8283_v0  ;;  %v8373_v63 = vld [vmem:[%s11766_s9 + $0x120] ss:$8 sps:$4 sm:$0xff]  }
 0x331   :  { %2112 = vmatprep.subr.bf16.mxu1 %v8288_v1  ;;  %2297 = vmatprep.subr.bf16.mxu0 %v8291_v2  ;;  %v8381_v2 = vld [vmem:[%s11766_s9 + $0x114] ss:$8 sps:$4 sm:$0xff]  }
 0x334   :  { %2113 = vmatpush1.bf16.msra.mxu1 %v8286_v3  ;;  %2298 = vmatpush1.bf16.msra.mxu0 %v8289_v4 }
 0x335   :  { %2114 = vmatprep.subr.bf16.mxu1 %v8294_v5  ;;  %2299 = vmatprep.subr.bf16.mxu0 %v8297_v6 }
 0x338   :  { %2115 = vmatpush1.bf16.msra.mxu1 %v8292_v7  ;;  %2300 = vmatpush1.bf16.msra.mxu0 %v8295_v8  ;;  %v8379_v8 = vld [vmem:[%s11766_s9 + $0x110] ss:$8 sps:$4 sm:$0xff]  }
 0x339   :  { %2116 = vmatprep.subr.bf16.mxu1 %v8300_v9  ;;  %2301 = vmatprep.subr.bf16.mxu0 %v8303_v10  ;;  %v8387_v9 = vld [vmem:[%s11766_s9 + $0x104] ss:$8 sps:$4 sm:$0xff]  }
 0x33c   :  { %2117 = vmatpush1.bf16.msra.mxu1 %v8298_v11  ;;  %2302 = vmatpush1.bf16.msra.mxu0 %v8301_v12  ;;  %v8385_v11 = vld [vmem:[%s11766_s9 + $0x100] ss:$8 sps:$4 sm:$0xff]   ;;  %v8393_v12 = vld [vmem:[%s11766_s9 + $0xf4] ss:$8 sps:$4 sm:$0xff]  }
 0x33d   :  { %2118 = vmatprep.subr.bf16.mxu1 %v8306_v13  ;;  %2303 = vmatprep.subr.bf16.mxu0 %v8309_v14  ;;  %v8391_v13 = vld [vmem:[%s11766_s9 + $0xf0] ss:$8 sps:$4 sm:$0xff]   ;;  %v8399_v14 = vld [vmem:[%s11766_s9 + $0xe4] ss:$8 sps:$4 sm:$0xff]  }
 0x340   :  { %2119 = vmatpush1.bf16.msra.mxu1 %v8304_v15  ;;  %2304 = vmatpush1.bf16.msra.mxu0 %v8307_v16  ;;  %v8397_v15 = vld [vmem:[%s11766_s9 + $0xe0] ss:$8 sps:$4 sm:$0xff]   ;;  %v8405_v16 = vld [vmem:[%s11766_s9 + $0xd4] ss:$8 sps:$4 sm:$0xff]  }
 0x341   :  { %2120 = vmatprep.subr.bf16.mxu1 %v8312_v17  ;;  %2305 = vmatprep.subr.bf16.mxu0 %v8315_v18  ;;  %v8403_v17 = vld [vmem:[%s11766_s9 + $0xd0] ss:$8 sps:$4 sm:$0xff]   ;;  %v8411_v18 = vld [vmem:[%s11766_s9 + $0x194] ss:$8 sps:$4 sm:$0xff]  }
 0x344   :  { %2121 = vmatpush1.bf16.msra.mxu1 %v8310_v19  ;;  %2306 = vmatpush1.bf16.msra.mxu0 %v8313_v20  ;;  %v8409_v19 = vld [vmem:[%s11766_s9 + $0x190] ss:$8 sps:$4 sm:$0xff]   ;;  %v8417_v20 = vld [vmem:[%s11766_s9 + $0x184] ss:$8 sps:$4 sm:$0xff]  }
 0x345   :  { %2134 = vmatprep.subr.bf16.mxu1 %v8318_v21  ;;  %2319 = vmatprep.subr.bf16.mxu0 %v8321_v22  ;;  %v8415_v21 = vld [vmem:[%s11766_s9 + $0x180] ss:$8 sps:$4 sm:$0xff]  }
 0x348   :  { %2135 = vmatpush2.bf16.msra.mxu1 %v8316_v23  ;;  %2320 = vmatpush2.bf16.msra.mxu0 %v8319_v24 }
 0x349   :  { %2136 = vmatprep.subr.bf16.mxu1 %v8324_v25  ;;  %2321 = vmatprep.subr.bf16.mxu0 %v8327_v26 }
 0x34c   :  { %2137 = vmatpush2.bf16.msra.mxu1 %v8322_v27  ;;  %2322 = vmatpush2.bf16.msra.mxu0 %v8325_v28 }
 0x34d   :  { %2475 = vmatprep.subr.bf16.mxu1 %v8330_v29 }
 0x34f   :  { %2139 = vmatmul.mubr.bf16.vlgmr.msra.gmra.mxu1 %v9702_v57  ;;  %2324 = vmatmul.mubr.bf16.vlgmr.msra.gmra.mxu0 %v9702_v57 }
 0x350   :  { %2476 = vmatpush1.bf16.msra.mxu1 %v8328_v30  ;;  %7234 = vmatprep.mubr.msk.bf16.mxu1 %vm1748_vm6, %v9694_v54  ;;  %v8363_v54 = vld [vmem:[%s11766_s9 + $0x144] ss:$8 sps:$4 sm:$0xff]   ;;  %vm4180_vm6 = vcmask 228352  }
 0x351   :  { %2477 = vmatprep.subr.bf16.mxu1 %v8333_v31  ;;  %2635 = vmatprep.mubr.f32.mxu0 %v8862_v32 }
 0x354   :  { %2478 = vmatpush1.bf16.msra.mxu1 %v8331_v53 }
 0x355   :  { %2479 = vmatprep.subr.bf16.mxu1 %v8336_v33 }
 0x358   :  { %2480 = vmatpush1.bf16.msra.mxu1 %v8334_v34 }
 0x359   :  { %2481 = vmatprep.subr.bf16.mxu1 %v8339_v35 }
 0x35c   :  { %2482 = vmatpush1.bf16.msra.mxu1 %v8337_v36 }
 0x35d   :  { %2483 = vmatprep.subr.bf16.mxu1 %v8342_v37 }
 0x360   :  { %2484 = vmatpush1.bf16.msra.mxu1 %v8340_v38 }
 0x361   :  { %2485 = vmatprep.subr.bf16.mxu1 %v8345_v39 }
 0x364   :  { %2486 = vmatpush1.bf16.msra.mxu1 %v8343_v41 }
 0x365   :  { %2487 = vmatprep.subr.bf16.mxu1 %v8348_v43 }
 0x368   :  { %2488 = vmatpush1.bf16.msra.mxu1 %v8346_v44 }
 0x369   :  { %2489 = vmatprep.subr.bf16.mxu1 %v8351_v45 }
 0x36c   :  { %2490 = vmatpush1.bf16.msra.mxu1 %v8349_v46 }
 0x36d   :  { %2503 = vmatprep.subr.bf16.mxu1 %v8354_v47 }
 0x370   :  { %2504 = vmatpush2.bf16.msra.mxu1 %v8352_v48 }
 0x371   :  { %2505 = vmatprep.subr.bf16.mxu1 %v8357_v49 }
 0x374   :  { %2506 = vmatpush2.bf16.msra.mxu1 %v8355_v51 }
 0x375   :  { %3054 = vmatprep.subr.bf16.mxu1 %v8363_v54 }
 0x377   :  { %2508 = vmatmul.mubr.bf16.vlgmr.msra.gmra.mxu1 %v9702_v57 }
 0x378   :  { %3055 = vmatpush1.bf16.msra.mxu1 %v8361_v52 }
 0x379   :  { %3056 = vmatprep.subr.bf16.mxu1 %v8369_v56 }
 0x37c   :  { %3057 = vmatpush1.bf16.msra.mxu1 %v8367_v55 }
 0x37d   :  { %3058 = vmatprep.subr.bf16.mxu1 %v8375_v60 }
 0x380   :  { %3059 = vmatpush1.bf16.msra.mxu1 %v8373_v63  ;;  %v8358_v63 = vld [vmem:[%s11766_s9 + $0x70] ss:$8 sps:$4 sm:$0xff]  }
 0x381   :  { %3060 = vmatprep.subr.bf16.mxu1 %v8381_v2  ;;  %v8364_v2 = vld [vmem:[%s11766_s9 + $0x60] ss:$8 sps:$4 sm:$0xff]  }
 0x384   :  { %3061 = vmatpush1.bf16.msra.mxu1 %v8379_v8  ;;  %v8384_v8 = vld [vmem:[%s11766_s9 + $0x34] ss:$8 sps:$4 sm:$0xff]  }
 0x385   :  { %3062 = vmatprep.subr.bf16.mxu1 %v8387_v9  ;;  %v8382_v9 = vld [vmem:[%s11766_s9 + $0x30] ss:$8 sps:$4 sm:$0xff]  }
 0x388   :  { %3063 = vmatpush1.bf16.msra.mxu1 %v8385_v11  ;;  %v8388_v11 = vld [vmem:[%s11766_s9 + $0x20] ss:$8 sps:$4 sm:$0xff]  }
 0x389   :  { %3064 = vmatprep.subr.bf16.mxu1 %v8393_v12  ;;  %v8396_v12 = vld [vmem:[%s11766_s9 + $0x14] ss:$8 sps:$4 sm:$0xff]  }
 0x38c   :  { %3065 = vmatpush1.bf16.msra.mxu1 %v8391_v13  ;;  %v8394_v13 = vld [vmem:[%s11766_s9 + $0x10] ss:$8 sps:$4 sm:$0xff]  }
 0x38d   :  { %3066 = vmatprep.subr.bf16.mxu1 %v8399_v14  ;;  %v8402_v14 = vld [vmem:[%s11766_s9 + $0x4] ss:$8 sps:$4 sm:$0xff]  }
 0x390   :  { %3067 = vmatpush1.bf16.msra.mxu1 %v8397_v15  ;;  %v8400_v15 = vld [vmem:[%s11766_s9] ss:$8 sps:$4 sm:$0xff]  }
 0x391   :  { %3068 = vmatprep.subr.bf16.mxu1 %v8405_v16  ;;  %v8408_v16 = vld [vmem:[%s11766_s9 + $0xc4] ss:$8 sps:$4 sm:$0xff]  }
 0x394   :  { %3069 = vmatpush1.bf16.msra.mxu1 %v8403_v17  ;;  %v8406_v17 = vld [vmem:[%s11766_s9 + $0xc0] ss:$8 sps:$4 sm:$0xff]  }
 0x395   :  { %3076 = vmatprep.subr.bf16.mxu1 %v8411_v18  ;;  %v8414_v18 = vld [vmem:[%s11766_s9 + $0xb4] ss:$8 sps:$4 sm:$0xff]  }
 0x398   :  { %3077 = vmatpush2.bf16.msra.mxu1 %v8409_v19  ;;  %v8412_v19 = vld [vmem:[%s11766_s9 + $0xb0] ss:$8 sps:$4 sm:$0xff]  }
 0x399   :  { %3078 = vmatprep.subr.bf16.mxu1 %v8417_v20  ;;  %v8420_v20 = vld [vmem:[%s11766_s9 + $0xa4] ss:$8 sps:$4 sm:$0xff]  }
 0x39c   :  { %3079 = vmatpush2.bf16.msra.mxu1 %v8415_v21  ;;  %v8423_v21 = vld [vmem:[%s11766_s9 + $0x174] ss:$8 sps:$4 sm:$0xff]  }
 0x39d   :  { %3080 = vmatprep.subr.bf16.mxu1 %v8423_v21  ;;  %v8463_v21 = vld [vmem:[%s11766_s9 + $0x2a0] ss:$8 sps:$4 sm:$0xff]  }
 0x3e7   :  { %v9900_v58 = vpop.f32.mrf.mxu1  ;;  %v1956_v57 = vpop.f32.mrf.mxu0 }
 0x3e8   :  { %v1969_v59 = vrot.slane %v1956_v57, 6 }
 0x3e9   :  { %v1788_v61 = vpop.f32.mrf.mxu1  ;;  %v1958_v50 = vpop.f32.mrf.mxu0 }
 0x3ea   :  { %1979 = vst [vmem:[#allocation3 + $0x10] sm:$0xfc] %v1969_v59  ;;  %1797 = vst.msk [vmem:[#allocation3 + $0x8] sm:$0xff] %vm1796_vm7, %v1788_v61  ;;  %v1970_v62 = vrot.slane %v1958_v50, 6  ;;  %v8360_v61 = vld [vmem:[%s11766_s9 + $0x74] ss:$8 sps:$4 sm:$0xff]  }
 0x3eb   :  { %v1790_v0 = vpop.f32.mrf.mxu1  ;;  %v1960_v1 = vpop.f32.mrf.mxu0 }
 0x3ec   :  { %1981 = vst.msk [vmem:[#allocation3 + $0x18] sm:$0xfc] %vm1980_vm8, %v1970_v62  ;;  %1798 = vst [vmem:[#allocation3 + $0x10] sm:$0x3] %v1790_v0  ;;  %v1971_v3 = vrot.slane %v1960_v1, 6  ;;  %v2523_v1 = vld [vmem:[%s11767_s7 + $0x8] sm:$0xff] }
 0x3ed   :  { %v1792_v4 = vpop.f32.mrf.mxu1  ;;  %v1962_v5 = vpop.f32.mrf.mxu0  ;;  %v8366_v0 = vld [vmem:[%s11766_s9 + $0x64] ss:$8 sps:$4 sm:$0xff]   ;;  %vm3638_vm8 = vcmask 916486  }
 0x3ee   :  { %v1972_v6 = vsel %vm1538_vm4, %v1969_v59, %v1971_v3  ;;  %v1973_v7 = vrot.slane %v1962_v5, 6  ;;  %1800 = vst.msk [vmem:[#allocation3 + $0x18] sm:$0x3] %vm1799_vm9, %v1792_v4  ;;  %v8372_v3 = vld [vmem:[%s11766_s9 + $0x54] ss:$8 sps:$4 sm:$0xff]  }
 0x3ef   :  { %1982 = vst [vmem:[#allocation3 + $0x20] sm:$0xf] %v1972_v6  ;;  %v8370_v4 = vld [vmem:[%s11766_s9 + $0x50] ss:$8 sps:$4 sm:$0xff]   ;;  %v8378_v5 = vld [vmem:[%s11766_s9 + $0x44] ss:$8 sps:$4 sm:$0xff]  }
 0x3f0   :  { %v1974_v10 = vsel %vm1538_vm4, %v1970_v62, %v1973_v7  ;;  %v2522_v62 = vld [vmem:[%s11767_s7] sm:$0xff]  ;;  %v2525_v6 = vld [vmem:[%s11767_s7 + $0x18] sm:$0x3] }
 0x3f1   :  { %1984 = vst.msk [vmem:[#allocation3 + $0x28] sm:$0xf] %vm1983_vm10, %v1974_v10  ;;  %v2527_v50 = vld [vmem:[#allocation3 + $0x8] sm:$0xff]  ;;  %vm4948_vm10 = vcmask 523268  }
 0x3f2   :  { %v8376_v7 = vld [vmem:[%s11766_s9 + $0x40] ss:$8 sps:$4 sm:$0xff]   ;;  %v8390_v10 = vld [vmem:[%s11766_s9 + $0x24] ss:$8 sps:$4 sm:$0xff]  }
 0x3f3   :  { %v2528_v60 = vld [vmem:[#allocation3 + $0x10] sm:$0xff] }
 0x3f5   :  { %v2529_v59 = vld [vmem:[#allocation3 + $0x18] sm:$0xff] }
 0x40f   :  { %v2140_v22 = vpop.f32.mrf.mxu1  ;;  %v2325_v23 = vpop.f32.mrf.mxu0 }
 0x410   :  { %v2154_v24 = vrot.slane %v2140_v22, 4  ;;  %v2339_v25 = vrot.slane %v2325_v23, 2  ;;  %v8418_v22 = vld [vmem:[%s11766_s9 + $0xa0] ss:$8 sps:$4 sm:$0xff]   ;;  %v8421_v23 = vld [vmem:[%s11766_s9 + $0x170] ss:$8 sps:$4 sm:$0xff]  }
 0x411   :  { %v2142_v26 = vpop.f32.mrf.mxu1  ;;  %v2327_v27 = vpop.f32.mrf.mxu0  ;;  %3081 = vmatpush2.bf16.msra.mxu1 %v8421_v23  ;;  %v8471_v23 = vld [vmem:[%s11766_s9 + $0x294] ss:$8 sps:$4 sm:$0xff]  }
 0x412   :  { %2164 = vst [vmem:[#allocation3 + $0x20] sm:$0xf0] %v2154_v24  ;;  %2349 = vst [vmem:[#allocation3 + $0x30] sm:$0xc0] %v2339_v25  ;;  %v2155_v28 = vrot.slane %v2142_v26, 4  ;;  %v2340_v29 = vrot.slane %v2327_v27, 2 }
 0x413   :  { %v2144_v30 = vpop.f32.mrf.mxu1  ;;  %v2329_v31 = vpop.f32.mrf.mxu0  ;;  %v8424_v26 = vld [vmem:[%s11766_s9 + $0x90] ss:$8 sps:$4 sm:$0xff]   ;;  %v8427_v27 = vld [vmem:[%s11766_s9 + $0x160] ss:$8 sps:$4 sm:$0xff]  }
 0x414   :  { %2166 = vst.msk [vmem:[#allocation3 + $0x28] sm:$0xf0] %vm2165_vm11, %v2155_v28  ;;  %v2156_v53 = vrot.slane %v2144_v30, 4  ;;  %v2341_v33 = vrot.slane %v2329_v31, 2  ;;  %v8430_v30 = vld [vmem:[%s11766_s9 + $0x80] ss:$8 sps:$4 sm:$0xff]  }
 0x415   :  { %2351 = vst.msk [vmem:[#allocation3 + $0x38] sm:$0xc0] %vm2350_vm12, %v2340_v29  ;;  %v2146_v34 = vpop.f32.mrf.mxu1  ;;  %v2331_v35 = vpop.f32.mrf.mxu0  ;;  %v8433_v31 = vld [vmem:[%s11766_s9 + $0x150] ss:$8 sps:$4 sm:$0xff]   ;;  %vm4629_vm11 = vcmask 519168   ;;  %vm6318_vm12 = vcmask 850944  }
 0x416   :  { %v2157_v36 = vsel %vm2153_vm13, %v2154_v24, %v2156_v53  ;;  %v2342_v37 = vsel %vm2338_vm14, %v2339_v25, %v2341_v33  ;;  %v2158_v38 = vrot.slane %v2146_v34, 4  ;;  %v2343_v39 = vrot.slane %v2331_v35, 2  ;;  %v8426_v24 = vld [vmem:[%s11766_s9 + $0x94] ss:$8 sps:$4 sm:$0xff]   ;;  %v8429_v25 = vld [vmem:[%s11766_s9 + $0x164] ss:$8 sps:$4 sm:$0xff]  }
 0x417   :  { %2167 = vst [vmem:[#allocation3 + $0x30] sm:$0x3f] %v2157_v36  ;;  %3082 = vmatprep.subr.bf16.mxu1 %v8429_v25  ;;  %v8438_v53 = vld [vmem:[%s11766_s9 + $0x214] ss:$8 sps:$4 sm:$0xff]   ;;  %v8441_v33 = vld [vmem:[%s11766_s9 + $0x2e4] ss:$8 sps:$4 sm:$0xff]  }
 0x418   :  { %v2159_v41 = vsel %vm2153_vm13, %v2155_v28, %v2158_v38  ;;  %v2344_v43 = vsel %vm2338_vm14, %v2340_v29, %v2343_v39  ;;  %3083 = vmatpush2.bf16.msra.mxu1 %v8427_v27  ;;  %v8432_v28 = vld [vmem:[%s11766_s9 + $0x84] ss:$8 sps:$4 sm:$0xff]   ;;  %v8435_v29 = vld [vmem:[%s11766_s9 + $0x154] ss:$8 sps:$4 sm:$0xff]   ;;  %v2540_v34 = vld [vmem:[%s11768_s8] sm:$0x3] }
 0x419   :  { %2169 = vst.msk [vmem:[#allocation3 + $0x38] sm:$0x3f] %vm2168_vm15, %v2159_v41  ;;  %v2530_v57 = vld [vmem:[#allocation3 + $0x20] sm:$0xff]  ;;  %3084 = vmatprep.subr.bf16.mxu1 %v8435_v29  ;;  %v2549_v36 = vrot.slane %v2540_v34, %v9251_v42  ;;  %v8469_v25 = vld [vmem:[%s11766_s9 + $0x290] ss:$8 sps:$4 sm:$0xff]  }
 0x41a   :  { %2353 = vst.msk [vmem:[#allocation3 + $0x48] sm:$0xff] %vm1796_vm7, %v2344_v43  ;;  %v8477_v27 = vld [vmem:[%s11766_s9 + $0x284] ss:$8 sps:$4 sm:$0xff]   ;;  %v8475_v29 = vld [vmem:[%s11766_s9 + $0x280] ss:$8 sps:$4 sm:$0xff]  }
 0x41b   :  { %v2531_v56 = vld [vmem:[#allocation3 + $0x28] sm:$0xff] }
 0x41c   :  { %3085 = vmatpush2.bf16.msra.mxu1 %v8433_v31  ;;  %v8483_v31 = vld [vmem:[%s11766_s9 + $0x274] ss:$8 sps:$4 sm:$0xff]  }
 0x41d   :  { %3554 = vmatprep.subr.bf16.mxu1 %v8441_v33  ;;  %v8481_v33 = vld [vmem:[%s11766_s9 + $0x270] ss:$8 sps:$4 sm:$0xff]  }
 0x41e   :  { %v2532_v55 = vld [vmem:[#allocation3 + $0x30] sm:$0xff] }
 0x420   :  { %v2533_v54 = vld [vmem:[#allocation3 + $0x38] sm:$0xff] }
 0x421   :  { %v2535_v52 = vld [vmem:[#allocation3 + $0x48] sm:$0xff] }
 0x437   :  { %v2509_v44 = vpop.f32.mrf.mxu1 }
 0x439   :  { %v2511_v45 = vpop.f32.mrf.mxu1 }
 0x43a   :  { %2519 = vst.msk [vmem:[#allocation3 + $0x58] sm:$0xff] %vm1796_vm7, %v2511_v45 }
 0x43b   :  { %v2513_v46 = vpop.f32.mrf.mxu1 }
 0x43c   :  { %2520 = vst [vmem:[#allocation3 + $0x60] sm:$0x3] %v2513_v46 }
 0x43d   :  { %v2515_v47 = vpop.f32.mrf.mxu1 }
 0x43e   :  { %2521 = vst.msk [vmem:[#allocation3 + $0x68] sm:$0x3] %vm1799_vm9, %v2515_v47  ;;  %vm3395_vm9 = vcmask 914432  }
 0x441   :  { %v2537_v51 = vld [vmem:[#allocation3 + $0x58] sm:$0xff] }
 0x443   :  { %v2538_v49 = vld [vmem:[#allocation3 + $0x60] sm:$0x3] }
 0x445   :  { %v2539_v48 = vld [vmem:[#allocation3 + $0x68] sm:$0x3] }
 0x446   :  { %7235 = vmatprep.subr.msk.mxu0 %vm1538_vm4, %v2539_v48 }
 0x447   :  { %7236 = vmatpush1.msk.msra.mxu0 %vm1538_vm4, %v2538_v49 }
 0x448   :  { %2591 = vmatprep.subr.mxu0 %v2537_v51 }
 0x449   :  { %2592 = vmatpush1.msra.mxu0 %v2509_v44 }
 0x44a   :  { %2593 = vmatprep.subr.mxu0 %v2535_v52 }
 0x44b   :  { %2594 = vmatpush1.msra.mxu0 %v2342_v37  ;;  %v2545_v37 = vrot.slane %v2540_v34, %v9246_v40  ;;  %v8486_v34 = vld [vmem:[%s11766_s9 + $0x264] ss:$8 sps:$4 sm:$0xff]  }
 0x44c   :  { %2595 = vmatprep.subr.mxu0 %v2533_v54 }
 0x44d   :  { %2596 = vmatpush1.msra.mxu0 %v2532_v55 }
 0x44e   :  { %2597 = vmatprep.subr.mxu0 %v2531_v56 }
 0x44f   :  { %2598 = vmatpush1.msra.mxu0 %v2530_v57 }
 0x450   :  { %2599 = vmatprep.subr.mxu0 %v2529_v59  ;;  %v8436_v59 = vld [vmem:[%s11766_s9 + $0x210] ss:$8 sps:$4 sm:$0xff]  }
 0x451   :  { %2600 = vmatpush1.msra.mxu0 %v2528_v60  ;;  %v8439_v60 = vld [vmem:[%s11766_s9 + $0x2e0] ss:$8 sps:$4 sm:$0xff]  }
 0x452   :  { %2601 = vmatprep.subr.mxu0 %v2527_v50 }
 0x453   :  { %2602 = vmatpush1.msra.mxu0 %v9900_v58  ;;  %v2524_v58 = vld [vmem:[%s11767_s7 + $0x10] sm:$0xff] }
 0x454   :  { %7237 = vmatmul.mubr.msk.f32.vlgmr.msra.gmra.mxu0 %vm2552_vm0, %v2522_v62  ;;  %2834 = vmatprep.subr.bf16.mxu0 %v8360_v61  ;;  %v8444_v62 = vld [vmem:[%s11766_s9 + $0x204] ss:$8 sps:$4 sm:$0xff]  }
 0x455   :  { %2641 = vmatprep.mubr.f32.mxu0 %v8862_v32  ;;  %2835 = vmatpush1.bf16.msra.mxu0 %v8358_v63  ;;  %v8447_v63 = vld [vmem:[%s11766_s9 + $0x2d4] ss:$8 sps:$4 sm:$0xff]  }
 0x456   :  { %2836 = vmatprep.subr.bf16.mxu0 %v8366_v0 }
 0x458   :  { %7238 = vmatmul.mubr.msk.f32.gmra.mxu0 %vm2552_vm0, %v2523_v1 }
 0x459   :  { %2647 = vmatprep.mubr.f32.mxu0 %v8862_v32  ;;  %2837 = vmatpush1.bf16.msra.mxu0 %v8364_v2 }
 0x45a   :  { %2838 = vmatprep.subr.bf16.mxu0 %v8372_v3 }
 0x45c   :  { %7239 = vmatmul.mubr.msk.f32.gmra.mxu0 %vm2552_vm0, %v2524_v58 }
 0x45d   :  { %2653 = vmatprep.mubr.f32.mxu0 %v8862_v32  ;;  %2839 = vmatpush1.bf16.msra.mxu0 %v8370_v4 }
 0x45e   :  { %2840 = vmatprep.subr.bf16.mxu0 %v8378_v5  ;;  %v8442_v5 = vld [vmem:[%s11766_s9 + $0x200] ss:$8 sps:$4 sm:$0xff]  }
 0x460   :  { %7240 = vmatmul.mubr.msk.f32.gmra.mxu0 %vm2552_vm0, %v2525_v6  ;;  %v8445_v6 = vld [vmem:[%s11766_s9 + $0x2d0] ss:$8 sps:$4 sm:$0xff]  }
 0x461   :  { %2841 = vmatpush1.bf16.msra.mxu0 %v8376_v7  ;;  %v8450_v7 = vld [vmem:[%s11766_s9 + $0x1f4] ss:$8 sps:$4 sm:$0xff]  }
 0x462   :  { %2842 = vmatprep.subr.bf16.mxu0 %v8384_v8  ;;  %v8453_v8 = vld [vmem:[%s11766_s9 + $0x2c4] ss:$8 sps:$4 sm:$0xff]  }
 0x465   :  { %2843 = vmatpush1.bf16.msra.mxu0 %v8382_v9 }
 0x466   :  { %2844 = vmatprep.subr.bf16.mxu0 %v8390_v10 }
 0x469   :  { %2845 = vmatpush1.bf16.msra.mxu0 %v8388_v11 }
 0x46a   :  { %2846 = vmatprep.subr.bf16.mxu0 %v8396_v12  ;;  %v8448_v12 = vld [vmem:[%s11766_s9 + $0x1f0] ss:$8 sps:$4 sm:$0xff]  }
 0x46d   :  { %2847 = vmatpush1.bf16.msra.mxu0 %v8394_v13  ;;  %v8451_v13 = vld [vmem:[%s11766_s9 + $0x2c0] ss:$8 sps:$4 sm:$0xff]  }
 0x46e   :  { %2848 = vmatprep.subr.bf16.mxu0 %v8402_v14  ;;  %v8456_v14 = vld [vmem:[%s11766_s9 + $0x1e4] ss:$8 sps:$4 sm:$0xff]  }
 0x471   :  { %2849 = vmatpush1.bf16.msra.mxu0 %v8400_v15  ;;  %v8459_v15 = vld [vmem:[%s11766_s9 + $0x2b4] ss:$8 sps:$4 sm:$0xff]  }
 0x472   :  { %2856 = vmatprep.subr.bf16.mxu0 %v8408_v16  ;;  %v8454_v16 = vld [vmem:[%s11766_s9 + $0x1e0] ss:$8 sps:$4 sm:$0xff]  }
 0x475   :  { %2857 = vmatpush2.bf16.msra.mxu0 %v8406_v17  ;;  %v8457_v17 = vld [vmem:[%s11766_s9 + $0x2b0] ss:$8 sps:$4 sm:$0xff]  }
 0x476   :  { %2858 = vmatprep.subr.bf16.mxu0 %v8414_v18  ;;  %v8462_v18 = vld [vmem:[%s11766_s9 + $0x1d4] ss:$8 sps:$4 sm:$0xff]  }
 0x479   :  { %2859 = vmatpush2.bf16.msra.mxu0 %v8412_v19  ;;  %v8465_v19 = vld [vmem:[%s11766_s9 + $0x2a4] ss:$8 sps:$4 sm:$0xff]  }
 0x47a   :  { %2860 = vmatprep.subr.bf16.mxu0 %v8420_v20  ;;  %v8460_v20 = vld [vmem:[%s11766_s9 + $0x1d0] ss:$8 sps:$4 sm:$0xff]  }
 0x47d   :  { %2861 = vmatpush2.bf16.msra.mxu0 %v8418_v22  ;;  %v8468_v22 = vld [vmem:[%s11766_s9 + $0x1c4] ss:$8 sps:$4 sm:$0xff]  }
 0x47e   :  { %2862 = vmatprep.subr.bf16.mxu0 %v8426_v24  ;;  %v8466_v24 = vld [vmem:[%s11766_s9 + $0x1c0] ss:$8 sps:$4 sm:$0xff]  }
 0x481   :  { %2863 = vmatpush2.bf16.msra.mxu0 %v8424_v26  ;;  %v8474_v26 = vld [vmem:[%s11766_s9 + $0x1b4] ss:$8 sps:$4 sm:$0xff]  }
 0x482   :  { %2864 = vmatprep.subr.bf16.mxu0 %v8432_v28  ;;  %v8472_v28 = vld [vmem:[%s11766_s9 + $0x1b0] ss:$8 sps:$4 sm:$0xff]  }
 0x485   :  { %2865 = vmatpush2.bf16.msra.mxu0 %v8430_v30  ;;  %v8480_v30 = vld [vmem:[%s11766_s9 + $0x1a4] ss:$8 sps:$4 sm:$0xff]  }
 0x486   :  { %3304 = vmatprep.subr.bf16.mxu0 %v8438_v53  ;;  %v8478_v53 = vld [vmem:[%s11766_s9 + $0x1a0] ss:$8 sps:$4 sm:$0xff]  }
 0x514   :  { %v2637_v35 = vpop.f32.mrf.mxu0 }
 0x515   :  { %v2638_v44 = vadd.f32 %v2637_v35, %v2545_v37  ;;  %v8489_v35 = vld [vmem:[%s11766_s9 + $0x334] ss:$8 sps:$4 sm:$0xff]  }
 0x516   :  { %v2639_v38 = vpop.f32.mrf.mxu0 }
 0x517   :  { %v2640_v41 = vadd.f32 %v2639_v38, %v2549_v36  ;;  %v2660_v52 = vmax.f32 %v2638_v44, 0.0  ;;  %v8492_v38 = vld [vmem:[%s11766_s9 + $0x254] ss:$8 sps:$4 sm:$0xff]   ;;  %v8498_v44 = vld [vmem:[%s11766_s9 + $0x244] ss:$8 sps:$4 sm:$0xff]  }
 0x518   :  { %v2643_v39 = vpop.f32.mrf.mxu0 }
 0x519   :  { %v2644_v43 = vadd.f32 %v2643_v39, %v2545_v37  ;;  %v2661_v49 = vmax.f32 %v2640_v41, 0.0  ;;  %v8495_v39 = vld [vmem:[%s11766_s9 + $0x324] ss:$8 sps:$4 sm:$0xff]   ;;  %v8490_v41 = vld [vmem:[%s11766_s9 + $0x250] ss:$8 sps:$4 sm:$0xff]  }
 0x51a   :  { %v2645_v45 = vpop.f32.mrf.mxu0 }
 0x51b   :  { %v2646_v46 = vadd.f32 %v2645_v45, %v2549_v36  ;;  %v2662_v47 = vmax.f32 %v2644_v43, 0.0  ;;  %v8493_v43 = vld [vmem:[%s11766_s9 + $0x320] ss:$8 sps:$4 sm:$0xff]   ;;  %v8501_v45 = vld [vmem:[%s11766_s9 + $0x314] ss:$8 sps:$4 sm:$0xff]  }
 0x51c   :  { %v2649_v48 = vpop.f32.mrf.mxu0 }
 0x51d   :  { %v2663_v51 = vmax.f32 %v2646_v46, 0.0  ;;  %v2650_v54 = vadd.f32 %v2649_v48, %v2545_v37  ;;  %v10098_v61 = vpack.c.bf16 %v2662_v47, %v2660_v52  ;;  %v8496_v46 = vld [vmem:[%s11766_s9 + $0x240] ss:$8 sps:$4 sm:$0xff]   ;;  %v8499_v47 = vld [vmem:[%s11766_s9 + $0x310] ss:$8 sps:$4 sm:$0xff]  }
 0x51e   :  { %v2651_v55 = vpop.f32.mrf.mxu0  ;;  %v8504_v48 = vld [vmem:[%s11766_s9 + $0x234] ss:$8 sps:$4 sm:$0xff]   ;;  %v8505_v52 = vld [vmem:[%s11766_s9 + $0x300] ss:$8 sps:$4 sm:$0xff]  }
 0x51f   :  { %v10090_v56 = vpack.c.bf16 %v2663_v51, %v2661_v49  ;;  %v2652_v57 = vadd.f32 %v2651_v55, %v2549_v36  ;;  %v2664_v1 = vmax.f32 %v2650_v54, 0.0  ;;  %v8507_v49 = vld [vmem:[%s11766_s9 + $0x304] ss:$8 sps:$4 sm:$0xff]   ;;  %v8502_v51 = vld [vmem:[%s11766_s9 + $0x230] ss:$8 sps:$4 sm:$0xff]  }
 0x520   :  { %v2655_v50 = vpop.f32.mrf.mxu0  ;;  %v8510_v54 = vld [vmem:[%s11766_s9 + $0x224] ss:$8 sps:$4 sm:$0xff]   ;;  %v8513_v55 = vld [vmem:[%s11766_s9 + $0x2f4] ss:$8 sps:$4 sm:$0xff]  }
 0x521   :  { %v2656_v0 = vadd.f32 %v2655_v50, %v2545_v37  ;;  %7267 = vmatprep.mubr.msk.bf16.mxu0 %vm1796_vm7, %v10090_v56  ;;  %7321 = vmatprep.mubr.msk.bf16.mxu1 %vm1796_vm7, %v10090_v56  ;;  %v2665_v3 = vmax.f32 %v2652_v57, 0.0  ;;  %v8487_v37 = vld [vmem:[%s11766_s9 + $0x330] ss:$8 sps:$4 sm:$0xff]   ;;  %v8508_v57 = vld [vmem:[%s11766_s9 + $0x220] ss:$8 sps:$4 sm:$0xff]  }
 0x522   :  { %v2657_v2 = vpop.f32.mrf.mxu0  ;;  %2867 = vmatmul.mubr.bf16.vlgmr.msra.gmra.mxu0 %v10098_v61  ;;  %3087 = vmatmul.mubr.bf16.vlgmr.msra.gmra.mxu1 %v10098_v61  ;;  %v8519_v50 = vld [vmem:[%s11766_s9 + $0x484] ss:$8 sps:$4 sm:$0xff]  }
 0x523   :  { %v2666_v58 = vmax.f32 %v2656_v0, 0.0  ;;  %v2658_v4 = vadd.f32 %v2657_v2, %v2549_v36  ;;  %3305 = vmatpush1.bf16.msra.mxu0 %v8436_v59  ;;  %3555 = vmatpush1.bf16.msra.mxu1 %v8439_v60  ;;  %v8484_v36 = vld [vmem:[%s11766_s9 + $0x260] ss:$8 sps:$4 sm:$0xff]   ;;  %v8511_v59 = vld [vmem:[%s11766_s9 + $0x2f0] ss:$8 sps:$4 sm:$0xff]  }
 0x524   :  { %3306 = vmatprep.subr.bf16.mxu0 %v8444_v62  ;;  %3556 = vmatprep.subr.bf16.mxu1 %v8447_v63  ;;  %v8516_v60 = vld [vmem:[%s11766_s9 + $0x3b4] ss:$8 sps:$4 sm:$0xff]   ;;  %v8514_v62 = vld [vmem:[%s11766_s9 + $0x3b0] ss:$8 sps:$4 sm:$0xff]   ;;  %v8517_v63 = vld [vmem:[%s11766_s9 + $0x480] ss:$8 sps:$4 sm:$0xff]  }
 0x525   :  { %v2667_v9 = vmax.f32 %v2658_v4, 0.0  ;;  %v10124_v10 = vpack.c.bf16 %v2666_v58, %v2664_v1  ;;  %v8522_v0 = vld [vmem:[%s11766_s9 + $0x3a4] ss:$8 sps:$4 sm:$0xff]   ;;  %v8525_v1 = vld [vmem:[%s11766_s9 + $0x474] ss:$8 sps:$4 sm:$0xff]  }
 0x526   :  { %v8520_v2 = vld [vmem:[%s11766_s9 + $0x3a0] ss:$8 sps:$4 sm:$0xff]   ;;  %v8528_v58 = vld [vmem:[%s11766_s9 + $0x394] ss:$8 sps:$4 sm:$0xff]   ;;  %v8531_v4 = vld [vmem:[%s11766_s9 + $0x464] ss:$8 sps:$4 sm:$0xff]  }
 0x527   :  { %v10126_v11 = vpack.c.bf16 %v2667_v9, %v2665_v3  ;;  %3307 = vmatpush1.bf16.msra.mxu0 %v8442_v5  ;;  %3557 = vmatpush1.bf16.msra.mxu1 %v8445_v6  ;;  %v8523_v3 = vld [vmem:[%s11766_s9 + $0x470] ss:$8 sps:$4 sm:$0xff]   ;;  %v8529_v6 = vld [vmem:[%s11766_s9 + $0x460] ss:$8 sps:$4 sm:$0xff]  }
 0x528   :  { %3308 = vmatprep.subr.bf16.mxu0 %v8450_v7  ;;  %3558 = vmatprep.subr.bf16.mxu1 %v8453_v8  ;;  %v8526_v5 = vld [vmem:[%s11766_s9 + $0x390] ss:$8 sps:$4 sm:$0xff]   ;;  %v8534_v7 = vld [vmem:[%s11766_s9 + $0x384] ss:$8 sps:$4 sm:$0xff]   ;;  %v8537_v8 = vld [vmem:[%s11766_s9 + $0x454] ss:$8 sps:$4 sm:$0xff]  }
 0x529   :  { %7268 = vmatprep.mubr.msk.bf16.mxu0 %vm1796_vm7, %v10126_v11  ;;  %7322 = vmatprep.mubr.msk.bf16.mxu1 %vm1796_vm7, %v10126_v11  ;;  %v8532_v9 = vld [vmem:[%s11766_s9 + $0x380] ss:$8 sps:$4 sm:$0xff]  }
 0x52a   :  { %2877 = vmatmul.mubr.bf16.gmra.mxu0 %v10124_v10  ;;  %3097 = vmatmul.mubr.bf16.gmra.mxu1 %v10124_v10 }
 0x52b   :  { %3309 = vmatpush1.bf16.msra.mxu0 %v8448_v12  ;;  %3559 = vmatpush1.bf16.msra.mxu1 %v8451_v13  ;;  %v8535_v12 = vld [vmem:[%s11766_s9 + $0x450] ss:$8 sps:$4 sm:$0xff]   ;;  %v8540_v13 = vld [vmem:[%s11766_s9 + $0x374] ss:$8 sps:$4 sm:$0xff]  }
 0x52c   :  { %7375 = vmatprep.mubr.msk.bf16.mxu0 %vm1796_vm7, %v10090_v56  ;;  %7429 = vmatprep.mubr.msk.bf16.mxu1 %vm1796_vm7, %v10090_v56 }
 0x52d   :  { %3310 = vmatprep.subr.bf16.mxu0 %v8456_v14  ;;  %3560 = vmatprep.subr.bf16.mxu1 %v8459_v15  ;;  %v8538_v14 = vld [vmem:[%s11766_s9 + $0x370] ss:$8 sps:$4 sm:$0xff]   ;;  %v8541_v15 = vld [vmem:[%s11766_s9 + $0x440] ss:$8 sps:$4 sm:$0xff]  }
 0x52f   :  { %3311 = vmatpush1.bf16.msra.mxu0 %v8454_v16  ;;  %3561 = vmatpush1.bf16.msra.mxu1 %v8457_v17  ;;  %v8546_v16 = vld [vmem:[%s11766_s9 + $0x364] ss:$8 sps:$4 sm:$0xff]   ;;  %v8549_v17 = vld [vmem:[%s11766_s9 + $0x434] ss:$8 sps:$4 sm:$0xff]  }
 0x530   :  { %3312 = vmatprep.subr.bf16.mxu0 %v8462_v18  ;;  %3562 = vmatprep.subr.bf16.mxu1 %v8465_v19  ;;  %v8544_v18 = vld [vmem:[%s11766_s9 + $0x360] ss:$8 sps:$4 sm:$0xff]   ;;  %v8547_v19 = vld [vmem:[%s11766_s9 + $0x430] ss:$8 sps:$4 sm:$0xff]  }
 0x533   :  { %3313 = vmatpush1.bf16.msra.mxu0 %v8460_v20  ;;  %3563 = vmatpush1.bf16.msra.mxu1 %v8463_v21  ;;  %v8552_v20 = vld [vmem:[%s11766_s9 + $0x354] ss:$8 sps:$4 sm:$0xff]   ;;  %v8555_v21 = vld [vmem:[%s11766_s9 + $0x424] ss:$8 sps:$4 sm:$0xff]  }
 0x534   :  { %3314 = vmatprep.subr.bf16.mxu0 %v8468_v22  ;;  %3564 = vmatprep.subr.bf16.mxu1 %v8471_v23  ;;  %v8550_v22 = vld [vmem:[%s11766_s9 + $0x350] ss:$8 sps:$4 sm:$0xff]   ;;  %v8553_v23 = vld [vmem:[%s11766_s9 + $0x420] ss:$8 sps:$4 sm:$0xff]  }
 0x537   :  { %3315 = vmatpush1.bf16.msra.mxu0 %v8466_v24  ;;  %3565 = vmatpush1.bf16.msra.mxu1 %v8469_v25  ;;  %v8558_v24 = vld [vmem:[%s11766_s9 + $0x344] ss:$8 sps:$4 sm:$0xff]   ;;  %v8561_v25 = vld [vmem:[%s11766_s9 + $0x414] ss:$8 sps:$4 sm:$0xff]  }
 0x538   :  { %3316 = vmatprep.subr.bf16.mxu0 %v8474_v26  ;;  %3566 = vmatprep.subr.bf16.mxu1 %v8477_v27  ;;  %v8556_v26 = vld [vmem:[%s11766_s9 + $0x340] ss:$8 sps:$4 sm:$0xff]   ;;  %v8559_v27 = vld [vmem:[%s11766_s9 + $0x410] ss:$8 sps:$4 sm:$0xff]  }
 0x53b   :  { %3317 = vmatpush1.bf16.msra.mxu0 %v8472_v28  ;;  %3567 = vmatpush1.bf16.msra.mxu1 %v8475_v29  ;;  %v8564_v28 = vld [vmem:[%s11766_s9 + $0x404] ss:$8 sps:$4 sm:$0xff]   ;;  %v8567_v29 = vld [vmem:[%s11766_s9 + $0x4d4] ss:$8 sps:$4 sm:$0xff]  }
 0x53c   :  { %3318 = vmatprep.subr.bf16.mxu0 %v8480_v30  ;;  %3568 = vmatprep.subr.bf16.mxu1 %v8483_v31  ;;  %v8562_v30 = vld [vmem:[%s11766_s9 + $0x400] ss:$8 sps:$4 sm:$0xff]   ;;  %v8565_v31 = vld [vmem:[%s11766_s9 + $0x4d0] ss:$8 sps:$4 sm:$0xff]  }
 0x53f   :  { %3319 = vmatpush1.bf16.msra.mxu0 %v8478_v53  ;;  %3569 = vmatpush1.bf16.msra.mxu1 %v8481_v33  ;;  %v8570_v53 = vld [vmem:[%s11766_s9 + $0x3f4] ss:$8 sps:$4 sm:$0xff]   ;;  %v8573_v33 = vld [vmem:[%s11766_s9 + $0x4c4] ss:$8 sps:$4 sm:$0xff]  }
 0x540   :  { %3326 = vmatprep.subr.bf16.mxu0 %v8486_v34  ;;  %3576 = vmatprep.subr.bf16.mxu1 %v8489_v35  ;;  %v8568_v34 = vld [vmem:[%s11766_s9 + $0x3f0] ss:$8 sps:$4 sm:$0xff]   ;;  %v8571_v35 = vld [vmem:[%s11766_s9 + $0x4c0] ss:$8 sps:$4 sm:$0xff]  }
 0x543   :  { %3327 = vmatpush2.bf16.msra.mxu0 %v8484_v36  ;;  %3577 = vmatpush2.bf16.msra.mxu1 %v8487_v37  ;;  %v8576_v36 = vld [vmem:[%s11766_s9 + $0x3e4] ss:$8 sps:$4 sm:$0xff]   ;;  %v8579_v37 = vld [vmem:[%s11766_s9 + $0x4b4] ss:$8 sps:$4 sm:$0xff]  }
 0x544   :  { %3328 = vmatprep.subr.bf16.mxu0 %v8492_v38  ;;  %3578 = vmatprep.subr.bf16.mxu1 %v8495_v39  ;;  %v8574_v38 = vld [vmem:[%s11766_s9 + $0x3e0] ss:$8 sps:$4 sm:$0xff]   ;;  %v8577_v39 = vld [vmem:[%s11766_s9 + $0x4b0] ss:$8 sps:$4 sm:$0xff]  }
 0x547   :  { %3329 = vmatpush2.bf16.msra.mxu0 %v8490_v41  ;;  %3579 = vmatpush2.bf16.msra.mxu1 %v8493_v43  ;;  %v8582_v41 = vld [vmem:[%s11766_s9 + $0x3d4] ss:$8 sps:$4 sm:$0xff]   ;;  %v8585_v43 = vld [vmem:[%s11766_s9 + $0x4a4] ss:$8 sps:$4 sm:$0xff]  }
 0x548   :  { %3330 = vmatprep.subr.bf16.mxu0 %v8498_v44  ;;  %3580 = vmatprep.subr.bf16.mxu1 %v8501_v45  ;;  %v8580_v44 = vld [vmem:[%s11766_s9 + $0x3d0] ss:$8 sps:$4 sm:$0xff]   ;;  %v8583_v45 = vld [vmem:[%s11766_s9 + $0x4a0] ss:$8 sps:$4 sm:$0xff]  }
 0x54b   :  { %3331 = vmatpush2.bf16.msra.mxu0 %v8496_v46  ;;  %3581 = vmatpush2.bf16.msra.mxu1 %v8499_v47  ;;  %v8588_v46 = vld [vmem:[%s11766_s9 + $0x3c4] ss:$8 sps:$4 sm:$0xff]   ;;  %v8591_v47 = vld [vmem:[%s11766_s9 + $0x494] ss:$8 sps:$4 sm:$0xff]  }
 0x54c   :  { %3332 = vmatprep.subr.bf16.mxu0 %v8504_v48  ;;  %3582 = vmatprep.subr.bf16.mxu1 %v8507_v49  ;;  %v8586_v48 = vld [vmem:[%s11766_s9 + $0x3c0] ss:$8 sps:$4 sm:$0xff]   ;;  %v8589_v49 = vld [vmem:[%s11766_s9 + $0x490] ss:$8 sps:$4 sm:$0xff]  }
 0x54f   :  { %3333 = vmatpush2.bf16.msra.mxu0 %v8502_v51  ;;  %3583 = vmatpush2.bf16.msra.mxu1 %v8505_v52 }
 0x550   :  { %3334 = vmatprep.subr.bf16.mxu0 %v8510_v54  ;;  %3584 = vmatprep.subr.bf16.mxu1 %v8513_v55 }
 0x553   :  { %3335 = vmatpush2.bf16.msra.mxu0 %v8508_v57  ;;  %3585 = vmatpush2.bf16.msra.mxu1 %v8511_v59 }
 0x554   :  { %3803 = vmatprep.subr.bf16.mxu0 %v8516_v60  ;;  %4021 = vmatprep.subr.bf16.mxu1 %v8519_v50 }
 0x556   :  { %3337 = vmatmul.mubr.bf16.vlgmr.msra.gmra.mxu0 %v10098_v61  ;;  %3587 = vmatmul.mubr.bf16.vlgmr.msra.gmra.mxu1 %v10098_v61 }
 0x557   :  { %7376 = vmatprep.mubr.msk.bf16.mxu0 %vm1796_vm7, %v10126_v11  ;;  %7430 = vmatprep.mubr.msk.bf16.mxu1 %vm1796_vm7, %v10126_v11 }
 0x558   :  { %3804 = vmatpush1.bf16.msra.mxu0 %v8514_v62  ;;  %4022 = vmatpush1.bf16.msra.mxu1 %v8517_v63 }
 0x559   :  { %3805 = vmatprep.subr.bf16.mxu0 %v8522_v0  ;;  %4023 = vmatprep.subr.bf16.mxu1 %v8525_v1 }
 0x55c   :  { %3806 = vmatpush1.bf16.msra.mxu0 %v8520_v2  ;;  %4024 = vmatpush1.bf16.msra.mxu1 %v8523_v3 }
 0x55d   :  { %3807 = vmatprep.subr.bf16.mxu0 %v8528_v58  ;;  %4025 = vmatprep.subr.bf16.mxu1 %v8531_v4 }
 0x55e   :  { %3347 = vmatmul.mubr.bf16.gmra.mxu0 %v10124_v10  ;;  %3597 = vmatmul.mubr.bf16.gmra.mxu1 %v10124_v10 }
 0x55f   :  { %7483 = vmatprep.mubr.msk.bf16.mxu0 %vm1796_vm7, %v10090_v56  ;;  %7537 = vmatprep.mubr.msk.bf16.mxu1 %vm1796_vm7, %v10090_v56  ;;  %v8543_v56 = vld [vmem:[%s11766_s9 + $0x444] ss:$8 sps:$4 sm:$0xff]  }
 0x560   :  { %3808 = vmatpush1.bf16.msra.mxu0 %v8526_v5  ;;  %4026 = vmatpush1.bf16.msra.mxu1 %v8529_v6 }
 0x561   :  { %3809 = vmatprep.subr.bf16.mxu0 %v8534_v7  ;;  %4027 = vmatprep.subr.bf16.mxu1 %v8537_v8 }
 0x564   :  { %3810 = vmatpush1.bf16.msra.mxu0 %v8532_v9  ;;  %4028 = vmatpush1.bf16.msra.mxu1 %v8535_v12 }
 0x565   :  { %3811 = vmatprep.subr.bf16.mxu0 %v8540_v13  ;;  %4029 = vmatprep.subr.bf16.mxu1 %v8543_v56 }
 0x568   :  { %3812 = vmatpush1.bf16.msra.mxu0 %v8538_v14  ;;  %4030 = vmatpush1.bf16.msra.mxu1 %v8541_v15 }
 0x569   :  { %3813 = vmatprep.subr.bf16.mxu0 %v8546_v16  ;;  %4031 = vmatprep.subr.bf16.mxu1 %v8549_v17  ;;  %v4113_v17 = vld [vmem:[%s11769_s10 + $0x8] sm:$0xff] }
 0x56c   :  { %3814 = vmatpush1.bf16.msra.mxu0 %v8544_v18  ;;  %4032 = vmatpush1.bf16.msra.mxu1 %v8547_v19 }
 0x56d   :  { %3815 = vmatprep.subr.bf16.mxu0 %v8552_v20  ;;  %4033 = vmatprep.subr.bf16.mxu1 %v8555_v21 }
 0x570   :  { %3816 = vmatpush1.bf16.msra.mxu0 %v8550_v22  ;;  %4034 = vmatpush1.bf16.msra.mxu1 %v8553_v23 }
 0x571   :  { %3817 = vmatprep.subr.bf16.mxu0 %v8558_v24  ;;  %4035 = vmatprep.subr.bf16.mxu1 %v8561_v25 }
 0x574   :  { %3818 = vmatpush1.bf16.msra.mxu0 %v8556_v26  ;;  %4036 = vmatpush1.bf16.msra.mxu1 %v8559_v27 }
 0x575   :  { %3825 = vmatprep.subr.bf16.mxu0 %v8564_v28  ;;  %4043 = vmatprep.subr.bf16.mxu1 %v8567_v29 }
 0x578   :  { %3826 = vmatpush2.bf16.msra.mxu0 %v8562_v30  ;;  %4044 = vmatpush2.bf16.msra.mxu1 %v8565_v31 }
 0x579   :  { %3827 = vmatprep.subr.bf16.mxu0 %v8570_v53  ;;  %4045 = vmatprep.subr.bf16.mxu1 %v8573_v33 }
 0x57c   :  { %3828 = vmatpush2.bf16.msra.mxu0 %v8568_v34  ;;  %4046 = vmatpush2.bf16.msra.mxu1 %v8571_v35 }
 0x57d   :  { %3829 = vmatprep.subr.bf16.mxu0 %v8576_v36  ;;  %4047 = vmatprep.subr.bf16.mxu1 %v8579_v37 }
 0x580   :  { %3830 = vmatpush2.bf16.msra.mxu0 %v8574_v38  ;;  %4048 = vmatpush2.bf16.msra.mxu1 %v8577_v39 }
 0x581   :  { %3831 = vmatprep.subr.bf16.mxu0 %v8582_v41  ;;  %4049 = vmatprep.subr.bf16.mxu1 %v8585_v43 }
 0x584   :  { %3832 = vmatpush2.bf16.msra.mxu0 %v8580_v44  ;;  %4050 = vmatpush2.bf16.msra.mxu1 %v8583_v45 }
 0x585   :  { %3833 = vmatprep.subr.bf16.mxu0 %v8588_v46  ;;  %4051 = vmatprep.subr.bf16.mxu1 %v8591_v47 }
 0x588   :  { %3834 = vmatpush2.bf16.msra.mxu0 %v8586_v48  ;;  %4052 = vmatpush2.bf16.msra.mxu1 %v8589_v49 }
 0x58b   :  { %3836 = vmatmul.mubr.bf16.vlgmr.msra.gmra.mxu0 %v10098_v61  ;;  %4054 = vmatmul.mubr.bf16.vlgmr.msra.gmra.mxu1 %v10098_v61 }
 0x58c   :  { %7484 = vmatprep.mubr.msk.bf16.mxu0 %vm1796_vm7, %v10126_v11  ;;  %7538 = vmatprep.mubr.msk.bf16.mxu1 %vm1796_vm7, %v10126_v11  ;;  %vm3388_vm7 = vcmask 916484  }
 0x593   :  { %3846 = vmatmul.mubr.bf16.gmra.mxu0 %v10124_v10  ;;  %4064 = vmatmul.mubr.bf16.gmra.mxu1 %v10124_v10 }
 0x594   :  { %7541 = vmatprep.mubr.msk.f32.mxu0 %vm4180_vm6, %v4113_v17  ;;  %v8622_v17 = vld [vmem:[%s11770_s12 + $0x20] ss:$8 sps:$4 sm:$0xff]  }
 0x5e2   :  { %v10440_v51 = vpop.f32.mrf.mxu0  ;;  %v3088_v52 = vpop.f32.mrf.mxu1 }
 0x5e3   :  { %v3115_v54 = vrot.slane %v3088_v52, 6 }
 0x5e4   :  { %v2870_v55 = vpop.f32.mrf.mxu0  ;;  %v3090_v57 = vpop.f32.mrf.mxu1 }
 0x5e5   :  { %3137 = vst [vmem:[#allocation4 + $0x30] sm:$0xfc] %v3115_v54  ;;  %2889 = vst.msk [vmem:[#allocation4 + $0x8] sm:$0xff] %vm2888_vm1, %v2870_v55  ;;  %v3116_v61 = vrot.slane %v3090_v57, 6 }
 0x5e6   :  { %v10443_v59 = vpop.f32.mrf.mxu0  ;;  %v3092_v60 = vpop.f32.mrf.mxu1 }
 0x5e7   :  { %3139 = vst.msk [vmem:[#allocation4 + $0x38] sm:$0xfc] %vm3138_vm2, %v3116_v61  ;;  %v3117_v11 = vrot.slane %v3092_v60, 6 }
 0x5e8   :  { %v2874_v50 = vpop.f32.mrf.mxu0  ;;  %v3094_v10 = vpop.f32.mrf.mxu1 }
 0x5e9   :  { %v10447_v62 = vsel %vm1538_vm4, %v3115_v54, %v3117_v11  ;;  %2891 = vst.msk [vmem:[#allocation4 + $0x18] sm:$0xff] %vm2888_vm1, %v2874_v50  ;;  %v3119_v63 = vrot.slane %v3094_v10, 6 }
 0x5ea   :  { %v10450_v0 = vpop.f32.mrf.mxu0  ;;  %v3098_v1 = vpop.f32.mrf.mxu1 }
 0x5eb   :  { %v3120_v2 = vsel %vm1538_vm4, %v3116_v61, %v3119_v63  ;;  %v3121_v3 = vrot.slane %v3098_v1, 6 }
 0x5ec   :  { %3141 = vst.msk [vmem:[#allocation4 + $0x48] sm:$0xff] %vm2888_vm1, %v3120_v2  ;;  %v2880_v58 = vpop.f32.mrf.mxu0  ;;  %v3100_v4 = vpop.f32.mrf.mxu1 }
 0x5ed   :  { %v10455_v5 = vsel %vm1538_vm4, %v3117_v11, %v3121_v3  ;;  %2893 = vst.msk [vmem:[#allocation4 + $0x28] sm:$0xff] %vm2888_vm1, %v2880_v58  ;;  %v3123_v6 = vrot.slane %v3100_v4, 6  ;;  %v8592_v11 = vld [vmem:[%s11770_s12 + $0x70] ss:$8 sps:$4 sm:$0xff]  }
 0x5ee   :  { %v2882_v7 = vpop.f32.mrf.mxu0  ;;  %v3102_v8 = vpop.f32.mrf.mxu1 }
 0x5ef   :  { %v3124_v9 = vsel %vm1538_vm4, %v3119_v63, %v3123_v6  ;;  %2894 = vst [vmem:[#allocation4 + $0x30] sm:$0x3] %v2882_v7  ;;  %v3125_v12 = vrot.slane %v3102_v8, 6  ;;  %v8594_v63 = vld [vmem:[%s11770_s12 + $0x74] ss:$8 sps:$4 sm:$0xff]  }
 0x5f0   :  { %3143 = vst.msk [vmem:[#allocation4 + $0x58] sm:$0xff] %vm2888_vm1, %v3124_v9  ;;  %v2884_v13 = vpop.f32.mrf.mxu0  ;;  %v3104_v56 = vpop.f32.mrf.mxu1  ;;  %4540 = vmatprep.subr.bf16.mxu1 %v8594_v63  ;;  %v8598_v7 = vld [vmem:[%s11770_s12 + $0x60] ss:$8 sps:$4 sm:$0xff]   ;;  %v8600_v8 = vld [vmem:[%s11770_s12 + $0x64] ss:$8 sps:$4 sm:$0xff]  }
 0x5f1   :  { %v3126_v14 = vsel %vm1538_vm4, %v3121_v3, %v3125_v12  ;;  %v3127_v15 = vrot.slane %v3104_v56, 6  ;;  %2896 = vst.msk [vmem:[#allocation4 + $0x38] sm:$0x3] %vm2895_vm3, %v2884_v13  ;;  %4541 = vmatpush1.bf16.msra.mxu1 %v8592_v11  ;;  %v8606_v9 = vld [vmem:[%s11770_s12 + $0x54] ss:$8 sps:$4 sm:$0xff]  }
 0x5f2   :  { %3144 = vst [vmem:[#allocation4 + $0x60] sm:$0xf] %v3126_v14  ;;  %4542 = vmatprep.subr.bf16.mxu1 %v8600_v8  ;;  %v8604_v12 = vld [vmem:[%s11770_s12 + $0x50] ss:$8 sps:$4 sm:$0xff]   ;;  %v8612_v13 = vld [vmem:[%s11770_s12 + $0x44] ss:$8 sps:$4 sm:$0xff]  }
 0x5f3   :  { %v3128_v16 = vsel %vm1538_vm4, %v3123_v6, %v3127_v15  ;;  %v8610_v56 = vld [vmem:[%s11770_s12 + $0x40] ss:$8 sps:$4 sm:$0xff]   ;;  %v8618_v14 = vld [vmem:[%s11770_s12 + $0x34] ss:$8 sps:$4 sm:$0xff]   ;;  %v8616_v15 = vld [vmem:[%s11770_s12 + $0x30] ss:$8 sps:$4 sm:$0xff]  }
 0x5f4   :  { %3146 = vst.msk [vmem:[#allocation4 + $0x68] sm:$0xf] %vm3145_vm5, %v3128_v16  ;;  %v8624_v16 = vld [vmem:[%s11770_s12 + $0x24] ss:$8 sps:$4 sm:$0xff]  }
 0x5f5   :  { %4543 = vmatpush1.bf16.msra.mxu1 %v8598_v7 }
 0x5f6   :  { %4544 = vmatprep.subr.bf16.mxu1 %v8606_v9 }
 0x5f9   :  { %4545 = vmatpush1.bf16.msra.mxu1 %v8604_v12 }
 0x5fa   :  { %4546 = vmatprep.subr.bf16.mxu1 %v8612_v13 }
 0x5fd   :  { %4547 = vmatpush1.bf16.msra.mxu1 %v8610_v56 }
 0x5fe   :  { %4548 = vmatprep.subr.bf16.mxu1 %v8618_v14 }
 0x601   :  { %4549 = vmatpush1.bf16.msra.mxu1 %v8616_v15 }
 0x602   :  { %4550 = vmatprep.subr.bf16.mxu1 %v8624_v16 }
 0x605   :  { %4551 = vmatpush1.bf16.msra.mxu1 %v8622_v17 }
 0x616   :  { %v3338_v18 = vpop.f32.mrf.mxu0  ;;  %v3588_v19 = vpop.f32.mrf.mxu1 }
 0x617   :  { %v3365_v20 = vrot.slane %v3338_v18, 4  ;;  %v3615_v21 = vrot.slane %v3588_v19, 2  ;;  %v8630_v18 = vld [vmem:[%s11770_s12 + $0x14] ss:$8 sps:$4 sm:$0xff]   ;;  %v8628_v19 = vld [vmem:[%s11770_s12 + $0x10] ss:$8 sps:$4 sm:$0xff]  }
 0x618   :  { %v3340_v22 = vpop.f32.mrf.mxu0  ;;  %v3590_v23 = vpop.f32.mrf.mxu1  ;;  %4552 = vmatprep.subr.bf16.mxu1 %v8630_v18 }
 0x619   :  { %3387 = vst [vmem:[#allocation4 + $0x60] sm:$0xf0] %v3365_v20  ;;  %3637 = vst [vmem:[#allocation4 + $0x90] sm:$0xc0] %v3615_v21  ;;  %v3366_v24 = vrot.slane %v3340_v22, 4  ;;  %v3616_v25 = vrot.slane %v3590_v23, 2  ;;  %4553 = vmatpush1.bf16.msra.mxu1 %v8628_v19 }
 0x61a   :  { %v3342_v26 = vpop.f32.mrf.mxu0  ;;  %v3592_v27 = vpop.f32.mrf.mxu1  ;;  %v8642_v22 = vld [vmem:[%s11770_s12 + $0xe4] ss:$8 sps:$4 sm:$0xff]   ;;  %v8640_v23 = vld [vmem:[%s11770_s12 + $0xe0] ss:$8 sps:$4 sm:$0xff]  }
 0x61b   :  { %3389 = vst.msk [vmem:[#allocation4 + $0x68] sm:$0xf0] %vm3388_vm7, %v3366_v24  ;;  %v3367_v28 = vrot.slane %v3342_v26, 4  ;;  %v3617_v29 = vrot.slane %v3592_v27, 2  ;;  %v8654_v26 = vld [vmem:[%s11770_s12 + $0xc4] ss:$8 sps:$4 sm:$0xff]  }
 0x61c   :  { %3639 = vst.msk [vmem:[#allocation4 + $0x98] sm:$0xc0] %vm3638_vm8, %v3616_v25  ;;  %v3344_v30 = vpop.f32.mrf.mxu0  ;;  %v3594_v31 = vpop.f32.mrf.mxu1  ;;  %v8652_v27 = vld [vmem:[%s11770_s12 + $0xc0] ss:$8 sps:$4 sm:$0xff]  }
 0x61d   :  { %v10469_v53 = vsel %vm2153_vm13, %v3365_v20, %v3367_v28  ;;  %v10472_v33 = vsel %vm2338_vm14, %v3615_v21, %v3617_v29  ;;  %v3369_v34 = vrot.slane %v3344_v30, 4  ;;  %v3619_v35 = vrot.slane %v3594_v31, 2  ;;  %v8636_v20 = vld [vmem:[%s11770_s12 + $0x4] ss:$8 sps:$4 sm:$0xff]   ;;  %v8634_v21 = vld [vmem:[%s11770_s12] ss:$8 sps:$4 sm:$0xff]  }
 0x61e   :  { %v3348_v36 = vpop.f32.mrf.mxu0  ;;  %v3598_v37 = vpop.f32.mrf.mxu1  ;;  %4554 = vmatprep.subr.bf16.mxu1 %v8636_v20 }
 0x61f   :  { %v3370_v38 = vsel %vm2153_vm13, %v3366_v24, %v3369_v34  ;;  %v3620_v39 = vsel %vm2338_vm14, %v3616_v25, %v3619_v35  ;;  %v3371_v41 = vrot.slane %v3348_v36, 4  ;;  %v3621_v43 = vrot.slane %v3598_v37, 2  ;;  %4555 = vmatpush1.bf16.msra.mxu1 %v8634_v21  ;;  %v8648_v24 = vld [vmem:[%s11770_s12 + $0xd4] ss:$8 sps:$4 sm:$0xff]   ;;  %v8646_v25 = vld [vmem:[%s11770_s12 + $0xd0] ss:$8 sps:$4 sm:$0xff]  }
 0x620   :  { %3391 = vst.msk [vmem:[#allocation4 + $0x78] sm:$0xff] %vm2888_vm1, %v3370_v38  ;;  %3641 = vst.msk [vmem:[#allocation4 + $0xa8] sm:$0xff] %vm2888_vm1, %v3620_v39  ;;  %v3350_v44 = vpop.f32.mrf.mxu0  ;;  %v3600_v45 = vpop.f32.mrf.mxu1  ;;  %4558 = vmatprep.subr.bf16.mxu1 %v8642_v22  ;;  %v8658_v36 = vld [vmem:[%s11770_s12 + $0xb0] ss:$8 sps:$4 sm:$0xff]   ;;  %v4134_v21 = vld [vmem:[#allocation4 + $0x30] sm:$0xff] }
 0x621   :  { %v10479_v46 = vsel %vm2153_vm13, %v3367_v28, %v3371_v41  ;;  %v10482_v47 = vsel %vm2338_vm14, %v3617_v29, %v3621_v43  ;;  %v3373_v48 = vrot.slane %v3350_v44, 4  ;;  %v3623_v49 = vrot.slane %v3600_v45, 2  ;;  %v8660_v28 = vld [vmem:[%s11770_s12 + $0xb4] ss:$8 sps:$4 sm:$0xff]   ;;  %v4131_v22 = vld [vmem:[#allocation4 + $0x18] sm:$0xff] }
 0x622   :  { %v3352_v52 = vpop.f32.mrf.mxu0  ;;  %v3602_v54 = vpop.f32.mrf.mxu1  ;;  %v4141_v19 = vld [vmem:[#allocation4 + $0x68] sm:$0xff]  ;;  %v4140_v20 = vld [vmem:[#allocation4 + $0x60] sm:$0xff] }
 0x623   :  { %v3374_v55 = vsel %vm2153_vm13, %v3369_v34, %v3373_v48  ;;  %v3624_v57 = vsel %vm2338_vm14, %v3619_v35, %v3623_v49  ;;  %v3375_v61 = vrot.slane %v3352_v52, 4  ;;  %v3625_v60 = vrot.slane %v3602_v54, 2  ;;  %4559 = vmatpush2.bf16.msra.mxu1 %v8640_v23 }
 0x624   :  { %3393 = vst.msk [vmem:[#allocation4 + $0x88] sm:$0xff] %vm2888_vm1, %v3374_v55  ;;  %3643 = vst.msk [vmem:[#allocation4 + $0xb8] sm:$0xff] %vm2888_vm1, %v3624_v57  ;;  %v3354_v50 = vpop.f32.mrf.mxu0  ;;  %v3604_v10 = vpop.f32.mrf.mxu1  ;;  %4560 = vmatprep.subr.bf16.mxu1 %v8648_v24 }
 0x625   :  { %v3376_v1 = vsel %vm2153_vm13, %v3371_v41, %v3375_v61  ;;  %v10496_v2 = vsel %vm2338_vm14, %v3621_v43, %v3625_v60  ;;  %v3377_v3 = vrot.slane %v3354_v50, 4  ;;  %v3627_v58 = vrot.slane %v3604_v10, 2 }
 0x626   :  { %3394 = vst [vmem:[#allocation4 + $0x90] sm:$0x3f] %v3376_v1 }
 0x627   :  { %v3378_v4 = vsel %vm2153_vm13, %v3373_v48, %v3377_v3  ;;  %v3628_v6 = vsel %vm2338_vm14, %v3623_v49, %v3627_v58  ;;  %4561 = vmatpush2.bf16.msra.mxu1 %v8646_v25  ;;  %v4149_v14 = vld [vmem:[#allocation4 + $0xa8] sm:$0xff]  ;;  %v4143_v18 = vld [vmem:[#allocation4 + $0x78] sm:$0xff] }
 0x628   :  { %3396 = vst.msk [vmem:[#allocation4 + $0x98] sm:$0x3f] %vm3395_vm9, %v3378_v4  ;;  %4562 = vmatprep.subr.bf16.mxu1 %v8654_v26  ;;  %v8595_v25 = vld [vmem:[%s11770_s12 + $0x160] ss:$8 sps:$4 sm:$0xff]  }
 0x629   :  { %3645 = vst.msk [vmem:[#allocation4 + $0xc8] sm:$0xff] %vm2888_vm1, %v3628_v6 }
 0x62b   :  { %4563 = vmatpush2.bf16.msra.mxu1 %v8652_v27  ;;  %v4151_v56 = vld [vmem:[#allocation4 + $0xb8] sm:$0xff]  ;;  %v4145_v17 = vld [vmem:[#allocation4 + $0x88] sm:$0xff] }
 0x62c   :  { %4564 = vmatprep.subr.bf16.mxu1 %v8660_v28  ;;  %v4115_v27 = vld [vmem:[%s11769_s10 + $0x18] sm:$0xff] }
 0x62d   :  { %v4146_v16 = vld [vmem:[#allocation4 + $0x90] sm:$0xff]  ;;  %v8603_v28 = vld [vmem:[%s11770_s12 + $0x154] ss:$8 sps:$4 sm:$0xff]  }
 0x62f   :  { %4565 = vmatpush2.bf16.msra.mxu1 %v8658_v36  ;;  %v4147_v15 = vld [vmem:[#allocation4 + $0x98] sm:$0xff] }
 0x630   :  { %v4153_v13 = vld [vmem:[#allocation4 + $0xc8] sm:$0xff]  ;;  %v8607_v36 = vld [vmem:[%s11770_s12 + $0x140] ss:$8 sps:$4 sm:$0xff]  }
 0x64b   :  { %v3837_v29 = vpop.f32.mrf.mxu0  ;;  %v4055_v30 = vpop.f32.mrf.mxu1 }
 0x64c   :  { %v4082_v31 = vrot.slane %v4055_v30, 6  ;;  %v8601_v30 = vld [vmem:[%s11770_s12 + $0x150] ss:$8 sps:$4 sm:$0xff]  }
 0x64d   :  { %v3839_v34 = vpop.f32.mrf.mxu0  ;;  %v4057_v35 = vpop.f32.mrf.mxu1 }
 0x64e   :  { %4104 = vst [vmem:[#allocation4 + $0x100] sm:$0xfc] %v4082_v31  ;;  %3857 = vst.msk [vmem:[#allocation4 + $0xd8] sm:$0xff] %vm2888_vm1, %v3839_v34  ;;  %v4083_v37 = vrot.slane %v4057_v35, 6  ;;  %v8609_v34 = vld [vmem:[%s11770_s12 + $0x144] ss:$8 sps:$4 sm:$0xff]  }
 0x64f   :  { %v3841_v38 = vpop.f32.mrf.mxu0  ;;  %v4059_v39 = vpop.f32.mrf.mxu1  ;;  %v4116_v35 = vld [vmem:[%s11769_s10 + $0x20] sm:$0xff] }
 0x650   :  { %4105 = vst.msk [vmem:[#allocation4 + $0x108] sm:$0xfc] %vm3138_vm2, %v4083_v37  ;;  %v4084_v41 = vrot.slane %v4059_v39, 6  ;;  %v4118_v39 = vld [vmem:[%s11769_s10 + $0x30] sm:$0xff] }
 0x651   :  { %v3843_v43 = vpop.f32.mrf.mxu0  ;;  %v4061_v44 = vpop.f32.mrf.mxu1 }
 0x652   :  { %v10570_v45 = vsel %vm1538_vm4, %v4082_v31, %v4084_v41  ;;  %3859 = vst.msk [vmem:[#allocation4 + $0xe8] sm:$0xff] %vm2888_vm1, %v3843_v43  ;;  %v4086_v48 = vrot.slane %v4061_v44, 6  ;;  %v4117_v31 = vld [vmem:[%s11769_s10 + $0x28] sm:$0xff] }
 0x653   :  { %v3847_v49 = vpop.f32.mrf.mxu0  ;;  %v4065_v52 = vpop.f32.mrf.mxu1  ;;  %v4121_v43 = vld [vmem:[%s11769_s10 + $0x48] sm:$0xff] }
 0x654   :  { %v4087_v54 = vsel %vm1538_vm4, %v4083_v37, %v4086_v48  ;;  %v4088_v55 = vrot.slane %v4065_v52, 6  ;;  %v4119_v37 = vld [vmem:[%s11769_s10 + $0x38] sm:$0xff]  ;;  %v8621_v44 = vld [vmem:[%s11770_s12 + $0x124] ss:$8 sps:$4 sm:$0xff]  }
 0x655   :  { %4107 = vst.msk [vmem:[#allocation4 + $0x118] sm:$0xff] %vm2888_vm1, %v4087_v54  ;;  %v3849_v57 = vpop.f32.mrf.mxu0  ;;  %v4067_v61 = vpop.f32.mrf.mxu1  ;;  %v4155_v12 = vld [vmem:[#allocation4 + $0xd8] sm:$0xff]  ;;  %v8627_v52 = vld [vmem:[%s11770_s12 + $0x114] ss:$8 sps:$4 sm:$0xff]  }
 0x656   :  { %v10576_v60 = vsel %vm1538_vm4, %v4084_v41, %v4088_v55  ;;  %3861 = vst.msk [vmem:[#allocation4 + $0xf8] sm:$0xff] %vm2888_vm1, %v3849_v57  ;;  %v4090_v11 = vrot.slane %v4067_v61, 6  ;;  %v8613_v41 = vld [vmem:[%s11770_s12 + $0x130] ss:$8 sps:$4 sm:$0xff]   ;;  %v4125_v57 = vld [vmem:[%s11769_s10 + $0x68] sm:$0xff] }
 0x657   :  { %v3851_v50 = vpop.f32.mrf.mxu0  ;;  %v4069_v10 = vpop.f32.mrf.mxu1  ;;  %v4122_v54 = vld [vmem:[%s11769_s10 + $0x50] sm:$0xff]  ;;  %v8633_v61 = vld [vmem:[%s11770_s12 + $0x104] ss:$8 sps:$4 sm:$0xff]  }
 0x658   :  { %v4091_v63 = vsel %vm1538_vm4, %v4086_v48, %v4090_v11  ;;  %3862 = vst [vmem:[#allocation4 + $0x100] sm:$0x3] %v3851_v50  ;;  %v4092_v1 = vrot.slane %v4069_v10, 6  ;;  %v8619_v48 = vld [vmem:[%s11770_s12 + $0x120] ss:$8 sps:$4 sm:$0xff]  }
 0x659   :  { %4109 = vst.msk [vmem:[#allocation4 + $0x128] sm:$0xff] %vm2888_vm1, %v4091_v63  ;;  %v3853_v3 = vpop.f32.mrf.mxu0  ;;  %v4071_v58 = vpop.f32.mrf.mxu1  ;;  %v4157_v9 = vld [vmem:[#allocation4 + $0xe8] sm:$0xff]  ;;  %v4126_v63 = vld [vmem:[%s11769_s10 + $0x70] sm:$0xf] }
 0x65a   :  { %v4093_v4 = vsel %vm1538_vm4, %v4088_v55, %v4092_v1  ;;  %3863 = vst.msk [vmem:[#allocation4 + $0x108] sm:$0x3] %vm2895_vm3, %v3853_v3  ;;  %v4094_v6 = vrot.slane %v4071_v58, 6  ;;  %v8625_v55 = vld [vmem:[%s11770_s12 + $0x110] ss:$8 sps:$4 sm:$0xff]  }
 0x65b   :  { %4110 = vst [vmem:[#allocation4 + $0x130] sm:$0xf] %v4093_v4  ;;  %v4127_v50 = vld [vmem:[%s11769_s10 + $0x78] sm:$0xf]  ;;  %v8639_v10 = vld [vmem:[%s11770_s12 + $0xf4] ss:$8 sps:$4 sm:$0xff]  }
 0x65c   :  { %v4095_v7 = vsel %vm1538_vm4, %v4090_v11, %v4094_v6  ;;  %v4163_v24 = vld [vmem:[#allocation4 + $0x118] sm:$0xff]  ;;  %v8637_v1 = vld [vmem:[%s11770_s12 + $0xf0] ss:$8 sps:$4 sm:$0xff]   ;;  %v8645_v3 = vld [vmem:[%s11770_s12 + $0x1d4] ss:$8 sps:$4 sm:$0xff]   ;;  %vm4614_vm4 = vcmask 523264  }
 0x65d   :  { %4111 = vst.msk [vmem:[#allocation4 + $0x138] sm:$0xf] %vm3145_vm5, %v4095_v7  ;;  %v4159_v8 = vld [vmem:[#allocation4 + $0xf8] sm:$0xff]  ;;  %v8643_v58 = vld [vmem:[%s11770_s12 + $0x1d0] ss:$8 sps:$4 sm:$0xff]  }
 0x65e   :  { %4211 = vmatprep.subr.mxu0 %v4159_v8  ;;  %v8631_v11 = vld [vmem:[%s11770_s12 + $0x100] ss:$8 sps:$4 sm:$0xff]   ;;  %v8651_v4 = vld [vmem:[%s11770_s12 + $0x1c4] ss:$8 sps:$4 sm:$0xff]   ;;  %v8657_v7 = vld [vmem:[%s11770_s12 + $0x1b4] ss:$8 sps:$4 sm:$0xff]  }
 0x65f   :  { %4212 = vmatpush1.msra.mxu0 %v3847_v49  ;;  %v4160_v26 = vld [vmem:[#allocation4 + $0x100] sm:$0xff]  ;;  %v4123_v49 = vld [vmem:[%s11769_s10 + $0x58] sm:$0xff]  ;;  %v8649_v6 = vld [vmem:[%s11770_s12 + $0x1c0] ss:$8 sps:$4 sm:$0xff]  }
 0x660   :  { %4213 = vmatprep.subr.mxu0 %v4157_v9  ;;  %v4165_v23 = vld [vmem:[#allocation4 + $0x128] sm:$0xff]  ;;  %v8663_v9 = vld [vmem:[%s11770_s12 + $0x1a4] ss:$8 sps:$4 sm:$0xff]  }
 0x661   :  { %4214 = vmatpush1.msra.mxu0 %v3841_v38  ;;  %v8615_v38 = vld [vmem:[%s11770_s12 + $0x134] ss:$8 sps:$4 sm:$0xff]   ;;  %v8655_v8 = vld [vmem:[%s11770_s12 + $0x1b0] ss:$8 sps:$4 sm:$0xff]  }
 0x662   :  { %4215 = vmatprep.subr.mxu0 %v4155_v12  ;;  %v8661_v12 = vld [vmem:[%s11770_s12 + $0x1a0] ss:$8 sps:$4 sm:$0xff]  }
 0x663   :  { %4216 = vmatpush1.msra.mxu0 %v3837_v29  ;;  %v4114_v29 = vld [vmem:[%s11769_s10 + $0x10] sm:$0xff] }
 0x664   :  { %4217 = vmatprep.subr.mxu0 %v4153_v13  ;;  %v8666_v13 = vld [vmem:[%s11770_s12 + $0xa4] ss:$8 sps:$4 sm:$0xff]  }
 0x665   :  { %4218 = vmatpush1.msra.mxu0 %v10496_v2  ;;  %v4139_v2 = vld [vmem:[#allocation4 + $0x58] sm:$0xff]  ;;  %4566 = vmatprep.subr.bf16.mxu1 %v8666_v13  ;;  %v8705_v13 = vld [vmem:[%s11770_s12 + $0x314] ss:$8 sps:$4 sm:$0xff]  }
 0x666   :  { %4219 = vmatprep.subr.mxu0 %v4151_v56  ;;  %v8669_v56 = vld [vmem:[%s11770_s12 + $0x194] ss:$8 sps:$4 sm:$0xff]  }
 0x667   :  { %4220 = vmatpush1.msra.mxu0 %v10482_v47  ;;  %v4137_v47 = vld [vmem:[#allocation4 + $0x48] sm:$0xff] }
 0x668   :  { %4221 = vmatprep.subr.mxu0 %v4149_v14  ;;  %v8664_v14 = vld [vmem:[%s11770_s12 + $0xa0] ss:$8 sps:$4 sm:$0xff]  }
 0x669   :  { %4222 = vmatpush1.msra.mxu0 %v10472_v33  ;;  %v4135_v33 = vld [vmem:[#allocation4 + $0x38] sm:$0xff]  ;;  %4567 = vmatpush2.bf16.msra.mxu1 %v8664_v14 }
 0x66a   :  { %4223 = vmatprep.subr.mxu0 %v4147_v15  ;;  %v8667_v15 = vld [vmem:[%s11770_s12 + $0x190] ss:$8 sps:$4 sm:$0xff]  }
 0x66b   :  { %4224 = vmatpush1.msra.mxu0 %v4146_v16  ;;  %v8672_v16 = vld [vmem:[%s11770_s12 + $0x94] ss:$8 sps:$4 sm:$0xff]  }
 0x66c   :  { %4225 = vmatprep.subr.mxu0 %v4145_v17  ;;  %v8675_v17 = vld [vmem:[%s11770_s12 + $0x184] ss:$8 sps:$4 sm:$0xff]   ;;  %4568 = vmatprep.subr.bf16.mxu1 %v8672_v16 }
 0x66d   :  { %4226 = vmatpush1.msra.mxu0 %v10479_v46  ;;  %v4133_v46 = vld [vmem:[#allocation4 + $0x28] sm:$0xff] }
 0x66e   :  { %4227 = vmatprep.subr.mxu0 %v4143_v18  ;;  %v8670_v18 = vld [vmem:[%s11770_s12 + $0x90] ss:$8 sps:$4 sm:$0xff]  }
 0x66f   :  { %4228 = vmatpush1.msra.mxu0 %v10469_v53  ;;  %v4129_v53 = vld [vmem:[#allocation4 + $0x8] sm:$0xff]  ;;  %4569 = vmatpush2.bf16.msra.mxu1 %v8670_v18 }
 0x670   :  { %4229 = vmatprep.subr.mxu0 %v4141_v19  ;;  %v8673_v19 = vld [vmem:[%s11770_s12 + $0x180] ss:$8 sps:$4 sm:$0xff]  }
 0x671   :  { %4230 = vmatpush1.msra.mxu0 %v4140_v20  ;;  %v8678_v20 = vld [vmem:[%s11770_s12 + $0x84] ss:$8 sps:$4 sm:$0xff]  }
 0x672   :  { %4231 = vmatprep.subr.mxu0 %v4139_v2  ;;  %v8681_v2 = vld [vmem:[%s11770_s12 + $0x174] ss:$8 sps:$4 sm:$0xff]   ;;  %4570 = vmatprep.subr.bf16.mxu1 %v8678_v20  ;;  %v8703_v20 = vld [vmem:[%s11770_s12 + $0x310] ss:$8 sps:$4 sm:$0xff]  }
 0x673   :  { %4232 = vmatpush1.msra.mxu0 %v10455_v5  ;;  %v4167_v5 = vld [vmem:[#allocation4 + $0x138] sm:$0xf] }
 0x674   :  { %4233 = vmatprep.subr.mxu0 %v4137_v47  ;;  %v8676_v47 = vld [vmem:[%s11770_s12 + $0x80] ss:$8 sps:$4 sm:$0xff]  }
 0x675   :  { %4234 = vmatpush1.msra.mxu0 %v10447_v62  ;;  %v4166_v62 = vld [vmem:[#allocation4 + $0x130] sm:$0xf]  ;;  %4571 = vmatpush2.bf16.msra.mxu1 %v8676_v47  ;;  %v8708_v47 = vld [vmem:[%s11770_s12 + $0x214] ss:$8 sps:$4 sm:$0xff]  }
 0x676   :  { %4235 = vmatprep.subr.mxu0 %v4135_v33  ;;  %v8679_v33 = vld [vmem:[%s11770_s12 + $0x170] ss:$8 sps:$4 sm:$0xff]  }
 0x677   :  { %4236 = vmatpush1.msra.mxu0 %v4134_v21  ;;  %v8684_v21 = vld [vmem:[%s11770_s12 + $0x254] ss:$8 sps:$4 sm:$0xff]  }
 0x678   :  { %4237 = vmatprep.subr.mxu0 %v4133_v46  ;;  %v8687_v46 = vld [vmem:[%s11770_s12 + $0x344] ss:$8 sps:$4 sm:$0xff]   ;;  %5145 = vmatprep.subr.bf16.mxu1 %v8684_v21 }
 0x679   :  { %4238 = vmatpush1.msra.mxu0 %v10450_v0  ;;  %v4161_v0 = vld [vmem:[#allocation4 + $0x108] sm:$0xff] }
 0x67a   :  { %4239 = vmatprep.subr.mxu0 %v4131_v22  ;;  %v4168_v22 = vld [vmem:[%s11771_s11] sm:$0x3] }
 0x67b   :  { %4240 = vmatpush1.msra.mxu0 %v10443_v59  ;;  %v8597_v59 = vld [vmem:[%s11770_s12 + $0x164] ss:$8 sps:$4 sm:$0xff]  }
 0x67c   :  { %4241 = vmatprep.subr.mxu0 %v4129_v53 }
 0x67d   :  { %4242 = vmatpush1.msra.mxu0 %v10440_v51  ;;  %v4112_v51 = vld [vmem:[%s11769_s10] sm:$0xff] }
 0x67e   :  { %7539 = vmatprep.subr.msk.mxu0 %vm2153_vm13, %v4167_v5  ;;  %v10769_v5 = vrot.slane %v4168_v22, %v9251_v42 }
 0x67f   :  { %7540 = vmatpush2.msk.msra.mxu0 %vm2153_vm13, %v4166_v62  ;;  %v10772_v62 = vrot.slane %v4168_v22, %v9246_v40 }
 0x680   :  { %4269 = vmatprep.subr.mxu0 %v4165_v23 }
 0x681   :  { %4270 = vmatpush2.msra.mxu0 %v10576_v60  ;;  %v4124_v60 = vld [vmem:[%s11769_s10 + $0x60] sm:$0xff] }
 0x682   :  { %4271 = vmatprep.subr.mxu0 %v4163_v24 }
 0x683   :  { %4272 = vmatpush2.msra.mxu0 %v10570_v45  ;;  %v4120_v45 = vld [vmem:[%s11769_s10 + $0x40] sm:$0xff] }
 0x684   :  { %4273 = vmatprep.subr.mxu0 %v4161_v0 }
 0x685   :  { %4274 = vmatpush2.msra.mxu0 %v4160_v26 }
 0x686   :  { %4276 = vmatmul.mubr.f32.vlgmr.msra.gmra.mxu0 %v4112_v51  ;;  %4812 = vmatprep.subr.bf16.mxu0 %v8597_v59 }
 0x687   :  { %7542 = vmatprep.mubr.msk.f32.mxu0 %vm4180_vm6, %v4115_v27  ;;  %4813 = vmatpush1.bf16.msra.mxu0 %v8595_v25 }
 0x688   :  { %4814 = vmatprep.subr.bf16.mxu0 %v8603_v28 }
 0x68a   :  { %4282 = vmatmul.mubr.f32.gmra.mxu0 %v4114_v29 }
 0x68b   :  { %7543 = vmatprep.mubr.msk.f32.mxu0 %vm4180_vm6, %v4117_v31  ;;  %4815 = vmatpush1.bf16.msra.mxu0 %v8601_v30 }
 0x68c   :  { %4816 = vmatprep.subr.bf16.mxu0 %v8609_v34 }
 0x68e   :  { %4288 = vmatmul.mubr.f32.gmra.mxu0 %v4116_v35 }
 0x68f   :  { %7544 = vmatprep.mubr.msk.f32.mxu0 %vm4180_vm6, %v4119_v37  ;;  %4817 = vmatpush1.bf16.msra.mxu0 %v8607_v36 }
 0x690   :  { %4818 = vmatprep.subr.bf16.mxu0 %v8615_v38  ;;  %v8682_v38 = vld [vmem:[%s11770_s12 + $0x250] ss:$8 sps:$4 sm:$0xff]  }
 0x692   :  { %4294 = vmatmul.mubr.f32.gmra.mxu0 %v4118_v39  ;;  %v8685_v39 = vld [vmem:[%s11770_s12 + $0x340] ss:$8 sps:$4 sm:$0xff]  }
 0x693   :  { %7545 = vmatprep.mubr.msk.f32.mxu0 %vm4180_vm6, %v4121_v43  ;;  %4819 = vmatpush1.bf16.msra.mxu0 %v8613_v41 }
 0x694   :  { %4820 = vmatprep.subr.bf16.mxu0 %v8621_v44  ;;  %v8690_v44 = vld [vmem:[%s11770_s12 + $0x244] ss:$8 sps:$4 sm:$0xff]  }
 0x696   :  { %4300 = vmatmul.mubr.f32.gmra.mxu0 %v4120_v45  ;;  %v8693_v45 = vld [vmem:[%s11770_s12 + $0x334] ss:$8 sps:$4 sm:$0xff]  }
 0x697   :  { %7546 = vmatprep.mubr.msk.f32.mxu0 %vm4180_vm6, %v4123_v49  ;;  %4821 = vmatpush1.bf16.msra.mxu0 %v8619_v48 }
 0x698   :  { %4822 = vmatprep.subr.bf16.mxu0 %v8627_v52 }
 0x69a   :  { %4306 = vmatmul.mubr.f32.gmra.mxu0 %v4122_v54 }
 0x69b   :  { %7547 = vmatprep.mubr.msk.f32.mxu0 %vm4180_vm6, %v4125_v57  ;;  %4823 = vmatpush1.bf16.msra.mxu0 %v8625_v55 }
 0x69c   :  { %4824 = vmatprep.subr.bf16.mxu0 %v8633_v61  ;;  %v8688_v61 = vld [vmem:[%s11770_s12 + $0x240] ss:$8 sps:$4 sm:$0xff]  }
 0x69e   :  { %4312 = vmatmul.mubr.f32.gmra.mxu0 %v4124_v60  ;;  %v8691_v60 = vld [vmem:[%s11770_s12 + $0x330] ss:$8 sps:$4 sm:$0xff]  }
 0x69f   :  { %7548 = vmatprep.mubr.msk.f32.mxu0 %vm4180_vm6, %v4127_v50  ;;  %4825 = vmatpush1.bf16.msra.mxu0 %v8631_v11  ;;  %v8696_v50 = vld [vmem:[%s11770_s12 + $0x234] ss:$8 sps:$4 sm:$0xff]  }
 0x6a0   :  { %4826 = vmatprep.subr.bf16.mxu0 %v8639_v10  ;;  %v8699_v10 = vld [vmem:[%s11770_s12 + $0x324] ss:$8 sps:$4 sm:$0xff]  }
 0x6a2   :  { %4318 = vmatmul.mubr.f32.gmra.mxu0 %v4126_v63 }
 0x6a3   :  { %4827 = vmatpush1.bf16.msra.mxu0 %v8637_v1 }
 0x6a4   :  { %4830 = vmatprep.subr.bf16.mxu0 %v8645_v3 }
 0x6a7   :  { %4831 = vmatpush2.bf16.msra.mxu0 %v8643_v58 }
 0x6a8   :  { %4832 = vmatprep.subr.bf16.mxu0 %v8651_v4 }
 0x6ab   :  { %4833 = vmatpush2.bf16.msra.mxu0 %v8649_v6 }
 0x6ac   :  { %4834 = vmatprep.subr.bf16.mxu0 %v8657_v7  ;;  %v8694_v7 = vld [vmem:[%s11770_s12 + $0x230] ss:$8 sps:$4 sm:$0xff]  }
 0x6af   :  { %4835 = vmatpush2.bf16.msra.mxu0 %v8655_v8  ;;  %v8697_v8 = vld [vmem:[%s11770_s12 + $0x320] ss:$8 sps:$4 sm:$0xff]  }
 0x6b0   :  { %4836 = vmatprep.subr.bf16.mxu0 %v8663_v9 }
 0x6b3   :  { %4837 = vmatpush2.bf16.msra.mxu0 %v8661_v12  ;;  %v8702_v12 = vld [vmem:[%s11770_s12 + $0x224] ss:$8 sps:$4 sm:$0xff]  }
 0x6b4   :  { %4838 = vmatprep.subr.bf16.mxu0 %v8669_v56 }
 0x6b7   :  { %4839 = vmatpush2.bf16.msra.mxu0 %v8667_v15 }
 0x6b8   :  { %4840 = vmatprep.subr.bf16.mxu0 %v8675_v17 }
 0x6bb   :  { %4841 = vmatpush2.bf16.msra.mxu0 %v8673_v19  ;;  %v8700_v19 = vld [vmem:[%s11770_s12 + $0x220] ss:$8 sps:$4 sm:$0xff]  }
 0x6bc   :  { %4842 = vmatprep.subr.bf16.mxu0 %v8681_v2 }
 0x6bf   :  { %4843 = vmatpush2.bf16.msra.mxu0 %v8679_v33  ;;  %v8711_v33 = vld [vmem:[%s11770_s12 + $0x304] ss:$8 sps:$4 sm:$0xff]  }
 0x6c0   :  { %5415 = vmatprep.subr.bf16.mxu0 %v8687_v46 }
 0x746   :  { %v4277_v53 = vpop.f32.mrf.mxu0 }
 0x747   :  { %v4278_v51 = vadd.f32 %v4277_v53, %v10772_v62 }
 0x748   :  { %v4279_v23 = vpop.f32.mrf.mxu0 }
 0x749   :  { %v4280_v59 = vadd.f32 %v4279_v23, %v10769_v5  ;;  %v4324_v31 = vmax.f32 %v4278_v51, 0.0 }
 0x74a   :  { %v4283_v24 = vpop.f32.mrf.mxu0 }
 0x74b   :  { %v4284_v0 = vadd.f32 %v4283_v24, %v10772_v62  ;;  %v4325_v29 = vmax.f32 %v4280_v59, 0.0  ;;  %v8706_v59 = vld [vmem:[%s11770_s12 + $0x210] ss:$8 sps:$4 sm:$0xff]  }
 0x74c   :  { %v4285_v25 = vpop.f32.mrf.mxu0 }
 0x74d   :  { %v4286_v26 = vadd.f32 %v4285_v25, %v10769_v5  ;;  %v4326_v27 = vmax.f32 %v4284_v0, 0.0  ;;  %v8709_v0 = vld [vmem:[%s11770_s12 + $0x300] ss:$8 sps:$4 sm:$0xff]   ;;  %v8714_v25 = vld [vmem:[%s11770_s12 + $0x204] ss:$8 sps:$4 sm:$0xff]  }
 0x74e   :  { %v4289_v28 = vpop.f32.mrf.mxu0 }
 0x74f   :  { %v4327_v30 = vmax.f32 %v4286_v26, 0.0  ;;  %v4290_v34 = vadd.f32 %v4289_v28, %v10772_v62  ;;  %v10788_v41 = vpack.c.bf16 %v4326_v27, %v4324_v31  ;;  %v8717_v26 = vld [vmem:[%s11770_s12 + $0x2f4] ss:$8 sps:$4 sm:$0xff]  }
 0x750   :  { %v4291_v35 = vpop.f32.mrf.mxu0 }
 0x751   :  { %v10779_v36 = vpack.c.bf16 %v4327_v30, %v4325_v29  ;;  %v4292_v37 = vadd.f32 %v4291_v35, %v10769_v5  ;;  %v4328_v49 = vmax.f32 %v4290_v34, 0.0  ;;  %v8715_v35 = vld [vmem:[%s11770_s12 + $0x2f0] ss:$8 sps:$4 sm:$0xff]  }
 0x752   :  { %v4295_v43 = vpop.f32.mrf.mxu0 }
 0x753   :  { %v4296_v48 = vadd.f32 %v4295_v43, %v10772_v62  ;;  %7579 = vmatprep.mubr.msk.bf16.mxu1 %vm2888_vm1, %v10779_v36  ;;  %7643 = vmatprep.mubr.msk.bf16.mxu0 %vm2888_vm1, %v10779_v36  ;;  %v4329_v54 = vmax.f32 %v4292_v37, 0.0  ;;  %v8720_v37 = vld [vmem:[%s11770_s12 + $0x1f4] ss:$8 sps:$4 sm:$0xff]  }
 0x754   :  { %v4297_v52 = vpop.f32.mrf.mxu0  ;;  %4573 = vmatmul.mubr.bf16.vlgmr.msra.gmra.mxu1 %v10788_v41  ;;  %4845 = vmatmul.mubr.bf16.vlgmr.msra.gmra.mxu0 %v10788_v41 }
 0x755   :  { %v4330_v55 = vmax.f32 %v4296_v48, 0.0  ;;  %v4298_v57 = vadd.f32 %v4297_v52, %v10769_v5  ;;  %5146 = vmatpush1.bf16.msra.mxu1 %v8682_v38  ;;  %5416 = vmatpush1.bf16.msra.mxu0 %v8685_v39  ;;  %v8726_v48 = vld [vmem:[%s11770_s12 + $0x1e4] ss:$8 sps:$4 sm:$0xff]   ;;  %v8724_v52 = vld [vmem:[%s11770_s12 + $0x1e0] ss:$8 sps:$4 sm:$0xff]  }
 0x756   :  { %v4301_v11 = vpop.f32.mrf.mxu0  ;;  %5147 = vmatprep.subr.bf16.mxu1 %v8690_v44  ;;  %5417 = vmatprep.subr.bf16.mxu0 %v8693_v45  ;;  %v8718_v44 = vld [vmem:[%s11770_s12 + $0x1f0] ss:$8 sps:$4 sm:$0xff]   ;;  %v8721_v45 = vld [vmem:[%s11770_s12 + $0x2e0] ss:$8 sps:$4 sm:$0xff]  }
 0x757   :  { %v4331_v63 = vmax.f32 %v4298_v57, 0.0  ;;  %v10816_v1 = vpack.c.bf16 %v4330_v55, %v4328_v49  ;;  %v4302_v3 = vadd.f32 %v4301_v11, %v10772_v62  ;;  %v8729_v49 = vld [vmem:[%s11770_s12 + $0x2d4] ss:$8 sps:$4 sm:$0xff]   ;;  %v8732_v55 = vld [vmem:[%s11770_s12 + $0x2c4] ss:$8 sps:$4 sm:$0xff]  }
 0x758   :  { %v4303_v58 = vpop.f32.mrf.mxu0  ;;  %v8735_v57 = vld [vmem:[%s11770_s12 + $0x3b4] ss:$8 sps:$4 sm:$0xff]  }
 0x759   :  { %v10819_v4 = vpack.c.bf16 %v4331_v63, %v4329_v54  ;;  %v4304_v6 = vadd.f32 %v4303_v58, %v10769_v5  ;;  %5148 = vmatpush1.bf16.msra.mxu1 %v8688_v61  ;;  %5418 = vmatpush1.bf16.msra.mxu0 %v8691_v60  ;;  %v4332_v14 = vmax.f32 %v4302_v3, 0.0  ;;  %v8727_v54 = vld [vmem:[%s11770_s12 + $0x2d0] ss:$8 sps:$4 sm:$0xff]   ;;  %v8730_v61 = vld [vmem:[%s11770_s12 + $0x2c0] ss:$8 sps:$4 sm:$0xff]  }
 0x75a   :  { %v4307_v9 = vpop.f32.mrf.mxu0  ;;  %5149 = vmatprep.subr.bf16.mxu1 %v8696_v50  ;;  %5419 = vmatprep.subr.bf16.mxu0 %v8699_v10  ;;  %v8733_v60 = vld [vmem:[%s11770_s12 + $0x3b0] ss:$8 sps:$4 sm:$0xff]   ;;  %v8738_v11 = vld [vmem:[%s11770_s12 + $0x2b4] ss:$8 sps:$4 sm:$0xff]   ;;  %v8741_v50 = vld [vmem:[%s11770_s12 + $0x3a4] ss:$8 sps:$4 sm:$0xff]  }
 0x75b   :  { %v4308_v56 = vadd.f32 %v4307_v9, %v10772_v62  ;;  %7580 = vmatprep.mubr.msk.bf16.mxu1 %vm2888_vm1, %v10819_v4  ;;  %7644 = vmatprep.mubr.msk.bf16.mxu0 %vm2888_vm1, %v10819_v4  ;;  %v4333_v16 = vmax.f32 %v4304_v6, 0.0  ;;  %v8736_v10 = vld [vmem:[%s11770_s12 + $0x2b0] ss:$8 sps:$4 sm:$0xff]   ;;  %v8739_v63 = vld [vmem:[%s11770_s12 + $0x3a0] ss:$8 sps:$4 sm:$0xff]  }
 0x75c   :  { %v4309_v15 = vpop.f32.mrf.mxu0  ;;  %4583 = vmatmul.mubr.bf16.gmra.mxu1 %v10816_v1  ;;  %4855 = vmatmul.mubr.bf16.gmra.mxu0 %v10816_v1  ;;  %v8744_v3 = vld [vmem:[%s11770_s12 + $0x2a4] ss:$8 sps:$4 sm:$0xff]   ;;  %v8747_v58 = vld [vmem:[%s11770_s12 + $0x394] ss:$8 sps:$4 sm:$0xff]   ;;  %v8742_v6 = vld [vmem:[%s11770_s12 + $0x2a0] ss:$8 sps:$4 sm:$0xff]  }
 0x75d   :  { %v4334_v17 = vmax.f32 %v4308_v56, 0.0  ;;  %v4310_v18 = vadd.f32 %v4309_v15, %v10769_v5  ;;  %5150 = vmatpush1.bf16.msra.mxu1 %v8694_v7  ;;  %5420 = vmatpush1.bf16.msra.mxu0 %v8697_v8  ;;  %v8745_v7 = vld [vmem:[%s11770_s12 + $0x390] ss:$8 sps:$4 sm:$0xff]   ;;  %v8750_v8 = vld [vmem:[%s11770_s12 + $0x294] ss:$8 sps:$4 sm:$0xff]  }
 0x75e   :  { %v4313_v2 = vpop.f32.mrf.mxu0  ;;  %5151 = vmatprep.subr.bf16.mxu1 %v8702_v12  ;;  %5421 = vmatprep.subr.bf16.mxu0 %v8705_v13  ;;  %v8753_v9 = vld [vmem:[%s11770_s12 + $0x384] ss:$8 sps:$4 sm:$0xff]   ;;  %v8748_v12 = vld [vmem:[%s11770_s12 + $0x290] ss:$8 sps:$4 sm:$0xff]   ;;  %v8751_v13 = vld [vmem:[%s11770_s12 + $0x380] ss:$8 sps:$4 sm:$0xff]  }
 0x75f   :  { %v4335_v21 = vmax.f32 %v4310_v18, 0.0  ;;  %v10854_v46 = vpack.c.bf16 %v4334_v17, %v4332_v14  ;;  %v4314_v22 = vadd.f32 %v4313_v2, %v10772_v62  ;;  %v8756_v56 = vld [vmem:[%s11770_s12 + $0x284] ss:$8 sps:$4 sm:$0xff]   ;;  %v8759_v14 = vld [vmem:[%s11770_s12 + $0x374] ss:$8 sps:$4 sm:$0xff]  }
 0x760   :  { %v4315_v53 = vpop.f32.mrf.mxu0  ;;  %v8754_v15 = vld [vmem:[%s11770_s12 + $0x280] ss:$8 sps:$4 sm:$0xff]   ;;  %v8762_v17 = vld [vmem:[%s11770_s12 + $0x274] ss:$8 sps:$4 sm:$0xff]   ;;  %v8765_v18 = vld [vmem:[%s11770_s12 + $0x364] ss:$8 sps:$4 sm:$0xff]  }
 0x761   :  { %v10857_v23 = vpack.c.bf16 %v4335_v21, %v4333_v16  ;;  %v4316_v24 = vadd.f32 %v4315_v53, %v10769_v5  ;;  %5152 = vmatpush1.bf16.msra.mxu1 %v8700_v19  ;;  %5422 = vmatpush1.bf16.msra.mxu0 %v8703_v20  ;;  %v4336_v28 = vmax.f32 %v4314_v22, 0.0  ;;  %v8757_v16 = vld [vmem:[%s11770_s12 + $0x370] ss:$8 sps:$4 sm:$0xff]   ;;  %v8763_v20 = vld [vmem:[%s11770_s12 + $0x360] ss:$8 sps:$4 sm:$0xff]  }
 0x762   :  { %v4319_v51 = vpop.f32.mrf.mxu0  ;;  %5153 = vmatprep.subr.bf16.mxu1 %v8708_v47  ;;  %5423 = vmatprep.subr.bf16.mxu0 %v8711_v33  ;;  %v8760_v19 = vld [vmem:[%s11770_s12 + $0x270] ss:$8 sps:$4 sm:$0xff]   ;;  %v8768_v2 = vld [vmem:[%s11770_s12 + $0x264] ss:$8 sps:$4 sm:$0xff]   ;;  %v8771_v47 = vld [vmem:[%s11770_s12 + $0x354] ss:$8 sps:$4 sm:$0xff]  }
 0x763   :  { %v4320_v27 = vadd.f32 %v4319_v51, %v10772_v62  ;;  %7581 = vmatprep.mubr.msk.bf16.mxu1 %vm2888_vm1, %v10857_v23  ;;  %7645 = vmatprep.mubr.msk.bf16.mxu0 %vm2888_vm1, %v10857_v23  ;;  %v4337_v30 = vmax.f32 %v4316_v24, 0.0  ;;  %v8712_v62 = vld [vmem:[%s11770_s12 + $0x200] ss:$8 sps:$4 sm:$0xff]   ;;  %v8769_v21 = vld [vmem:[%s11770_s12 + $0x350] ss:$8 sps:$4 sm:$0xff]  }
 0x764   :  { %v4321_v29 = vpop.f32.mrf.mxu0  ;;  %4593 = vmatmul.mubr.bf16.gmra.mxu1 %v10854_v46  ;;  %4865 = vmatmul.mubr.bf16.gmra.mxu0 %v10854_v46  ;;  %v8766_v33 = vld [vmem:[%s11770_s12 + $0x260] ss:$8 sps:$4 sm:$0xff]   ;;  %v8774_v22 = vld [vmem:[%s11770_s12 + $0x434] ss:$8 sps:$4 sm:$0xff]   ;;  %v8777_v53 = vld [vmem:[%s11770_s12 + $0x524] ss:$8 sps:$4 sm:$0xff]  }
 0x765   :  { %v4338_v31 = vmax.f32 %v4320_v27, 0.0  ;;  %v4322_v34 = vadd.f32 %v4321_v29, %v10769_v5  ;;  %5154 = vmatpush1.bf16.msra.mxu1 %v8706_v59  ;;  %5424 = vmatpush1.bf16.msra.mxu0 %v8709_v0  ;;  %v8723_v5 = vld [vmem:[%s11770_s12 + $0x2e4] ss:$8 sps:$4 sm:$0xff]   ;;  %v8772_v24 = vld [vmem:[%s11770_s12 + $0x430] ss:$8 sps:$4 sm:$0xff]  }
 0x766   :  { %5155 = vmatprep.subr.bf16.mxu1 %v8714_v25  ;;  %5425 = vmatprep.subr.bf16.mxu0 %v8717_v26  ;;  %v8775_v59 = vld [vmem:[%s11770_s12 + $0x520] ss:$8 sps:$4 sm:$0xff]   ;;  %v8780_v0 = vld [vmem:[%s11770_s12 + $0x424] ss:$8 sps:$4 sm:$0xff]   ;;  %v8783_v51 = vld [vmem:[%s11770_s12 + $0x514] ss:$8 sps:$4 sm:$0xff]  }
 0x767   :  { %v4339_v38 = vmax.f32 %v4322_v34, 0.0  ;;  %v10892_v39 = vpack.c.bf16 %v4338_v31, %v4336_v28  ;;  %v8778_v25 = vld [vmem:[%s11770_s12 + $0x420] ss:$8 sps:$4 sm:$0xff]   ;;  %v8781_v26 = vld [vmem:[%s11770_s12 + $0x510] ss:$8 sps:$4 sm:$0xff]  }
 0x768   :  { %v8786_v27 = vld [vmem:[%s11770_s12 + $0x414] ss:$8 sps:$4 sm:$0xff]   ;;  %v8789_v28 = vld [vmem:[%s11770_s12 + $0x504] ss:$8 sps:$4 sm:$0xff]   ;;  %v8784_v29 = vld [vmem:[%s11770_s12 + $0x410] ss:$8 sps:$4 sm:$0xff]  }
 0x769   :  { %v10894_v43 = vpack.c.bf16 %v4339_v38, %v4337_v30  ;;  %5156 = vmatpush1.bf16.msra.mxu1 %v8712_v62  ;;  %5426 = vmatpush1.bf16.msra.mxu0 %v8715_v35  ;;  %v8787_v30 = vld [vmem:[%s11770_s12 + $0x500] ss:$8 sps:$4 sm:$0xff]   ;;  %v8792_v31 = vld [vmem:[%s11770_s12 + $0x404] ss:$8 sps:$4 sm:$0xff]   ;;  %v8795_v34 = vld [vmem:[%s11770_s12 + $0x4f4] ss:$8 sps:$4 sm:$0xff]  }
 0x76a   :  { %5157 = vmatprep.subr.bf16.mxu1 %v8720_v37  ;;  %5427 = vmatprep.subr.bf16.mxu0 %v8723_v5  ;;  %v8790_v62 = vld [vmem:[%s11770_s12 + $0x400] ss:$8 sps:$4 sm:$0xff]   ;;  %v8793_v35 = vld [vmem:[%s11770_s12 + $0x4f0] ss:$8 sps:$4 sm:$0xff]   ;;  %v8798_v37 = vld [vmem:[%s11770_s12 + $0x3f4] ss:$8 sps:$4 sm:$0xff]  }
 0x76b   :  { %7582 = vmatprep.mubr.msk.bf16.mxu1 %vm2888_vm1, %v10894_v43  ;;  %7646 = vmatprep.mubr.msk.bf16.mxu0 %vm2888_vm1, %v10894_v43  ;;  %v8801_v5 = vld [vmem:[%s11770_s12 + $0x4e4] ss:$8 sps:$4 sm:$0xff]   ;;  %v8796_v38 = vld [vmem:[%s11770_s12 + $0x3f0] ss:$8 sps:$4 sm:$0xff]  }
 0x76c   :  { %4603 = vmatmul.mubr.bf16.gmra.mxu1 %v10892_v39  ;;  %4875 = vmatmul.mubr.bf16.gmra.mxu0 %v10892_v39 }
 0x76d   :  { %5158 = vmatpush1.bf16.msra.mxu1 %v8718_v44  ;;  %5428 = vmatpush1.bf16.msra.mxu0 %v8721_v45  ;;  %v8799_v44 = vld [vmem:[%s11770_s12 + $0x4e0] ss:$8 sps:$4 sm:$0xff]   ;;  %v8804_v45 = vld [vmem:[%s11770_s12 + $0x3e4] ss:$8 sps:$4 sm:$0xff]  }
 0x76e   :  { %7707 = vmatprep.mubr.msk.bf16.mxu1 %vm2888_vm1, %v10779_v36  ;;  %7771 = vmatprep.mubr.msk.bf16.mxu0 %vm2888_vm1, %v10779_v36 }
 0x76f   :  { %5159 = vmatprep.subr.bf16.mxu1 %v8726_v48  ;;  %5429 = vmatprep.subr.bf16.mxu0 %v8729_v49  ;;  %v8807_v48 = vld [vmem:[%s11770_s12 + $0x4d4] ss:$8 sps:$4 sm:$0xff]   ;;  %v8802_v49 = vld [vmem:[%s11770_s12 + $0x3e0] ss:$8 sps:$4 sm:$0xff]  }
 0x771   :  { %5160 = vmatpush1.bf16.msra.mxu1 %v8724_v52  ;;  %5430 = vmatpush1.bf16.msra.mxu0 %v8727_v54  ;;  %v8805_v52 = vld [vmem:[%s11770_s12 + $0x4d0] ss:$8 sps:$4 sm:$0xff]   ;;  %v8810_v54 = vld [vmem:[%s11770_s12 + $0x3d4] ss:$8 sps:$4 sm:$0xff]  }
 0x772   :  { %5163 = vmatprep.subr.bf16.mxu1 %v8732_v55  ;;  %5433 = vmatprep.subr.bf16.mxu0 %v8735_v57  ;;  %v8813_v55 = vld [vmem:[%s11770_s12 + $0x4c4] ss:$8 sps:$4 sm:$0xff]   ;;  %v8808_v57 = vld [vmem:[%s11770_s12 + $0x3d0] ss:$8 sps:$4 sm:$0xff]  }
 0x775   :  { %5164 = vmatpush2.bf16.msra.mxu1 %v8730_v61  ;;  %5434 = vmatpush2.bf16.msra.mxu0 %v8733_v60  ;;  %v8811_v61 = vld [vmem:[%s11770_s12 + $0x4c0] ss:$8 sps:$4 sm:$0xff]   ;;  %v8816_v60 = vld [vmem:[%s11770_s12 + $0x3c4] ss:$8 sps:$4 sm:$0xff]  }
 0x776   :  { %5165 = vmatprep.subr.bf16.mxu1 %v8738_v11  ;;  %5435 = vmatprep.subr.bf16.mxu0 %v8741_v50  ;;  %v8819_v11 = vld [vmem:[%s11770_s12 + $0x4b4] ss:$8 sps:$4 sm:$0xff]   ;;  %v8814_v50 = vld [vmem:[%s11770_s12 + $0x3c0] ss:$8 sps:$4 sm:$0xff]  }
 0x779   :  { %5166 = vmatpush2.bf16.msra.mxu1 %v8736_v10  ;;  %5436 = vmatpush2.bf16.msra.mxu0 %v8739_v63  ;;  %v8817_v10 = vld [vmem:[%s11770_s12 + $0x4b0] ss:$8 sps:$4 sm:$0xff]   ;;  %v8822_v63 = vld [vmem:[%s11770_s12 + $0x4a4] ss:$8 sps:$4 sm:$0xff]  }
 0x77a   :  { %5167 = vmatprep.subr.bf16.mxu1 %v8744_v3  ;;  %5437 = vmatprep.subr.bf16.mxu0 %v8747_v58  ;;  %v8820_v3 = vld [vmem:[%s11770_s12 + $0x4a0] ss:$8 sps:$4 sm:$0xff]   ;;  %v8823_v58 = vld [vmem:[%s11770_s12 + $0x590] ss:$8 sps:$4 sm:$0xff]  }
 0x77d   :  { %5168 = vmatpush2.bf16.msra.mxu1 %v8742_v6  ;;  %5438 = vmatpush2.bf16.msra.mxu0 %v8745_v7  ;;  %v8828_v6 = vld [vmem:[%s11770_s12 + $0x494] ss:$8 sps:$4 sm:$0xff]   ;;  %v8831_v7 = vld [vmem:[%s11770_s12 + $0x584] ss:$8 sps:$4 sm:$0xff]  }
 0x77e   :  { %5169 = vmatprep.subr.bf16.mxu1 %v8750_v8  ;;  %5439 = vmatprep.subr.bf16.mxu0 %v8753_v9  ;;  %v8826_v8 = vld [vmem:[%s11770_s12 + $0x490] ss:$8 sps:$4 sm:$0xff]   ;;  %v8829_v9 = vld [vmem:[%s11770_s12 + $0x580] ss:$8 sps:$4 sm:$0xff]  }
 0x781   :  { %5170 = vmatpush2.bf16.msra.mxu1 %v8748_v12  ;;  %5440 = vmatpush2.bf16.msra.mxu0 %v8751_v13  ;;  %v8834_v12 = vld [vmem:[%s11770_s12 + $0x484] ss:$8 sps:$4 sm:$0xff]   ;;  %v8837_v13 = vld [vmem:[%s11770_s12 + $0x574] ss:$8 sps:$4 sm:$0xff]  }
 0x782   :  { %5171 = vmatprep.subr.bf16.mxu1 %v8756_v56  ;;  %5441 = vmatprep.subr.bf16.mxu0 %v8759_v14  ;;  %v8832_v56 = vld [vmem:[%s11770_s12 + $0x480] ss:$8 sps:$4 sm:$0xff]   ;;  %v8835_v14 = vld [vmem:[%s11770_s12 + $0x570] ss:$8 sps:$4 sm:$0xff]  }
 0x785   :  { %5172 = vmatpush2.bf16.msra.mxu1 %v8754_v15  ;;  %5442 = vmatpush2.bf16.msra.mxu0 %v8757_v16  ;;  %v8840_v15 = vld [vmem:[%s11770_s12 + $0x474] ss:$8 sps:$4 sm:$0xff]   ;;  %v8843_v16 = vld [vmem:[%s11770_s12 + $0x564] ss:$8 sps:$4 sm:$0xff]  }
 0x786   :  { %5173 = vmatprep.subr.bf16.mxu1 %v8762_v17  ;;  %5443 = vmatprep.subr.bf16.mxu0 %v8765_v18  ;;  %v8838_v17 = vld [vmem:[%s11770_s12 + $0x470] ss:$8 sps:$4 sm:$0xff]   ;;  %v8841_v18 = vld [vmem:[%s11770_s12 + $0x560] ss:$8 sps:$4 sm:$0xff]  }
 0x789   :  { %5174 = vmatpush2.bf16.msra.mxu1 %v8760_v19  ;;  %5444 = vmatpush2.bf16.msra.mxu0 %v8763_v20  ;;  %v8846_v19 = vld [vmem:[%s11770_s12 + $0x464] ss:$8 sps:$4 sm:$0xff]   ;;  %v8849_v20 = vld [vmem:[%s11770_s12 + $0x554] ss:$8 sps:$4 sm:$0xff]  }
 0x78a   :  { %5175 = vmatprep.subr.bf16.mxu1 %v8768_v2  ;;  %5445 = vmatprep.subr.bf16.mxu0 %v8771_v47  ;;  %v8844_v2 = vld [vmem:[%s11770_s12 + $0x460] ss:$8 sps:$4 sm:$0xff]   ;;  %v8847_v47 = vld [vmem:[%s11770_s12 + $0x550] ss:$8 sps:$4 sm:$0xff]  }
 0x78d   :  { %5176 = vmatpush2.bf16.msra.mxu1 %v8766_v33  ;;  %5446 = vmatpush2.bf16.msra.mxu0 %v8769_v21  ;;  %v8852_v33 = vld [vmem:[%s11770_s12 + $0x454] ss:$8 sps:$4 sm:$0xff]   ;;  %v8855_v21 = vld [vmem:[%s11770_s12 + $0x544] ss:$8 sps:$4 sm:$0xff]  }
 0x78e   :  { %5747 = vmatprep.subr.bf16.mxu1 %v8774_v22  ;;  %6017 = vmatprep.subr.bf16.mxu0 %v8777_v53  ;;  %v8850_v22 = vld [vmem:[%s11770_s12 + $0x450] ss:$8 sps:$4 sm:$0xff]   ;;  %v8853_v53 = vld [vmem:[%s11770_s12 + $0x540] ss:$8 sps:$4 sm:$0xff]  }
 0x790   :  { %5178 = vmatmul.mubr.bf16.vlgmr.msra.gmra.mxu1 %v10788_v41  ;;  %5448 = vmatmul.mubr.bf16.vlgmr.msra.gmra.mxu0 %v10788_v41 }
 0x791   :  { %7708 = vmatprep.mubr.msk.bf16.mxu1 %vm2888_vm1, %v10819_v4  ;;  %7772 = vmatprep.mubr.msk.bf16.mxu0 %vm2888_vm1, %v10819_v4 }
 0x792   :  { %5748 = vmatpush1.bf16.msra.mxu1 %v8772_v24  ;;  %6018 = vmatpush1.bf16.msra.mxu0 %v8775_v59  ;;  %v8858_v24 = vld [vmem:[%s11770_s12 + $0x444] ss:$8 sps:$4 sm:$0xff]   ;;  %v8861_v59 = vld [vmem:[%s11770_s12 + $0x534] ss:$8 sps:$4 sm:$0xff]  }
 0x793   :  { %5749 = vmatprep.subr.bf16.mxu1 %v8780_v0  ;;  %6019 = vmatprep.subr.bf16.mxu0 %v8783_v51  ;;  %v8856_v0 = vld [vmem:[%s11770_s12 + $0x440] ss:$8 sps:$4 sm:$0xff]   ;;  %v8859_v51 = vld [vmem:[%s11770_s12 + $0x530] ss:$8 sps:$4 sm:$0xff]  }
 0x796   :  { %5750 = vmatpush1.bf16.msra.mxu1 %v8778_v25  ;;  %6020 = vmatpush1.bf16.msra.mxu0 %v8781_v26 }
 0x797   :  { %5751 = vmatprep.subr.bf16.mxu1 %v8786_v27  ;;  %6021 = vmatprep.subr.bf16.mxu0 %v8789_v28 }
 0x798   :  { %5188 = vmatmul.mubr.bf16.gmra.mxu1 %v10816_v1  ;;  %5458 = vmatmul.mubr.bf16.gmra.mxu0 %v10816_v1 }
 0x799   :  { %7709 = vmatprep.mubr.msk.bf16.mxu1 %vm2888_vm1, %v10857_v23  ;;  %7773 = vmatprep.mubr.msk.bf16.mxu0 %vm2888_vm1, %v10857_v23 }
 0x79a   :  { %5752 = vmatpush1.bf16.msra.mxu1 %v8784_v29  ;;  %6022 = vmatpush1.bf16.msra.mxu0 %v8787_v30 }
 0x79b   :  { %5753 = vmatprep.subr.bf16.mxu1 %v8792_v31  ;;  %6023 = vmatprep.subr.bf16.mxu0 %v8795_v34 }
 0x79e   :  { %5754 = vmatpush1.bf16.msra.mxu1 %v8790_v62  ;;  %6024 = vmatpush1.bf16.msra.mxu0 %v8793_v35 }
 0x79f   :  { %5755 = vmatprep.subr.bf16.mxu1 %v8798_v37  ;;  %6025 = vmatprep.subr.bf16.mxu0 %v8801_v5 }
 0x7a0   :  { %5198 = vmatmul.mubr.bf16.gmra.mxu1 %v10854_v46  ;;  %5468 = vmatmul.mubr.bf16.gmra.mxu0 %v10854_v46 }
 0x7a1   :  { %7710 = vmatprep.mubr.msk.bf16.mxu1 %vm2888_vm1, %v10894_v43  ;;  %7774 = vmatprep.mubr.msk.bf16.mxu0 %vm2888_vm1, %v10894_v43 }
 0x7a2   :  { %5756 = vmatpush1.bf16.msra.mxu1 %v8796_v38  ;;  %6026 = vmatpush1.bf16.msra.mxu0 %v8799_v44 }
 0x7a3   :  { %5757 = vmatprep.subr.bf16.mxu1 %v8804_v45  ;;  %6027 = vmatprep.subr.bf16.mxu0 %v8807_v48 }
 0x7a6   :  { %5758 = vmatpush1.bf16.msra.mxu1 %v8802_v49  ;;  %6028 = vmatpush1.bf16.msra.mxu0 %v8805_v52 }
 0x7a7   :  { %5759 = vmatprep.subr.bf16.mxu1 %v8810_v54  ;;  %6029 = vmatprep.subr.bf16.mxu0 %v8813_v55 }
 0x7a8   :  { %5208 = vmatmul.mubr.bf16.gmra.mxu1 %v10892_v39  ;;  %5478 = vmatmul.mubr.bf16.gmra.mxu0 %v10892_v39 }
 0x7a9   :  { %7835 = vmatprep.mubr.msk.bf16.mxu1 %vm2888_vm1, %v10779_v36  ;;  %7899 = vmatprep.mubr.msk.bf16.mxu0 %vm2888_vm1, %v10779_v36  ;;  %v8825_v36 = vld [vmem:[%s11770_s12 + $0x594] ss:$8 sps:$4 sm:$0xff]  }
 0x7aa   :  { %5760 = vmatpush1.bf16.msra.mxu1 %v8808_v57  ;;  %6030 = vmatpush1.bf16.msra.mxu0 %v8811_v61 }
 0x7ab   :  { %5761 = vmatprep.subr.bf16.mxu1 %v8816_v60  ;;  %6031 = vmatprep.subr.bf16.mxu0 %v8819_v11 }
 0x7ae   :  { %5762 = vmatpush1.bf16.msra.mxu1 %v8814_v50  ;;  %6032 = vmatpush1.bf16.msra.mxu0 %v8817_v10 }
 0x7af   :  { %5765 = vmatprep.subr.bf16.mxu1 %v8822_v63  ;;  %6035 = vmatprep.subr.bf16.mxu0 %v8825_v36 }
 0x7b2   :  { %5766 = vmatpush2.bf16.msra.mxu1 %v8820_v3  ;;  %6036 = vmatpush2.bf16.msra.mxu0 %v8823_v58 }
 0x7b3   :  { %5767 = vmatprep.subr.bf16.mxu1 %v8828_v6  ;;  %6037 = vmatprep.subr.bf16.mxu0 %v8831_v7 }
 0x7b6   :  { %5768 = vmatpush2.bf16.msra.mxu1 %v8826_v8  ;;  %6038 = vmatpush2.bf16.msra.mxu0 %v8829_v9 }
 0x7b7   :  { %5769 = vmatprep.subr.bf16.mxu1 %v8834_v12  ;;  %6039 = vmatprep.subr.bf16.mxu0 %v8837_v13 }
 0x7ba   :  { %5770 = vmatpush2.bf16.msra.mxu1 %v8832_v56  ;;  %6040 = vmatpush2.bf16.msra.mxu0 %v8835_v14 }
 0x7bb   :  { %5771 = vmatprep.subr.bf16.mxu1 %v8840_v15  ;;  %6041 = vmatprep.subr.bf16.mxu0 %v8843_v16 }
 0x7be   :  { %5772 = vmatpush2.bf16.msra.mxu1 %v8838_v17  ;;  %6042 = vmatpush2.bf16.msra.mxu0 %v8841_v18 }
 0x7bf   :  { %5773 = vmatprep.subr.bf16.mxu1 %v8846_v19  ;;  %6043 = vmatprep.subr.bf16.mxu0 %v8849_v20 }
 0x7c2   :  { %5774 = vmatpush2.bf16.msra.mxu1 %v8844_v2  ;;  %6044 = vmatpush2.bf16.msra.mxu0 %v8847_v47 }
 0x7c3   :  { %5775 = vmatprep.subr.bf16.mxu1 %v8852_v33  ;;  %6045 = vmatprep.subr.bf16.mxu0 %v8855_v21 }
 0x7c6   :  { %5776 = vmatpush2.bf16.msra.mxu1 %v8850_v22  ;;  %6046 = vmatpush2.bf16.msra.mxu0 %v8853_v53 }
 0x7c7   :  { %5777 = vmatprep.subr.bf16.mxu1 %v8858_v24  ;;  %6047 = vmatprep.subr.bf16.mxu0 %v8861_v59 }
 0x7ca   :  { %5778 = vmatpush2.bf16.msra.mxu1 %v8856_v0  ;;  %6048 = vmatpush2.bf16.msra.mxu0 %v8859_v51 }
 0x7cd   :  { %5780 = vmatmul.mubr.bf16.vlgmr.msra.gmra.mxu1 %v10788_v41  ;;  %6050 = vmatmul.mubr.bf16.vlgmr.msra.gmra.mxu0 %v10788_v41 }
 0x7ce   :  { %7836 = vmatprep.mubr.msk.bf16.mxu1 %vm2888_vm1, %v10819_v4  ;;  %7900 = vmatprep.mubr.msk.bf16.mxu0 %vm2888_vm1, %v10819_v4 }
 0x7d5   :  { %5790 = vmatmul.mubr.bf16.gmra.mxu1 %v10816_v1  ;;  %6060 = vmatmul.mubr.bf16.gmra.mxu0 %v10816_v1 }
 0x7d6   :  { %7837 = vmatprep.mubr.msk.bf16.mxu1 %vm2888_vm1, %v10857_v23  ;;  %7901 = vmatprep.mubr.msk.bf16.mxu0 %vm2888_vm1, %v10857_v23 }
 0x7dd   :  { %5800 = vmatmul.mubr.bf16.gmra.mxu1 %v10854_v46  ;;  %6070 = vmatmul.mubr.bf16.gmra.mxu0 %v10854_v46 }
 0x7de   :  { %7838 = vmatprep.mubr.msk.bf16.mxu1 %vm2888_vm1, %v10894_v43  ;;  %7902 = vmatprep.mubr.msk.bf16.mxu0 %vm2888_vm1, %v10894_v43 }
 0x7e5   :  { %5810 = vmatmul.mubr.bf16.gmra.mxu1 %v10892_v39  ;;  %6080 = vmatmul.mubr.bf16.gmra.mxu0 %v10892_v39 }
 0x7e6   :  { %6592 = vmatprep.mubr.f32.mxu0 %v8862_v32 }
 0x814   :  { %v11233_v41 = vpop.f32.mrf.mxu1  ;;  %v4846_v1 = vpop.f32.mrf.mxu0 }
 0x815   :  { %v4901_v4 = vrot.slane %v4846_v1, 4 }
 0x816   :  { %v4576_v23 = vpop.f32.mrf.mxu1  ;;  %v4848_v25 = vpop.f32.mrf.mxu0 }
 0x817   :  { %4947 = vst [vmem:[#allocation5 + $0x70] sm:$0xf0] %v4901_v4  ;;  %4615 = vst.msk [vmem:[#allocation5 + $0x8] sm:$0xff] %vm4614_vm4, %v4576_v23  ;;  %v4902_v46 = vrot.slane %v4848_v25, 4 }
 0x818   :  { %v11236_v26 = vpop.f32.mrf.mxu1  ;;  %v4850_v43 = vpop.f32.mrf.mxu0 }
 0x819   :  { %4949 = vst.msk [vmem:[#allocation5 + $0x78] sm:$0xf0] %vm4948_vm10, %v4902_v46  ;;  %v4903_v39 = vrot.slane %v4850_v43, 4 }
 0x81a   :  { %v4580_v27 = vpop.f32.mrf.mxu1  ;;  %v4852_v28 = vpop.f32.mrf.mxu0 }
 0x81b   :  { %v11240_v29 = vsel %vm2153_vm13, %v4901_v4, %v4903_v39  ;;  %4617 = vst.msk [vmem:[#allocation5 + $0x18] sm:$0xff] %vm4614_vm4, %v4580_v27  ;;  %v4905_v30 = vrot.slane %v4852_v28, 4  ;;  %v6169_v4 = vld [vmem:[%s11772_s13 + $0x8] sm:$0xff] }
 0x81c   :  { %v11243_v31 = vpop.f32.mrf.mxu1  ;;  %v4856_v34 = vpop.f32.mrf.mxu0  ;;  %6431 = vmatprep.mubr.f32.mxu1 %v6169_v4 }
 0x81d   :  { %v4906_v62 = vsel %vm2153_vm13, %v4902_v46, %v4905_v30  ;;  %v4907_v35 = vrot.slane %v4856_v34, 4 }
 0x81e   :  { %4951 = vst.msk [vmem:[#allocation5 + $0x88] sm:$0xff] %vm4614_vm4, %v4906_v62  ;;  %v4586_v37 = vpop.f32.mrf.mxu1  ;;  %v4858_v5 = vpop.f32.mrf.mxu0 }
 0x81f   :  { %v11248_v38 = vsel %vm2153_vm13, %v4903_v39, %v4907_v35  ;;  %4619 = vst.msk [vmem:[#allocation5 + $0x28] sm:$0xff] %vm4614_vm4, %v4586_v37  ;;  %v4909_v44 = vrot.slane %v4858_v5, 4 }
 0x820   :  { %v11251_v45 = vpop.f32.mrf.mxu1  ;;  %v4860_v48 = vpop.f32.mrf.mxu0 }
 0x821   :  { %v4910_v49 = vsel %vm2153_vm13, %v4905_v30, %v4909_v44  ;;  %v4911_v52 = vrot.slane %v4860_v48, 4 }
 0x822   :  { %4953 = vst.msk [vmem:[#allocation5 + $0x98] sm:$0xff] %vm4614_vm4, %v4910_v49  ;;  %v4590_v54 = vpop.f32.mrf.mxu1  ;;  %v4862_v55 = vpop.f32.mrf.mxu0 }
 0x823   :  { %4621 = vst.msk [vmem:[#allocation5 + $0x38] sm:$0xff] %vm4614_vm4, %v4590_v54  ;;  %v11257_v57 = vsel %vm2153_vm13, %v4907_v35, %v4911_v52  ;;  %v4913_v61 = vrot.slane %v4862_v55, 4 }
 0x824   :  { %v11259_v60 = vpop.f32.mrf.mxu1  ;;  %v4866_v11 = vpop.f32.mrf.mxu0 }
 0x825   :  { %v4914_v50 = vsel %vm2153_vm13, %v4909_v44, %v4913_v61  ;;  %v4915_v10 = vrot.slane %v4866_v11, 4 }
 0x826   :  { %v4596_v63 = vpop.f32.mrf.mxu1  ;;  %4955 = vst.msk [vmem:[#allocation5 + $0xa8] sm:$0xff] %vm4614_vm4, %v4914_v50  ;;  %v4868_v36 = vpop.f32.mrf.mxu0 }
 0x827   :  { %4623 = vst.msk [vmem:[#allocation5 + $0x48] sm:$0xff] %vm4614_vm4, %v4596_v63  ;;  %v11265_v3 = vsel %vm2153_vm13, %v4911_v52, %v4915_v10  ;;  %v4917_v58 = vrot.slane %v4868_v36, 4 }
 0x828   :  { %v11267_v6 = vpop.f32.mrf.mxu1  ;;  %v4870_v7 = vpop.f32.mrf.mxu0 }
 0x829   :  { %v4918_v8 = vsel %vm2153_vm13, %v4913_v61, %v4917_v58  ;;  %v4919_v9 = vrot.slane %v4870_v7, 4  ;;  %v6235_v4 = vld [vmem:[#allocation5 + $0x98] sm:$0xff] }
 0x82a   :  { %v4600_v12 = vpop.f32.mrf.mxu1  ;;  %4957 = vst.msk [vmem:[#allocation5 + $0xb8] sm:$0xff] %vm4614_vm4, %v4918_v8  ;;  %v4872_v13 = vpop.f32.mrf.mxu0 }
 0x82b   :  { %4625 = vst.msk [vmem:[#allocation5 + $0x58] sm:$0xff] %vm4614_vm4, %v4600_v12  ;;  %v11273_v56 = vsel %vm2153_vm13, %v4915_v10, %v4919_v9  ;;  %v4921_v14 = vrot.slane %v4872_v13, 4 }
 0x82c   :  { %v11275_v15 = vpop.f32.mrf.mxu1  ;;  %v4876_v16 = vpop.f32.mrf.mxu0 }
 0x82d   :  { %v4922_v17 = vsel %vm2153_vm13, %v4917_v58, %v4921_v14  ;;  %v4923_v18 = vrot.slane %v4876_v16, 4 }
 0x82e   :  { %v4606_v19 = vpop.f32.mrf.mxu1  ;;  %4959 = vst.msk [vmem:[#allocation5 + $0xc8] sm:$0xff] %vm4614_vm4, %v4922_v17  ;;  %v4878_v20 = vpop.f32.mrf.mxu0 }
 0x82f   :  { %4627 = vst.msk [vmem:[#allocation5 + $0x68] sm:$0xff] %vm4614_vm4, %v4606_v19  ;;  %v11281_v2 = vsel %vm2153_vm13, %v4919_v9, %v4923_v18  ;;  %v4925_v47 = vrot.slane %v4878_v20, 4 }
 0x830   :  { %v4608_v33 = vpop.f32.mrf.mxu1  ;;  %v4880_v21 = vpop.f32.mrf.mxu0 }
 0x831   :  { %4628 = vst [vmem:[#allocation5 + $0x70] sm:$0xf] %v4608_v33  ;;  %v4926_v22 = vsel %vm2153_vm13, %v4921_v14, %v4925_v47  ;;  %v4927_v53 = vrot.slane %v4880_v21, 4  ;;  %v6239_v21 = vld [vmem:[#allocation5 + $0xb8] sm:$0xff] }
 0x832   :  { %v4610_v24 = vpop.f32.mrf.mxu1  ;;  %4961 = vst.msk [vmem:[#allocation5 + $0xd8] sm:$0xff] %vm4614_vm4, %v4926_v22  ;;  %v4882_v59 = vpop.f32.mrf.mxu0 }
 0x833   :  { %4630 = vst.msk [vmem:[#allocation5 + $0x78] sm:$0xf] %vm4629_vm11, %v4610_v24  ;;  %v4928_v0 = vsel %vm2153_vm13, %v4923_v18, %v4927_v53  ;;  %v4929_v51 = vrot.slane %v4882_v59, 4  ;;  %v6237_v59 = vld [vmem:[#allocation5 + $0xa8] sm:$0xff] }
 0x835   :  { %v4930_v1 = vsel %vm2153_vm13, %v4925_v47, %v4929_v51  ;;  %v6241_v18 = vld [vmem:[#allocation5 + $0xc8] sm:$0xff] }
 0x836   :  { %4963 = vst.msk [vmem:[#allocation5 + $0xe8] sm:$0xff] %vm4614_vm4, %v4930_v1 }
 0x839   :  { %v6243_v12 = vld [vmem:[#allocation5 + $0xd8] sm:$0xff] }
 0x83d   :  { %v6245_v36 = vld [vmem:[#allocation5 + $0xe8] sm:$0xff] }
 0x850   :  { %v5179_v23 = vpop.f32.mrf.mxu1  ;;  %v5449_v25 = vpop.f32.mrf.mxu0 }
 0x851   :  { %v5504_v46 = vrot.slane %v5449_v25, 4 }
 0x852   :  { %v5181_v43 = vpop.f32.mrf.mxu1  ;;  %v5451_v39 = vpop.f32.mrf.mxu0 }
 0x853   :  { %5550 = vst [vmem:[#allocation5 + $0x160] sm:$0xf0] %v5504_v46  ;;  %5219 = vst.msk [vmem:[#allocation5 + $0xf8] sm:$0xff] %vm4614_vm4, %v5181_v43  ;;  %v5505_v27 = vrot.slane %v5451_v39, 4  ;;  %v6233_v43 = vld [vmem:[#allocation5 + $0x88] sm:$0xff] }
 0x854   :  { %v11293_v28 = vpop.f32.mrf.mxu1  ;;  %v5453_v30 = vpop.f32.mrf.mxu0 }
 0x855   :  { %5551 = vst.msk [vmem:[#allocation5 + $0x168] sm:$0xf0] %vm4948_vm10, %v5505_v27  ;;  %v5506_v34 = vrot.slane %v5453_v30, 4 }
 0x856   :  { %v5185_v62 = vpop.f32.mrf.mxu1  ;;  %v5455_v35 = vpop.f32.mrf.mxu0 }
 0x857   :  { %v11297_v37 = vsel %vm2153_vm13, %v5504_v46, %v5506_v34  ;;  %5221 = vst.msk [vmem:[#allocation5 + $0x108] sm:$0xff] %vm4614_vm4, %v5185_v62  ;;  %v5508_v5 = vrot.slane %v5455_v35, 4 }
 0x858   :  { %v11300_v44 = vpop.f32.mrf.mxu1  ;;  %v5459_v48 = vpop.f32.mrf.mxu0 }
 0x859   :  { %v5509_v49 = vsel %vm2153_vm13, %v5505_v27, %v5508_v5  ;;  %v5510_v52 = vrot.slane %v5459_v48, 4 }
 0x85a   :  { %5553 = vst.msk [vmem:[#allocation5 + $0x178] sm:$0xff] %vm4614_vm4, %v5509_v49  ;;  %v5191_v54 = vpop.f32.mrf.mxu1  ;;  %v5461_v55 = vpop.f32.mrf.mxu0  ;;  %v6247_v61 = vld [vmem:[#allocation5 + $0xf8] sm:$0xff]  ;;  %v6229_v49 = vld [vmem:[#allocation5 + $0x68] sm:$0xff] }
 0x85b   :  { %v11305_v11 = vsel %vm2153_vm13, %v5506_v34, %v5510_v52  ;;  %5223 = vst.msk [vmem:[#allocation5 + $0x118] sm:$0xff] %vm4614_vm4, %v5191_v54  ;;  %v5512_v50 = vrot.slane %v5461_v55, 4  ;;  %6367 = vmatprep.subr.mxu1 %v6247_v61  ;;  %v6231_v34 = vld [vmem:[#allocation5 + $0x78] sm:$0xff] }
 0x85c   :  { %v11308_v10 = vpop.f32.mrf.mxu1  ;;  %v5463_v63 = vpop.f32.mrf.mxu0  ;;  %6368 = vmatpush1.msra.mxu1 %v5179_v23  ;;  %v6227_v61 = vld [vmem:[#allocation5 + $0x58] sm:$0xff] }
 0x85d   :  { %v5513_v58 = vsel %vm2153_vm13, %v5508_v5, %v5512_v50  ;;  %v5514_v7 = vrot.slane %v5463_v63, 4  ;;  %6369 = vmatprep.subr.mxu1 %v6245_v36  ;;  %v6225_v36 = vld [vmem:[#allocation5 + $0x48] sm:$0xff] }
 0x85e   :  { %5555 = vst.msk [vmem:[#allocation5 + $0x188] sm:$0xff] %vm4614_vm4, %v5513_v58  ;;  %v5195_v8 = vpop.f32.mrf.mxu1  ;;  %v5465_v9 = vpop.f32.mrf.mxu0  ;;  %6370 = vmatpush1.msra.mxu1 %v4928_v0 }
 0x85f   :  { %v11313_v13 = vsel %vm2153_vm13, %v5510_v52, %v5514_v7  ;;  %5225 = vst.msk [vmem:[#allocation5 + $0x128] sm:$0xff] %vm4614_vm4, %v5195_v8  ;;  %v5516_v14 = vrot.slane %v5465_v9, 4  ;;  %6371 = vmatprep.subr.mxu1 %v6243_v12  ;;  %v6219_v8 = vld [vmem:[#allocation5 + $0x18] sm:$0xff] }
 0x860   :  { %v11316_v16 = vpop.f32.mrf.mxu1  ;;  %v5469_v17 = vpop.f32.mrf.mxu0  ;;  %6372 = vmatpush1.msra.mxu1 %v11281_v2 }
 0x861   :  { %v5517_v19 = vsel %vm2153_vm13, %v5512_v50, %v5516_v14  ;;  %v5518_v20 = vrot.slane %v5469_v17, 4  ;;  %6373 = vmatprep.subr.mxu1 %v6241_v18 }
 0x862   :  { %5557 = vst.msk [vmem:[#allocation5 + $0x198] sm:$0xff] %vm4614_vm4, %v5517_v19  ;;  %v5201_v47 = vpop.f32.mrf.mxu1  ;;  %v5471_v33 = vpop.f32.mrf.mxu0  ;;  %6374 = vmatpush1.msra.mxu1 %v11273_v56 }
 0x863   :  { %v11323_v22 = vsel %vm2153_vm13, %v5514_v7, %v5518_v20  ;;  %5227 = vst.msk [vmem:[#allocation5 + $0x138] sm:$0xff] %vm4614_vm4, %v5201_v47  ;;  %v5520_v53 = vrot.slane %v5471_v33, 4  ;;  %6375 = vmatprep.subr.mxu1 %v6239_v21  ;;  %v6223_v7 = vld [vmem:[#allocation5 + $0x38] sm:$0xff] }
 0x864   :  { %v11326_v2 = vpop.f32.mrf.mxu1  ;;  %v5473_v24 = vpop.f32.mrf.mxu0  ;;  %6376 = vmatpush1.msra.mxu1 %v11265_v3 }
 0x865   :  { %v5521_v0 = vsel %vm2153_vm13, %v5516_v14, %v5520_v53  ;;  %v5522_v51 = vrot.slane %v5473_v24, 4  ;;  %6377 = vmatprep.subr.mxu1 %v6237_v59 }
 0x866   :  { %5559 = vst.msk [vmem:[#allocation5 + $0x1a8] sm:$0xff] %vm4614_vm4, %v5521_v0  ;;  %v5205_v56 = vpop.f32.mrf.mxu1  ;;  %v5475_v1 = vpop.f32.mrf.mxu0  ;;  %6378 = vmatpush1.msra.mxu1 %v11257_v57 }
 0x867   :  { %v11333_v23 = vsel %vm2153_vm13, %v5518_v20, %v5522_v51  ;;  %5229 = vst.msk [vmem:[#allocation5 + $0x148] sm:$0xff] %vm4614_vm4, %v5205_v56  ;;  %v5524_v25 = vrot.slane %v5475_v1, 4  ;;  %6379 = vmatprep.subr.mxu1 %v6235_v4 }
 0x868   :  { %v11336_v3 = vpop.f32.mrf.mxu1  ;;  %v5479_v46 = vpop.f32.mrf.mxu0  ;;  %6380 = vmatpush1.msra.mxu1 %v11248_v38  ;;  %v6230_v38 = vld [vmem:[#allocation5 + $0x70] sm:$0xff] }
 0x869   :  { %v5525_v39 = vsel %vm2153_vm13, %v5520_v53, %v5524_v25  ;;  %v5526_v27 = vrot.slane %v5479_v46, 4  ;;  %6381 = vmatprep.subr.mxu1 %v6233_v43 }
 0x86a   :  { %5561 = vst.msk [vmem:[#allocation5 + $0x1b8] sm:$0xff] %vm4614_vm4, %v5525_v39  ;;  %v5211_v57 = vpop.f32.mrf.mxu1  ;;  %v5481_v30 = vpop.f32.mrf.mxu0  ;;  %6382 = vmatpush1.msra.mxu1 %v11240_v29 }
 0x86b   :  { %v11343_v62 = vsel %vm2153_vm13, %v5522_v51, %v5526_v27  ;;  %5231 = vst.msk [vmem:[#allocation5 + $0x158] sm:$0xff] %vm4614_vm4, %v5211_v57  ;;  %v5528_v35 = vrot.slane %v5481_v30, 4  ;;  %6383 = vmatprep.subr.mxu1 %v6231_v34 }
 0x86c   :  { %v5213_v5 = vpop.f32.mrf.mxu1  ;;  %v5483_v48 = vpop.f32.mrf.mxu0  ;;  %6384 = vmatpush1.msra.mxu1 %v6230_v38 }
 0x86d   :  { %v5529_v52 = vsel %vm2153_vm13, %v5524_v25, %v5528_v35  ;;  %5232 = vst [vmem:[#allocation5 + $0x160] sm:$0xf] %v5213_v5  ;;  %v5530_v54 = vrot.slane %v5483_v48, 4  ;;  %6385 = vmatprep.subr.mxu1 %v6229_v49 }
 0x86e   :  { %5563 = vst.msk [vmem:[#allocation5 + $0x1c8] sm:$0xff] %vm4614_vm4, %v5529_v52  ;;  %v5215_v29 = vpop.f32.mrf.mxu1  ;;  %v5485_v55 = vpop.f32.mrf.mxu0  ;;  %6386 = vmatpush1.msra.mxu1 %v11275_v15  ;;  %v6221_v15 = vld [vmem:[#allocation5 + $0x28] sm:$0xff] }
 0x86f   :  { %v11350_v50 = vsel %vm2153_vm13, %v5526_v27, %v5530_v54  ;;  %5233 = vst.msk [vmem:[#allocation5 + $0x168] sm:$0xf] %vm4629_vm11, %v5215_v29  ;;  %v5532_v63 = vrot.slane %v5485_v55, 4  ;;  %6387 = vmatprep.subr.mxu1 %v6227_v61 }
 0x870   :  { %6388 = vmatpush1.msra.mxu1 %v11267_v6  ;;  %v6217_v6 = vld [vmem:[#allocation5 + $0x8] sm:$0xff] }
 0x871   :  { %v5533_v58 = vsel %vm2153_vm13, %v5528_v35, %v5532_v63  ;;  %6389 = vmatprep.subr.mxu1 %v6225_v36 }
 0x872   :  { %5565 = vst.msk [vmem:[#allocation5 + $0x1d8] sm:$0xff] %vm4614_vm4, %v5533_v58  ;;  %6390 = vmatpush1.msra.mxu1 %v11259_v60 }
 0x873   :  { %6391 = vmatprep.subr.mxu1 %v6223_v7 }
 0x874   :  { %6392 = vmatpush1.msra.mxu1 %v11251_v45 }
 0x875   :  { %6393 = vmatprep.subr.mxu1 %v6221_v15  ;;  %v6273_v36 = vld [vmem:[#allocation5 + $0x1c8] sm:$0xff] }
 0x876   :  { %6394 = vmatpush1.msra.mxu1 %v11243_v31 }
 0x877   :  { %6395 = vmatprep.subr.mxu1 %v6219_v8 }
 0x878   :  { %6396 = vmatpush1.msra.mxu1 %v11236_v26 }
 0x879   :  { %6397 = vmatprep.subr.mxu1 %v6217_v6  ;;  %v6275_v54 = vld [vmem:[#allocation5 + $0x1d8] sm:$0xff] }
 0x87a   :  { %6398 = vmatpush1.msra.mxu1 %v11233_v41  ;;  %v6271_v6 = vld [vmem:[#allocation5 + $0x1b8] sm:$0xff] }
 0x88d   :  { %v5781_v9 = vpop.f32.mrf.mxu1  ;;  %v6051_v12 = vpop.f32.mrf.mxu0 }
 0x88e   :  { %v6106_v14 = vrot.slane %v6051_v12, 4 }
 0x88f   :  { %v5783_v60 = vpop.f32.mrf.mxu1  ;;  %v6053_v17 = vpop.f32.mrf.mxu0 }
 0x890   :  { %6152 = vst [vmem:[#allocation5 + $0x250] sm:$0xf0] %v6106_v14  ;;  %5821 = vst.msk [vmem:[#allocation5 + $0x1e8] sm:$0xff] %vm4614_vm4, %v5783_v60  ;;  %v6107_v45 = vrot.slane %v6053_v17, 4  ;;  %v6269_v60 = vld [vmem:[#allocation5 + $0x1a8] sm:$0xff] }
 0x891   :  { %v5785_v18 = vpop.f32.mrf.mxu1  ;;  %v6055_v19 = vpop.f32.mrf.mxu0 }
 0x892   :  { %6153 = vst.msk [vmem:[#allocation5 + $0x258] sm:$0xf0] %vm4948_vm10, %v6107_v45  ;;  %v6108_v31 = vrot.slane %v6055_v19, 4  ;;  %v6267_v19 = vld [vmem:[#allocation5 + $0x198] sm:$0xff] }
 0x893   :  { %v5787_v20 = vpop.f32.mrf.mxu1  ;;  %v6057_v26 = vpop.f32.mrf.mxu0 }
 0x894   :  { %v11364_v47 = vsel %vm2153_vm13, %v6106_v14, %v6108_v31  ;;  %5823 = vst.msk [vmem:[#allocation5 + $0x1f8] sm:$0xff] %vm4614_vm4, %v5787_v20  ;;  %v6110_v41 = vrot.slane %v6057_v26, 4 }
 0x895   :  { %v11367_v33 = vpop.f32.mrf.mxu1  ;;  %v6061_v21 = vpop.f32.mrf.mxu0 }
 0x896   :  { %v6111_v53 = vsel %vm2153_vm13, %v6107_v45, %v6110_v41  ;;  %v6112_v24 = vrot.slane %v6061_v21, 4 }
 0x897   :  { %6155 = vst.msk [vmem:[#allocation5 + $0x268] sm:$0xff] %vm4614_vm4, %v6111_v53  ;;  %v5793_v59 = vpop.f32.mrf.mxu1  ;;  %v6063_v0 = vpop.f32.mrf.mxu0  ;;  %v6277_v38 = vld [vmem:[#allocation5 + $0x1e8] sm:$0xff] }
 0x898   :  { %v11372_v51 = vsel %vm2153_vm13, %v6108_v31, %v6112_v24  ;;  %5825 = vst.msk [vmem:[#allocation5 + $0x208] sm:$0xff] %vm4614_vm4, %v5793_v59  ;;  %v6114_v56 = vrot.slane %v6063_v0, 4  ;;  %v6263_v59 = vld [vmem:[#allocation5 + $0x178] sm:$0xff] }
 0x899   :  { %v11375_v1 = vpop.f32.mrf.mxu1  ;;  %v6065_v4 = vpop.f32.mrf.mxu0 }
 0x89a   :  { %v6115_v25 = vsel %vm2153_vm13, %v6110_v41, %v6114_v56  ;;  %v6116_v46 = vrot.slane %v6065_v4, 4  ;;  %v6265_v41 = vld [vmem:[#allocation5 + $0x188] sm:$0xff] }
 0x89b   :  { %6157 = vst.msk [vmem:[#allocation5 + $0x278] sm:$0xff] %vm4614_vm4, %v6115_v25  ;;  %v5797_v43 = vpop.f32.mrf.mxu1  ;;  %v6067_v39 = vpop.f32.mrf.mxu0  ;;  %v6279_v27 = vld [vmem:[#allocation5 + $0x1f8] sm:$0xff]  ;;  %v6260_v25 = vld [vmem:[#allocation5 + $0x160] sm:$0xff] }
 0x89c   :  { %v11380_v57 = vsel %vm2153_vm13, %v6112_v24, %v6116_v46  ;;  %5827 = vst.msk [vmem:[#allocation5 + $0x218] sm:$0xff] %vm4614_vm4, %v5797_v43  ;;  %v6118_v30 = vrot.slane %v6067_v39, 4  ;;  %6399 = vmatprep.subr.mxu1 %v6279_v27  ;;  %v6255_v43 = vld [vmem:[#allocation5 + $0x138] sm:$0xff] }
 0x89d   :  { %v11383_v34 = vpop.f32.mrf.mxu1  ;;  %v6071_v35 = vpop.f32.mrf.mxu0  ;;  %6400 = vmatpush2.msra.mxu1 %v5785_v18  ;;  %v6251_v27 = vld [vmem:[#allocation5 + $0x118] sm:$0xff] }
 0x89e   :  { %v6119_v5 = vsel %vm2153_vm13, %v6114_v56, %v6118_v30  ;;  %v6120_v48 = vrot.slane %v6071_v35, 4  ;;  %6401 = vmatprep.subr.mxu1 %v6277_v38 }
 0x89f   :  { %6159 = vst.msk [vmem:[#allocation5 + $0x288] sm:$0xff] %vm4614_vm4, %v6119_v5  ;;  %v5803_v49 = vpop.f32.mrf.mxu1  ;;  %v6073_v52 = vpop.f32.mrf.mxu0  ;;  %6402 = vmatpush2.msra.mxu1 %v5781_v9  ;;  %v6175_v5 = vld [vmem:[%s11772_s13 + $0x38] sm:$0xff] }
 0x8a0   :  { %v11388_v29 = vsel %vm2153_vm13, %v6116_v46, %v6120_v48  ;;  %5829 = vst.msk [vmem:[#allocation5 + $0x228] sm:$0xff] %vm4614_vm4, %v5803_v49  ;;  %v6122_v55 = vrot.slane %v6073_v52, 4  ;;  %6403 = vmatprep.subr.mxu1 %v6275_v54  ;;  %v6259_v46 = vld [vmem:[#allocation5 + $0x158] sm:$0xff]  ;;  %v6293_v49 = vld [vmem:[#allocation5 + $0x268] sm:$0xff]  ;;  %v6178_v52 = vld [vmem:[%s11772_s13 + $0x50] sm:$0xff] }
 0x8a1   :  { %v11391_v61 = vpop.f32.mrf.mxu1  ;;  %v6075_v63 = vpop.f32.mrf.mxu0  ;;  %6404 = vmatpush2.msra.mxu1 %v11350_v50 }
 0x8a2   :  { %v6123_v58 = vsel %vm2153_vm13, %v6118_v30, %v6122_v55  ;;  %v6124_v7 = vrot.slane %v6075_v63, 4  ;;  %6405 = vmatprep.subr.mxu1 %v6273_v36 }
 0x8a3   :  { %6161 = vst.msk [vmem:[#allocation5 + $0x298] sm:$0xff] %vm4614_vm4, %v6123_v58  ;;  %v5807_v15 = vpop.f32.mrf.mxu1  ;;  %v6077_v8 = vpop.f32.mrf.mxu0  ;;  %6406 = vmatpush2.msra.mxu1 %v11343_v62  ;;  %v6184_v58 = vld [vmem:[%s11772_s13 + $0x80] sm:$0xff] }
 0x8a4   :  { %v11398_v9 = vsel %vm2153_vm13, %v6120_v48, %v6124_v7  ;;  %5831 = vst.msk [vmem:[#allocation5 + $0x238] sm:$0xff] %vm4614_vm4, %v5807_v15  ;;  %v6126_v12 = vrot.slane %v6077_v8, 4  ;;  %6407 = vmatprep.subr.mxu1 %v6271_v6  ;;  %v6174_v48 = vld [vmem:[%s11772_s13 + $0x30] sm:$0xff]  ;;  %v6183_v15 = vld [vmem:[%s11772_s13 + $0x78] sm:$0xff]  ;;  %v6173_v6 = vld [vmem:[%s11772_s13 + $0x28] sm:$0xff] }
 0x8a5   :  { %v11401_v50 = vpop.f32.mrf.mxu1  ;;  %v6081_v14 = vpop.f32.mrf.mxu0  ;;  %6408 = vmatpush2.msra.mxu1 %v11333_v23  ;;  %v6281_v8 = vld [vmem:[#allocation5 + $0x208] sm:$0xff] }
 0x8a6   :  { %v6127_v17 = vsel %vm2153_vm13, %v6122_v55, %v6126_v12  ;;  %v6128_v45 = vrot.slane %v6081_v14, 4  ;;  %6409 = vmatprep.subr.mxu1 %v6269_v60  ;;  %v6297_v38 = vld [vmem:[#allocation5 + $0x288] sm:$0xff]  ;;  %v6192_v14 = vld [vmem:[%s11772_s13 + $0xc0] sm:$0xff] }
 0x8a7   :  { %6163 = vst.msk [vmem:[#allocation5 + $0x2a8] sm:$0xff] %vm4614_vm4, %v6127_v17  ;;  %v5813_v62 = vpop.f32.mrf.mxu1  ;;  %v6083_v18 = vpop.f32.mrf.mxu0  ;;  %6410 = vmatpush2.msra.mxu1 %v11323_v22  ;;  %v6285_v36 = vld [vmem:[#allocation5 + $0x228] sm:$0xff]  ;;  %v6196_v17 = vld [vmem:[%s11772_s13 + $0xe0] sm:$0xff] }
 0x8a8   :  { %v6129_v31 = vsel %vm2153_vm13, %v6124_v7, %v6128_v45  ;;  %5833 = vst.msk [vmem:[#allocation5 + $0x248] sm:$0xff] %vm4614_vm4, %v5813_v62  ;;  %v6130_v20 = vrot.slane %v6083_v18, 4  ;;  %6411 = vmatprep.subr.mxu1 %v6267_v19  ;;  %v6283_v7 = vld [vmem:[#allocation5 + $0x218] sm:$0xff]  ;;  %v6179_v60 = vld [vmem:[%s11772_s13 + $0x58] sm:$0xff]  ;;  %v6182_v62 = vld [vmem:[%s11772_s13 + $0x70] sm:$0xff] }
 0x8a9   :  { %v5815_v26 = vpop.f32.mrf.mxu1  ;;  %v6085_v23 = vpop.f32.mrf.mxu0  ;;  %6412 = vmatpush2.msra.mxu1 %v11313_v13  ;;  %v6261_v13 = vld [vmem:[#allocation5 + $0x168] sm:$0xff]  ;;  %v6198_v19 = vld [vmem:[%s11772_s13 + $0xf0] sm:$0xff] }
 0x8aa   :  { %v6131_v21 = vsel %vm2153_vm13, %v6126_v12, %v6130_v20  ;;  %5834 = vst [vmem:[#allocation5 + $0x250] sm:$0xf] %v5815_v26  ;;  %v6132_v53 = vrot.slane %v6085_v23, 4  ;;  %6413 = vmatprep.subr.mxu1 %v6265_v41  ;;  %v6299_v35 = vld [vmem:[#allocation5 + $0x298] sm:$0xff]  ;;  %v6176_v12 = vld [vmem:[%s11772_s13 + $0x40] sm:$0xff]  ;;  %v6199_v18 = vld [vmem:[%s11772_s13 + $0xf8] sm:$0xff] }
 0x8ab   :  { %6165 = vst.msk [vmem:[#allocation5 + $0x2b8] sm:$0xff] %vm4614_vm4, %v6131_v21  ;;  %v5817_v22 = vpop.f32.mrf.mxu1  ;;  %v6087_v24 = vpop.f32.mrf.mxu0  ;;  %6414 = vmatpush2.msra.mxu1 %v11305_v11  ;;  %v6257_v11 = vld [vmem:[#allocation5 + $0x148] sm:$0xff]  ;;  %v6287_v63 = vld [vmem:[#allocation5 + $0x238] sm:$0xff]  ;;  %v6188_v23 = vld [vmem:[%s11772_s13 + $0xa0] sm:$0xff] }
 0x8ac   :  { %v6133_v0 = vsel %vm2153_vm13, %v6128_v45, %v6132_v53  ;;  %5835 = vst.msk [vmem:[#allocation5 + $0x258] sm:$0xf] %vm4629_vm11, %v5817_v22  ;;  %v6134_v56 = vrot.slane %v6087_v24, 4  ;;  %6415 = vmatprep.subr.mxu1 %v6263_v59  ;;  %v6195_v45 = vld [vmem:[%s11772_s13 + $0xd8] sm:$0xff]  ;;  %v6201_v26 = vld [vmem:[%s11772_s13 + $0x108] sm:$0xff]  ;;  %v6204_v21 = vld [vmem:[%s11772_s13 + $0x120] sm:$0xff] }
 0x8ad   :  { %6416 = vmatpush2.msra.mxu1 %v11297_v37  ;;  %v6253_v37 = vld [vmem:[#allocation5 + $0x128] sm:$0xff]  ;;  %v6205_v41 = vld [vmem:[%s11772_s13 + $0x128] sm:$0xff]  ;;  %v6208_v22 = vld [vmem:[%s11772_s13 + $0x140] sm:$0xff] }
 0x8ae   :  { %v6135_v4 = vsel %vm2153_vm13, %v6130_v20, %v6134_v56  ;;  %6417 = vmatprep.subr.mxu1 %v6261_v13  ;;  %v6202_v20 = vld [vmem:[%s11772_s13 + $0x110] sm:$0xff]  ;;  %v6191_v53 = vld [vmem:[%s11772_s13 + $0xb8] sm:$0xff]  ;;  %v6197_v13 = vld [vmem:[%s11772_s13 + $0xe8] sm:$0xff] }
 0x8af   :  { %6167 = vst.msk [vmem:[#allocation5 + $0x2c8] sm:$0xff] %vm4614_vm4, %v6135_v4  ;;  %6418 = vmatpush2.msra.mxu1 %v6260_v25  ;;  %v6289_v55 = vld [vmem:[#allocation5 + $0x248] sm:$0xff]  ;;  %v6194_v59 = vld [vmem:[%s11772_s13 + $0xd0] sm:$0xff]  ;;  %v6213_v25 = vld [vmem:[%s11772_s13 + $0x168] sm:$0xff] }
 0x8b0   :  { %6419 = vmatprep.subr.mxu1 %v6259_v46  ;;  %v6207_v24 = vld [vmem:[%s11772_s13 + $0x138] sm:$0xff]  ;;  %v6210_v56 = vld [vmem:[%s11772_s13 + $0x150] sm:$0xff]  ;;  %v6200_v46 = vld [vmem:[%s11772_s13 + $0x100] sm:$0xff] }
 0x8b1   :  { %6420 = vmatpush2.msra.mxu1 %v11336_v3  ;;  %v6249_v3 = vld [vmem:[#allocation5 + $0x108] sm:$0xff]  ;;  %v6214_v4 = vld [vmem:[%s11772_s13 + $0x170] sm:$0xff] }
 0x8b2   :  { %6421 = vmatprep.subr.mxu1 %v6257_v11  ;;  %v6303_v30 = vld [vmem:[#allocation5 + $0x2b8] sm:$0xff]  ;;  %v6203_v11 = vld [vmem:[%s11772_s13 + $0x118] sm:$0xff] }
 0x8b3   :  { %6422 = vmatpush2.msra.mxu1 %v11326_v2  ;;  %v6168_v2 = vld [vmem:[%s11772_s13] sm:$0xff]  ;;  %v6291_v54 = vld [vmem:[#allocation5 + $0x258] sm:$0xff] }
 0x8b4   :  { %6423 = vmatprep.subr.mxu1 %v6255_v43  ;;  %v6206_v43 = vld [vmem:[%s11772_s13 + $0x130] sm:$0xff] }
 0x8b5   :  { %6424 = vmatpush2.msra.mxu1 %v11316_v16  ;;  %v6301_v16 = vld [vmem:[#allocation5 + $0x2a8] sm:$0xff] }
 0x8b6   :  { %6425 = vmatprep.subr.mxu1 %v6253_v37  ;;  %v6305_v39 = vld [vmem:[#allocation5 + $0x2c8] sm:$0xff]  ;;  %v6209_v37 = vld [vmem:[%s11772_s13 + $0x148] sm:$0xff] }
 0x8b7   :  { %6426 = vmatpush2.msra.mxu1 %v11308_v10  ;;  %6534 = vmatprep.subr.mxu0 %v6305_v39  ;;  %v6172_v10 = vld [vmem:[%s11772_s13 + $0x20] sm:$0xff] }
 0x8b8   :  { %6427 = vmatprep.subr.mxu1 %v6251_v27  ;;  %6535 = vmatpush1.msra.mxu0 %v6133_v0  ;;  %v6211_v0 = vld [vmem:[%s11772_s13 + $0x158] sm:$0xff]  ;;  %v6212_v39 = vld [vmem:[%s11772_s13 + $0x160] sm:$0xff] }
 0x8b9   :  { %6428 = vmatpush2.msra.mxu1 %v11300_v44  ;;  %6536 = vmatprep.subr.mxu0 %v6303_v30  ;;  %v6171_v44 = vld [vmem:[%s11772_s13 + $0x18] sm:$0xff] }
 0x8ba   :  { %6429 = vmatprep.subr.mxu1 %v6249_v3  ;;  %6537 = vmatpush1.msra.mxu0 %v6129_v31  ;;  %v6185_v31 = vld [vmem:[%s11772_s13 + $0x88] sm:$0xff]  ;;  %v6215_v27 = vld [vmem:[%s11772_s13 + $0x178] sm:$0xff] }
 0x8bb   :  { %6430 = vmatpush2.msra.mxu1 %v11293_v28  ;;  %6538 = vmatprep.subr.mxu0 %v6301_v16  ;;  %v6295_v28 = vld [vmem:[#allocation5 + $0x278] sm:$0xff] }
 0x8bc   :  { %6539 = vmatpush1.msra.mxu0 %v11398_v9  ;;  %6432 = vmatmul.mubr.f32.vlgmr.msra.gmra.mxu1 %v6168_v2  ;;  %v6190_v9 = vld [vmem:[%s11772_s13 + $0xb0] sm:$0xff] }
 0x8bd   :  { %6540 = vmatprep.subr.mxu0 %v6299_v35  ;;  %6437 = vmatprep.mubr.f32.mxu1 %v6172_v10 }
 0x8be   :  { %6541 = vmatpush1.msra.mxu0 %v11388_v29  ;;  %v6177_v29 = vld [vmem:[%s11772_s13 + $0x48] sm:$0xff] }
 0x8bf   :  { %6542 = vmatprep.subr.mxu0 %v6297_v38 }
 0x8c0   :  { %6543 = vmatpush1.msra.mxu0 %v11380_v57  ;;  %6438 = vmatmul.mubr.f32.gmra.mxu1 %v6171_v44  ;;  %v6290_v57 = vld [vmem:[#allocation5 + $0x250] sm:$0xff] }
 0x8c1   :  { %6544 = vmatprep.subr.mxu0 %v6295_v28  ;;  %6443 = vmatprep.mubr.f32.mxu1 %v6175_v5  ;;  %v6306_v44 = vld [vmem:[%s11773_s14] sm:$0x3] }
 0x8c2   :  { %6545 = vmatpush1.msra.mxu0 %v11372_v51  ;;  %v6181_v51 = vld [vmem:[%s11772_s13 + $0x68] sm:$0xff]  ;;  %v11610_v5 = vrot.slane %v6306_v44, %v9246_v40 }
 0x8c3   :  { %6546 = vmatprep.subr.mxu0 %v6293_v49 }
 0x8c4   :  { %6547 = vmatpush1.msra.mxu0 %v11364_v47  ;;  %6444 = vmatmul.mubr.f32.gmra.mxu1 %v6174_v48  ;;  %v6180_v47 = vld [vmem:[%s11772_s13 + $0x60] sm:$0xff]  ;;  %v11613_v48 = vrot.slane %v6306_v44, %v9251_v42 }
 0x8c5   :  { %6548 = vmatprep.subr.mxu0 %v6291_v54  ;;  %6449 = vmatprep.mubr.f32.mxu1 %v6178_v52 }
 0x8c6   :  { %6549 = vmatpush1.msra.mxu0 %v6290_v57 }
 0x8c7   :  { %6550 = vmatprep.subr.mxu0 %v6289_v55 }
 0x8c8   :  { %6551 = vmatpush1.msra.mxu0 %v11401_v50  ;;  %6450 = vmatmul.mubr.f32.gmra.mxu1 %v6177_v29  ;;  %v6193_v50 = vld [vmem:[%s11772_s13 + $0xc8] sm:$0xff] }
 0x8c9   :  { %6552 = vmatprep.subr.mxu0 %v6287_v63  ;;  %6455 = vmatprep.mubr.f32.mxu1 %v6181_v51 }
 0x8ca   :  { %6553 = vmatpush1.msra.mxu0 %v11391_v61  ;;  %v6170_v61 = vld [vmem:[%s11772_s13 + $0x10] sm:$0xff] }
 0x8cb   :  { %6554 = vmatprep.subr.mxu0 %v6285_v36 }
 0x8cc   :  { %6555 = vmatpush1.msra.mxu0 %v11383_v34  ;;  %6456 = vmatmul.mubr.f32.gmra.mxu1 %v6180_v47  ;;  %v6187_v34 = vld [vmem:[%s11772_s13 + $0x98] sm:$0xff] }
 0x8cd   :  { %6556 = vmatprep.subr.mxu0 %v6283_v7  ;;  %6461 = vmatprep.mubr.f32.mxu1 %v6184_v58 }
 0x8ce   :  { %6557 = vmatpush1.msra.mxu0 %v11375_v1  ;;  %v6186_v1 = vld [vmem:[%s11772_s13 + $0x90] sm:$0xff] }
 0x8cf   :  { %6558 = vmatprep.subr.mxu0 %v6281_v8 }
 0x8d0   :  { %6559 = vmatpush1.msra.mxu0 %v11367_v33  ;;  %6462 = vmatmul.mubr.f32.gmra.mxu1 %v6183_v15  ;;  %v6189_v33 = vld [vmem:[%s11772_s13 + $0xa8] sm:$0xff] }
 0x8d1   :  { %7903 = vmatmul.mubr.msk.f32.vlgmr.msra.gmra.mxu0 %vm6318_vm12, %v6170_v61  ;;  %6467 = vmatprep.mubr.f32.mxu1 %v6187_v34 }
 0x8d2   :  { %6598 = vmatprep.mubr.f32.mxu0 %v8862_v32 }
 0x8d4   :  { %6468 = vmatmul.mubr.f32.gmra.mxu1 %v6186_v1 }
 0x8d5   :  { %7904 = vmatmul.mubr.msk.f32.gmra.mxu0 %vm6318_vm12, %v6173_v6  ;;  %6473 = vmatprep.mubr.f32.mxu1 %v6190_v9 }
 0x8d6   :  { %6604 = vmatprep.mubr.f32.mxu0 %v8862_v32 }
 0x8d8   :  { %6474 = vmatmul.mubr.f32.gmra.mxu1 %v6189_v33 }
 0x8d9   :  { %7905 = vmatmul.mubr.msk.f32.gmra.mxu0 %vm6318_vm12, %v6176_v12  ;;  %6479 = vmatprep.mubr.f32.mxu1 %v6193_v50 }
 0x8da   :  { %6610 = vmatprep.mubr.f32.mxu0 %v8862_v32 }
 0x8dc   :  { %6480 = vmatmul.mubr.f32.gmra.mxu1 %v6192_v14 }
 0x8dd   :  { %7906 = vmatmul.mubr.msk.f32.gmra.mxu0 %vm6318_vm12, %v6179_v60  ;;  %6485 = vmatprep.mubr.f32.mxu1 %v6196_v17 }
 0x8de   :  { %6616 = vmatprep.mubr.f32.mxu0 %v8862_v32 }
 0x8e0   :  { %6486 = vmatmul.mubr.f32.gmra.mxu1 %v6195_v45 }
 0x8e1   :  { %7907 = vmatmul.mubr.msk.f32.gmra.mxu0 %vm6318_vm12, %v6182_v62  ;;  %6491 = vmatprep.mubr.f32.mxu1 %v6199_v18 }
 0x8e2   :  { %6622 = vmatprep.mubr.f32.mxu0 %v8862_v32 }
 0x8e4   :  { %6492 = vmatmul.mubr.f32.gmra.mxu1 %v6198_v19 }
 0x8e5   :  { %7908 = vmatmul.mubr.msk.f32.gmra.mxu0 %vm6318_vm12, %v6185_v31  ;;  %6497 = vmatprep.mubr.f32.mxu1 %v6202_v20 }
 0x8e6   :  { %6628 = vmatprep.mubr.f32.mxu0 %v8862_v32 }
 0x8e8   :  { %6498 = vmatmul.mubr.f32.gmra.mxu1 %v6201_v26 }
 0x8e9   :  { %7909 = vmatmul.mubr.msk.f32.gmra.mxu0 %vm6318_vm12, %v6188_v23  ;;  %6503 = vmatprep.mubr.f32.mxu1 %v6205_v41 }
 0x8ea   :  { %6634 = vmatprep.mubr.f32.mxu0 %v8862_v32 }
 0x8ec   :  { %6504 = vmatmul.mubr.f32.gmra.mxu1 %v6204_v21 }
 0x8ed   :  { %7910 = vmatmul.mubr.msk.f32.gmra.mxu0 %vm6318_vm12, %v6191_v53  ;;  %6509 = vmatprep.mubr.f32.mxu1 %v6208_v22 }
 0x8ee   :  { %6640 = vmatprep.mubr.f32.mxu0 %v8862_v32 }
 0x8f0   :  { %6510 = vmatmul.mubr.f32.gmra.mxu1 %v6207_v24 }
 0x8f1   :  { %7911 = vmatmul.mubr.msk.f32.gmra.mxu0 %vm6318_vm12, %v6194_v59  ;;  %6515 = vmatprep.mubr.f32.mxu1 %v6211_v0 }
 0x8f2   :  { %6646 = vmatprep.mubr.f32.mxu0 %v8862_v32 }
 0x8f4   :  { %6516 = vmatmul.mubr.f32.gmra.mxu1 %v6210_v56 }
 0x8f5   :  { %7912 = vmatmul.mubr.msk.f32.gmra.mxu0 %vm6318_vm12, %v6197_v13  ;;  %6521 = vmatprep.mubr.f32.mxu1 %v6214_v4 }
 0x8f6   :  { %6652 = vmatprep.mubr.f32.mxu0 %v8862_v32 }
 0x8f8   :  { %6522 = vmatmul.mubr.f32.gmra.mxu1 %v6213_v25 }
 0x8f9   :  { %7913 = vmatmul.mubr.msk.f32.gmra.mxu0 %vm6318_vm12, %v6200_v46 }
 0x8fa   :  { %6658 = vmatprep.mubr.f32.mxu0 %v8862_v32 }
 0x8fd   :  { %7914 = vmatmul.mubr.msk.f32.gmra.mxu0 %vm6318_vm12, %v6203_v11 }
 0x8fe   :  { %6664 = vmatprep.mubr.f32.mxu0 %v8862_v32 }
 0x901   :  { %7915 = vmatmul.mubr.msk.f32.gmra.mxu0 %vm6318_vm12, %v6206_v43 }
 0x902   :  { %6670 = vmatprep.mubr.f32.mxu0 %v8862_v32 }
 0x905   :  { %7916 = vmatmul.mubr.msk.f32.gmra.mxu0 %vm6318_vm12, %v6209_v37 }
 0x906   :  { %6676 = vmatprep.mubr.f32.mxu0 %v8862_v32 }
 0x909   :  { %7917 = vmatmul.mubr.msk.f32.gmra.mxu0 %vm6318_vm12, %v6212_v39 }
 0x90a   :  { %6682 = vmatprep.mubr.f32.mxu0 %v8862_v32 }
 0x90d   :  { %7918 = vmatmul.mubr.msk.f32.gmra.mxu0 %vm6318_vm12, %v6215_v27 }
 0x97c   :  { %v6433_v30 = vpop.f32.mrf.mxu1 }
 0x97d   :  { %v6434_v49 = vadd.f32 %v6433_v30, %v11610_v5 }
 0x97e   :  { %v6435_v3 = vpop.f32.mrf.mxu1 }
 0x97f   :  { %v6436_v29 = vadd.f32 %v6435_v3, %v11613_v48 }
 0x980   :  { %v6439_v2 = vpop.f32.mrf.mxu1 }
 0x981   :  { %v6440_v51 = vadd.f32 %v6439_v2, %v11610_v5 }
 0x982   :  { %v6441_v16 = vpop.f32.mrf.mxu1 }
 0x983   :  { %v6442_v58 = vadd.f32 %v6441_v16, %v11613_v48 }
 0x984   :  { %v6445_v10 = vpop.f32.mrf.mxu1 }
 0x985   :  { %v6446_v15 = vadd.f32 %v6445_v10, %v11610_v5 }
 0x986   :  { %v6447_v35 = vpop.f32.mrf.mxu1 }
 0x987   :  { %v6448_v9 = vadd.f32 %v6447_v35, %v11613_v48 }
 0x988   :  { %v6451_v38 = vpop.f32.mrf.mxu1 }
 0x989   :  { %v6452_v12 = vadd.f32 %v6451_v38, %v11610_v5 }
 0x98a   :  { %v6453_v32 = vpop.f32.mrf.mxu1 }
 0x98b   :  { %v6454_v62 = vadd.f32 %v6453_v32, %v11613_v48 }
 0x98c   :  { %v6457_v28 = vpop.f32.mrf.mxu1 }
 0x98d   :  { %v6458_v19 = vadd.f32 %v6457_v28, %v11610_v5 }
 0x98e   :  { %v6459_v52 = vpop.f32.mrf.mxu1 }
 0x98f   :  { %v6460_v21 = vadd.f32 %v6459_v52, %v11613_v48 }
 0x990   :  { %v6463_v54 = vpop.f32.mrf.mxu1 }
 0x991   :  { %v6594_v57 = vpop.f32.mrf.mxu0  ;;  %v6464_v22 = vadd.f32 %v6463_v54, %v11610_v5 }
 0x992   :  { %v6595_v55 = vadd.f32 %v6594_v57, %v6434_v49  ;;  %v6465_v63 = vpop.f32.mrf.mxu1 }
 0x993   :  { %v6596_v47 = vpop.f32.mrf.mxu0  ;;  %v6466_v4 = vadd.f32 %v6465_v63, %v11613_v48 }
 0x994   :  { %6689 = vst [vmem:[%s11774_s15] sm:$0xff] %v6595_v55  ;;  %v6597_v40 = vadd.f32 %v6596_v47, %v6436_v29  ;;  %v6469_v36 = vpop.f32.mrf.mxu1 }
 0x995   :  { %v6600_v42 = vpop.f32.mrf.mxu0  ;;  %v6470_v46 = vadd.f32 %v6469_v36, %v11610_v5 }
 0x996   :  { %6690 = vst.msk [vmem:[%s11774_s15 + $0x8] sm:$0xff] %vm4614_vm4, %v6597_v40  ;;  %v6601_v7 = vadd.f32 %v6600_v42, %v6440_v51  ;;  %v6471_v8 = vpop.f32.mrf.mxu1 }
 0x997   :  { %v6602_v61 = vpop.f32.mrf.mxu0  ;;  %v6472_v30 = vadd.f32 %v6471_v8, %v11613_v48 }
 0x998   :  { %6691 = vst [vmem:[%s11774_s15 + $0x10] sm:$0xff] %v6601_v7  ;;  %v6603_v34 = vadd.f32 %v6602_v61, %v6442_v58  ;;  %v6475_v1 = vpop.f32.mrf.mxu1 }
 0x999   :  { %v6606_v6 = vpop.f32.mrf.mxu0  ;;  %v6476_v2 = vadd.f32 %v6475_v1, %v11610_v5 }
 0x99a   :  { %6692 = vst.msk [vmem:[%s11774_s15 + $0x18] sm:$0xff] %vm4614_vm4, %v6603_v34  ;;  %v6607_v33 = vadd.f32 %v6606_v6, %v6446_v15  ;;  %v6477_v50 = vpop.f32.mrf.mxu1 }
 0x99b   :  { %v6608_v14 = vpop.f32.mrf.mxu0  ;;  %v6478_v38 = vadd.f32 %v6477_v50, %v11613_v48 }
 0x99c   :  { %6693 = vst [vmem:[%s11774_s15 + $0x20] sm:$0xff] %v6607_v33  ;;  %v6609_v60 = vadd.f32 %v6608_v14, %v6448_v9  ;;  %v6481_v17 = vpop.f32.mrf.mxu1 }
 0x99d   :  { %v6612_v45 = vpop.f32.mrf.mxu0  ;;  %v6482_v28 = vadd.f32 %v6481_v17, %v11610_v5 }
 0x99e   :  { %6694 = vst.msk [vmem:[%s11774_s15 + $0x28] sm:$0xff] %vm4614_vm4, %v6609_v60  ;;  %v6613_v18 = vadd.f32 %v6612_v45, %v6452_v12  ;;  %v6483_v31 = vpop.f32.mrf.mxu1 }
 0x99f   :  { %v6614_v20 = vpop.f32.mrf.mxu0  ;;  %v6484_v29 = vadd.f32 %v6483_v31, %v11613_v48 }
 0x9a0   :  { %6695 = vst [vmem:[%s11774_s15 + $0x30] sm:$0xff] %v6613_v18  ;;  %v6615_v26 = vadd.f32 %v6614_v20, %v6454_v62  ;;  %v6487_v23 = vpop.f32.mrf.mxu1 }
 0x9a1   :  { %v6618_v41 = vpop.f32.mrf.mxu0  ;;  %v6488_v51 = vadd.f32 %v6487_v23, %v11610_v5 }
 0x9a2   :  { %6696 = vst.msk [vmem:[%s11774_s15 + $0x38] sm:$0xff] %vm4614_vm4, %v6615_v26  ;;  %v6619_v53 = vadd.f32 %v6618_v41, %v6458_v19  ;;  %v6489_v24 = vpop.f32.mrf.mxu1 }
 0x9a3   :  { %v6620_v59 = vpop.f32.mrf.mxu0  ;;  %v6490_v42 = vadd.f32 %v6489_v24, %v11613_v48 }
 0x9a4   :  { %6697 = vst [vmem:[%s11774_s15 + $0x40] sm:$0xff] %v6619_v53  ;;  %v6621_v0 = vadd.f32 %v6620_v59, %v6460_v21  ;;  %v6493_v56 = vpop.f32.mrf.mxu1 }
 0x9a5   :  { %v6624_v13 = vpop.f32.mrf.mxu0  ;;  %v6494_v7 = vadd.f32 %v6493_v56, %v11610_v5 }
 0x9a6   :  { %6698 = vst.msk [vmem:[%s11774_s15 + $0x48] sm:$0xff] %vm4614_vm4, %v6621_v0  ;;  %v6625_v25 = vadd.f32 %v6624_v13, %v6464_v22  ;;  %v6495_v11 = vpop.f32.mrf.mxu1 }
 0x9a7   :  { %v6626_v43 = vpop.f32.mrf.mxu0  ;;  %v6496_v1 = vadd.f32 %v6495_v11, %v11613_v48 }
 0x9a8   :  { %6699 = vst [vmem:[%s11774_s15 + $0x50] sm:$0xff] %v6625_v25  ;;  %v6627_v37 = vadd.f32 %v6626_v43, %v6466_v4  ;;  %v6499_v39 = vpop.f32.mrf.mxu1 }
 0x9a9   :  { %v6630_v27 = vpop.f32.mrf.mxu0  ;;  %v6500_v9 = vadd.f32 %v6499_v39, %v11610_v5 }
 0x9aa   :  { %6700 = vst.msk [vmem:[%s11774_s15 + $0x58] sm:$0xff] %vm4614_vm4, %v6627_v37  ;;  %v6631_v3 = vadd.f32 %v6630_v27, %v6470_v46  ;;  %v6501_v10 = vpop.f32.mrf.mxu1 }
 0x9ab   :  { %v6632_v16 = vpop.f32.mrf.mxu0  ;;  %v6502_v60 = vadd.f32 %v6501_v10, %v11613_v48 }
 0x9ac   :  { %6701 = vst [vmem:[%s11774_s15 + $0x60] sm:$0xff] %v6631_v3  ;;  %v6633_v35 = vadd.f32 %v6632_v16, %v6472_v30  ;;  %v6505_v52 = vpop.f32.mrf.mxu1 }
 0x9ad   :  { %v6636_v44 = vpop.f32.mrf.mxu0  ;;  %v6506_v45 = vadd.f32 %v6505_v52, %v11610_v5 }
 0x9ae   :  { %6702 = vst.msk [vmem:[%s11774_s15 + $0x68] sm:$0xff] %vm4614_vm4, %v6633_v35  ;;  %v6637_v32 = vadd.f32 %v6636_v44, %v6476_v2  ;;  %v6507_v47 = vpop.f32.mrf.mxu1 }
 0x9af   :  { %v6638_v49 = vpop.f32.mrf.mxu0  ;;  %v6508_v20 = vadd.f32 %v6507_v47, %v11613_v48 }
 0x9b0   :  { %6703 = vst [vmem:[%s11774_s15 + $0x70] sm:$0xff] %v6637_v32  ;;  %v6639_v54 = vadd.f32 %v6638_v49, %v6478_v38  ;;  %v6511_v8 = vpop.f32.mrf.mxu1 }
 0x9b1   :  { %v6642_v57 = vpop.f32.mrf.mxu0  ;;  %v6512_v23 = vadd.f32 %v6511_v8, %v11610_v5 }
 0x9b2   :  { %6704 = vst.msk [vmem:[%s11774_s15 + $0x78] sm:$0xff] %vm4614_vm4, %v6639_v54  ;;  %v6643_v55 = vadd.f32 %v6642_v57, %v6482_v28  ;;  %v6513_v12 = vpop.f32.mrf.mxu1 }
 0x9b3   :  { %v6644_v63 = vpop.f32.mrf.mxu0  ;;  %v6514_v24 = vadd.f32 %v6513_v12, %v11613_v48 }
 0x9b4   :  { %6705 = vst [vmem:[%s11774_s15 + $0x80] sm:$0xff] %v6643_v55  ;;  %v6645_v40 = vadd.f32 %v6644_v63, %v6484_v29  ;;  %v6517_v18 = vpop.f32.mrf.mxu1 }
 0x9b5   :  { %v6648_v36 = vpop.f32.mrf.mxu0  ;;  %v6518_v0 = vadd.f32 %v6517_v18, %v11610_v5 }
 0x9b6   :  { %6706 = vst.msk [vmem:[%s11774_s15 + $0x88] sm:$0xff] %vm4614_vm4, %v6645_v40  ;;  %v6649_v58 = vadd.f32 %v6648_v36, %v6488_v51  ;;  %v6519_v21 = vpop.f32.mrf.mxu1 }
 0x9b7   :  { %v6650_v15 = vpop.f32.mrf.mxu0  ;;  %v6520_v46 = vadd.f32 %v6519_v21, %v11613_v48 }
 0x9b8   :  { %6707 = vst [vmem:[%s11774_s15 + $0x90] sm:$0xff] %v6649_v58  ;;  %v6651_v61 = vadd.f32 %v6650_v15, %v6490_v42  ;;  %v6523_v13 = vpop.f32.mrf.mxu1 }
 0x9b9   :  { %v6654_v34 = vpop.f32.mrf.mxu0  ;;  %v6524_v43 = vadd.f32 %v6523_v13, %v11610_v5 }
 0x9ba   :  { %6708 = vst.msk [vmem:[%s11774_s15 + $0x98] sm:$0xff] %vm4614_vm4, %v6651_v61  ;;  %v6655_v6 = vadd.f32 %v6654_v34, %v6494_v7  ;;  %v6525_v39 = vpop.f32.mrf.mxu1 }
 0x9bb   :  { %v6656_v33 = vpop.f32.mrf.mxu0  ;;  %v6526_v3 = vadd.f32 %v6525_v39, %v11613_v48 }
 0x9bc   :  { %6709 = vst [vmem:[%s11774_s15 + $0xa0] sm:$0xff] %v6655_v6  ;;  %v6657_v50 = vadd.f32 %v6656_v33, %v6496_v1 }
 0x9bd   :  { %v6660_v14 = vpop.f32.mrf.mxu0 }
 0x9be   :  { %6710 = vst.msk [vmem:[%s11774_s15 + $0xa8] sm:$0xff] %vm4614_vm4, %v6657_v50  ;;  %v6661_v17 = vadd.f32 %v6660_v14, %v6500_v9 }
 0x9bf   :  { %v6662_v62 = vpop.f32.mrf.mxu0 }
 0x9c0   :  { %6711 = vst [vmem:[%s11774_s15 + $0xb0] sm:$0xff] %v6661_v17  ;;  %v6663_v19 = vadd.f32 %v6662_v62, %v6502_v60 }
 0x9c1   :  { %v6666_v31 = vpop.f32.mrf.mxu0 }
 0x9c2   :  { %6712 = vst.msk [vmem:[%s11774_s15 + $0xb8] sm:$0xff] %vm4614_vm4, %v6663_v19  ;;  %v6667_v26 = vadd.f32 %v6666_v31, %v6506_v45 }
 0x9c3   :  { %v6668_v41 = vpop.f32.mrf.mxu0 }
 0x9c4   :  { %6713 = vst [vmem:[%s11774_s15 + $0xc0] sm:$0xff] %v6667_v26  ;;  %v6669_v53 = vadd.f32 %v6668_v41, %v6508_v20 }
 0x9c5   :  { %v6672_v22 = vpop.f32.mrf.mxu0 }
 0x9c6   :  { %6714 = vst.msk [vmem:[%s11774_s15 + $0xc8] sm:$0xff] %vm4614_vm4, %v6669_v53  ;;  %v6673_v59 = vadd.f32 %v6672_v22, %v6512_v23 }
 0x9c7   :  { %v6674_v56 = vpop.f32.mrf.mxu0 }
 0x9c8   :  { %6715 = vst [vmem:[%s11774_s15 + $0xd0] sm:$0xff] %v6673_v59  ;;  %v6675_v4 = vadd.f32 %v6674_v56, %v6514_v24 }
 0x9c9   :  { %v6678_v25 = vpop.f32.mrf.mxu0 }
 0x9ca   :  { %6716 = vst.msk [vmem:[%s11774_s15 + $0xd8] sm:$0xff] %vm4614_vm4, %v6675_v4  ;;  %v6679_v11 = vadd.f32 %v6678_v25, %v6518_v0 }
 0x9cb   :  { %v6680_v37 = vpop.f32.mrf.mxu0 }
 0x9cc   :  { %6717 = vst [vmem:[%s11774_s15 + $0xe0] sm:$0xff] %v6679_v11  ;;  %v6681_v27 = vadd.f32 %v6680_v37, %v6520_v46 }
 0x9cd   :  { %v6684_v30 = vpop.f32.mrf.mxu0 }
 0x9ce   :  { %6718 = vst.msk [vmem:[%s11774_s15 + $0xe8] sm:$0xff] %vm4614_vm4, %v6681_v27  ;;  %v6685_v2 = vadd.f32 %v6684_v30, %v6524_v43 }
 0x9cf   :  { %v6686_v16 = vpop.f32.mrf.mxu0 }
 0x9d0   :  { %6719 = vst [vmem:[%s11774_s15 + $0xf0] sm:$0xff] %v6685_v2  ;;  %v6687_v5 = vadd.f32 %v6686_v16, %v6526_v3 }
 0x9d2   :  { %6720 = vst.msk [vmem:[%s11774_s15 + $0xf8] sm:$0xff] %vm4614_vm4, %v6687_v5 }

</bundles_post_ra>
